<compile_context>
chip_gen: v7x
topology: tpu7x:2x2x1
jax: 0.10.0
libtpu: 0.0.40
codegen_flags: <defaults>
</compile_context>

<pallas_src>
import math

import jax
import jax.numpy as jnp
from jax import lax
from jax.experimental import pallas as pl
from jax.experimental.pallas import tpu as pltpu

# ---- module hyper-parameters (PyTorch defaults) ----
N_TRACK = 10
N_WAYPOINTS = 3
D_MODEL = 192
NHEAD = 4
NUM_LAYERS = 4
D_FF = 256
HEAD_DIM = D_MODEL // NHEAD
S = 2 * N_TRACK          # memory sequence length (left + right boundary)
MAX_BB = 32              # max batch rows processed per grid step


def _layer_norm(x, w, b, eps=1e-5):
    m = jnp.mean(x, axis=-1, keepdims=True)
    v = jnp.mean((x - m) ** 2, axis=-1, keepdims=True)
    return (x - m) * lax.rsqrt(v + eps) * w + b


def _mha(q_in, kv_in, qw, kw, vw, qb, kb, vb, ow, ob, bias):
    """Multi-head attention on flattened (rows, D) slabs covering BB batches.

    Matmul weights are bf16; accumulation, softmax and bias math stay in f32.
    `bias` is an additive block-diagonal mask (0 same-batch, -1e30 cross-batch)
    so one large masked matmul replaces BB tiny per-batch score matmuls.
    q-projection weights/bias are pre-scaled by 1/sqrt(HEAD_DIM) in the
    wrapper.  Matches nn.MultiheadAttention (eval, no mask) up to bf16 rounding.
    """
    q_b = q_in.astype(jnp.bfloat16)
    kv_b = kv_in.astype(jnp.bfloat16)
    q = jnp.dot(q_b, qw, preferred_element_type=jnp.float32) + qb
    k = jnp.dot(kv_b, kw, preferred_element_type=jnp.float32) + kb
    v = jnp.dot(kv_b, vw, preferred_element_type=jnp.float32) + vb

    heads = []
    for h in range(NHEAD):
        sl = slice(h * HEAD_DIM, (h + 1) * HEAD_DIM)
        qh = q[:, sl].astype(jnp.bfloat16)
        kh = k[:, sl].astype(jnp.bfloat16)
        vh = v[:, sl].astype(jnp.bfloat16)
        # q @ k^T without an explicit transpose (NT dot_general), f32 scores.
        s = lax.dot_general(qh, kh, (((1,), (1,)), ((), ())),
                            preferred_element_type=jnp.float32) + bias
        s = s - jnp.max(s, axis=-1, keepdims=True)
        p = jnp.exp(s)
        p = p * pl.reciprocal(jnp.sum(p, axis=-1, keepdims=True), approx=True)
        heads.append(jnp.dot(p.astype(jnp.bfloat16), vh,
                             preferred_element_type=jnp.float32))

    # Heads are contiguous 48-lane column blocks -> a single K=192 out-proj
    # dot instead of 4 partial K=48 dots.
    head_cat = jnp.concatenate(heads, axis=-1).astype(jnp.bfloat16)
    return jnp.dot(head_cat, ow, preferred_element_type=jnp.float32) + ob


def planner_layer_kernel(mem_ref, q0_ref, self_bias_ref, cross_bias_ref,
                         sa_qw, sa_kw, sa_vw, sa_qb, sa_kb, sa_vb, sa_ow, sa_ob,
                         ca_qw, ca_kw, ca_vw, ca_qb, ca_kb, ca_vb, ca_ow, ca_ob,
                         ln1_w, ln1_b, ln2_w, ln2_b, ln3_w, ln3_b,
                         ff1_w, ff1_b, ff2_w, ff2_b,
                         out_ref, x_scratch):
    """One norm-first TransformerDecoderLayer for one batch block.

    grid = (batch_block, layer).  x_scratch carries the activation across the
    layer axis; the output block is only written at the last layer.
    """
    l = pl.program_id(1)

    @pl.when(l == 0)
    def _():
        x_scratch[...] = q0_ref[...]

    x = x_scratch[...]                   # (BB*T, D) f32 running activation
    self_bias = self_bias_ref[...]       # (BB*T, BB*T) f32 block-diag bias
    cross_bias = cross_bias_ref[...]     # (BB*T, BB*S) f32 block-diag bias

    # --- self attention (pre-norm) ---
    xn = _layer_norm(x, ln1_w[...], ln1_b[...])
    x = x + _mha(xn, xn,
                 sa_qw[...], sa_kw[...], sa_vw[...],
                 sa_qb[...], sa_kb[...], sa_vb[...],
                 sa_ow[...], sa_ob[...], self_bias)

    # --- cross attention over the (bf16) track-memory slab ---
    xn = _layer_norm(x, ln2_w[...], ln2_b[...])
    x = x + _mha(xn, mem_ref[...],
                 ca_qw[...], ca_kw[...], ca_vw[...],
                 ca_qb[...], ca_kb[...], ca_vb[...],
                 ca_ow[...], ca_ob[...], cross_bias)

    # --- feed-forward (dropout == identity in eval) ---
    xn = _layer_norm(x, ln3_w[...], ln3_b[...])
    h = jnp.maximum(
        jnp.dot(xn.astype(jnp.bfloat16), ff1_w[...],
                preferred_element_type=jnp.float32) + ff1_b[...], 0.0)
    x = x + jnp.dot(h.astype(jnp.bfloat16), ff2_w[...],
                    preferred_element_type=jnp.float32) + ff2_b[...]

    x_scratch[...] = x

    @pl.when(l == pl.num_programs(1) - 1)
    def _():
        out_ref[...] = x                 # lane-dense (BB*T, 192) write


def _choose_bb(batch):
    """Batch rows per grid step: multiple of 8, <= MAX_BB, prefer >= 2 grid
    steps (feeds both v7x TensorCores) and minimal zero-padding, with BB in
    the 16..32 sweet spot when the batch allows it."""
    if batch <= 8:
        return 8
    best_key, best_bb = None, 8
    for nblk in range(2, -(-batch // 8) + 1):
        bb = -(-batch // nblk)
        bb = -(-bb // 8) * 8
        if bb > MAX_BB:
            continue
        pad = nblk * bb - batch
        key = (0 if bb >= 16 else 1, pad, nblk % 2, -bb)
        if best_key is None or key < best_key:
            best_key, best_bb = key, bb
    return best_bb


def init_params(key):
    """Deterministic synthetic parameters (shapes match the PyTorch module)."""
    ks = jax.random.split(key, 9)
    L = NUM_LAYERS

    def w(k, shape, scale=0.02):
        return (scale * jax.random.normal(k, shape)).astype(jnp.float32)

    return {
        "in_w": w(ks[0], (3, D_MODEL)),
        "in_b": jnp.zeros((1, D_MODEL), jnp.float32),
        "qe": w(ks[1], (N_WAYPOINTS, D_MODEL), scale=0.1),       # xavier-style
        "sa_in_w": w(ks[2], (L, D_MODEL, 3 * D_MODEL)),
        "sa_in_b": jnp.zeros((L, 1, 3 * D_MODEL), jnp.float32),
        "sa_out_w": w(ks[3], (L, D_MODEL, D_MODEL)),
        "sa_out_b": jnp.zeros((L, 1, D_MODEL), jnp.float32),
        "ca_in_w": w(ks[4], (L, D_MODEL, 3 * D_MODEL)),
        "ca_in_b": jnp.zeros((L, 1, 3 * D_MODEL), jnp.float32),
        "ca_out_w": w(ks[5], (L, D_MODEL, D_MODEL)),
        "ca_out_b": jnp.zeros((L, 1, D_MODEL), jnp.float32),
        "ln1_w": jnp.ones((L, 1, D_MODEL), jnp.float32),
        "ln1_b": jnp.zeros((L, 1, D_MODEL), jnp.float32),
        "ln2_w": jnp.ones((L, 1, D_MODEL), jnp.float32),
        "ln2_b": jnp.zeros((L, 1, D_MODEL), jnp.float32),
        "ln3_w": jnp.ones((L, 1, D_MODEL), jnp.float32),
        "ln3_b": jnp.zeros((L, 1, D_MODEL), jnp.float32),
        "ff1_w": w(ks[6], (L, D_MODEL, D_FF)),
        "ff1_b": jnp.zeros((L, 1, D_FF), jnp.float32),
        "ff2_w": w(ks[7], (L, D_FF, D_MODEL)),
        "ff2_b": jnp.zeros((L, 1, D_MODEL), jnp.float32),
        "out_w": w(ks[8], (D_MODEL, 2)),
        "out_b": jnp.zeros((1, 2), jnp.float32),
    }


@jax.jit
def transformer_planner(track_left, track_right, params):
    B = track_left.shape[0]
    d = D_MODEL
    f32, bf16 = jnp.float32, jnp.bfloat16

    # ---- XLA glue: build + normalize track, K=3 input projection ----
    track = jnp.concatenate([track_left, track_right], axis=1).astype(f32)   # (B,S,2)
    pos = jnp.broadcast_to(
        jnp.linspace(-1.0, 1.0, S, dtype=f32).reshape(1, S, 1), (B, S, 1))
    track = jnp.concatenate([track, pos], axis=-1)                           # (B,S,3)

    mean = jnp.mean(track, axis=1, keepdims=True)
    var = jnp.sum((track - mean) ** 2, axis=1, keepdims=True) / (S - 1)      # ddof=1
    track = (track - mean) / (jnp.sqrt(var) + 1e-6)

    memory = jnp.einsum("bsc,cd->bsd", track, params["in_w"]) + params["in_b"]

    # ---- batch blocking ----
    BB = _choose_bb(B)
    nblk = -(-B // BB)                  # ceil(B / BB)
    Bp = nblk * BB
    if Bp > B:
        memory = jnp.concatenate(
            [memory, jnp.zeros((Bp - B, S, d), f32)], axis=0)
    mem_flat = memory.reshape(Bp * S, d).astype(bf16)            # (Bp*S, D) bf16

    BBT = BB * N_WAYPOINTS
    BBS = BB * S

    q0 = jnp.tile(params["qe"], (BB, 1)).astype(f32)             # (BB*T, D)

    # block-diagonal additive attention biases (same for every grid block)
    b_q = jnp.repeat(jnp.arange(BB, dtype=jnp.int32), N_WAYPOINTS)
    b_k = jnp.repeat(jnp.arange(BB, dtype=jnp.int32), S)
    self_bias = jnp.where(b_q[:, None] == b_q[None, :], 0.0, -1e30).astype(f32)
    cross_bias = jnp.where(b_q[:, None] == b_k[None, :], 0.0, -1e30).astype(f32)

    # pre-split stacked in-proj weights, fold 1/sqrt(head_dim) into q, cast to bf16
    scale = 1.0 / math.sqrt(HEAD_DIM)

    def split_qkv(wm, bm):
        qw, kw, vw = wm[:, :, :d], wm[:, :, d:2 * d], wm[:, :, 2 * d:]
        qb, kb, vb = bm[:, :, :d], bm[:, :, d:2 * d], bm[:, :, 2 * d:]
        return ((qw * scale).astype(bf16), kw.astype(bf16), vw.astype(bf16),
                (qb * scale).astype(f32), kb.astype(f32), vb.astype(f32))

    sa = split_qkv(params["sa_in_w"], params["sa_in_b"])
    ca = split_qkv(params["ca_in_w"], params["ca_in_b"])

    weights = [
        *sa, params["sa_out_w"].astype(bf16), params["sa_out_b"],
        *ca, params["ca_out_w"].astype(bf16), params["ca_out_b"],
        params["ln1_w"], params["ln1_b"], params["ln2_w"], params["ln2_b"],
        params["ln3_w"], params["ln3_b"],
        params["ff1_w"].astype(bf16), params["ff1_b"],
        params["ff2_w"].astype(bf16), params["ff2_b"],
    ]

    # -- BlockSpecs --
    def layer_spec(a):
        nd = a.ndim
        return pl.BlockSpec(
            (None,) + a.shape[1:],
            lambda b, l, _nd=nd: (l,) + (0,) * (_nd - 1))

    def const_spec(a):
        nd = a.ndim
        idx = lambda b, l, _nd=nd: (0,) * _nd
        if hasattr(pl, "Buffered"):
            try:
                # grid-invariant -> single-buffer (no wasted second pipeline buffer)
                return pl.BlockSpec(a.shape, idx, pipeline_mode=pl.Buffered(1))
            except TypeError:
                pass
        return pl.BlockSpec(a.shape, idx)

    in_specs = (
        [pl.BlockSpec((BBS, d), lambda b, l: (b, 0)),   # memory slab for block b
         const_spec(q0), const_spec(self_bias), const_spec(cross_bias)]
        + [layer_spec(a) for a in weights])
    out_specs = pl.BlockSpec((BBT, d), lambda b, l: (b, 0))

    decoded = pl.pallas_call(
        planner_layer_kernel,
        out_shape=jax.ShapeDtypeStruct((Bp * N_WAYPOINTS, d), f32),
        grid=(nblk, NUM_LAYERS),
        in_specs=in_specs,
        out_specs=out_specs,
        scratch_shapes=[pltpu.VMEM((BBT, d), f32)],     # activation carried across layers
        compiler_params=pltpu.CompilerParams(
            dimension_semantics=("parallel", "arbitrary"),
            vmem_limit_bytes=48 * 1024 * 1024,          # < 64 MiB v7x physical VMEM
        ),
    )(mem_flat, q0, self_bias, cross_bias, *weights)

    decoded = decoded.reshape(Bp, N_WAYPOINTS, d)[:B]            # (B, T, D)

    # ---- lane-sparse (192, 2) output projection kept in XLA ----
    waypoints = jnp.einsum("btd,dc->btc", decoded, params["out_w"]) + params["out_b"]
    return waypoints


if __name__ == "__main__":
    key = jax.random.PRNGKey(0)
    kp, kl, kr = jax.random.split(key, 3)
    params = init_params(kp)

    B = 2
    track_left = jax.random.normal(kl, (B, N_TRACK, 2), dtype=jnp.float32)
    track_right = jax.random.normal(kr, (B, N_TRACK, 2), dtype=jnp.float32)

    waypoints = transformer_planner(track_left, track_right, params)
    waypoints = jax.block_until_ready(waypoints)

    assert waypoints.shape == (B, N_WAYPOINTS, 2), waypoints.shape
    assert bool(jnp.all(jnp.isfinite(waypoints)))
    print("KERNEL_OK")
</pallas_src>

<mosaic_0001>
module attributes {stable_mosaic.version = 11 : i64} {
  func.func @planner_layer_kernel(%arg0: i32, %arg1: i32, %arg2: memref<160x192xbf16, #tpu.memory_space<vmem>>, %arg3: memref<24x192xf32, #tpu.memory_space<vmem>>, %arg4: memref<24x24xf32, #tpu.memory_space<vmem>>, %arg5: memref<24x160xf32, #tpu.memory_space<vmem>>, %arg6: memref<1x192x192xbf16, #tpu.memory_space<vmem>>, %arg7: memref<1x192x192xbf16, #tpu.memory_space<vmem>>, %arg8: memref<1x192x192xbf16, #tpu.memory_space<vmem>>, %arg9: memref<1x1x192xf32, #tpu.memory_space<vmem>>, %arg10: memref<1x1x192xf32, #tpu.memory_space<vmem>>, %arg11: memref<1x1x192xf32, #tpu.memory_space<vmem>>, %arg12: memref<1x192x192xbf16, #tpu.memory_space<vmem>>, %arg13: memref<1x1x192xf32, #tpu.memory_space<vmem>>, %arg14: memref<1x192x192xbf16, #tpu.memory_space<vmem>>, %arg15: memref<1x192x192xbf16, #tpu.memory_space<vmem>>, %arg16: memref<1x192x192xbf16, #tpu.memory_space<vmem>>, %arg17: memref<1x1x192xf32, #tpu.memory_space<vmem>>, %arg18: memref<1x1x192xf32, #tpu.memory_space<vmem>>, %arg19: memref<1x1x192xf32, #tpu.memory_space<vmem>>, %arg20: memref<1x192x192xbf16, #tpu.memory_space<vmem>>, %arg21: memref<1x1x192xf32, #tpu.memory_space<vmem>>, %arg22: memref<1x1x192xf32, #tpu.memory_space<vmem>>, %arg23: memref<1x1x192xf32, #tpu.memory_space<vmem>>, %arg24: memref<1x1x192xf32, #tpu.memory_space<vmem>>, %arg25: memref<1x1x192xf32, #tpu.memory_space<vmem>>, %arg26: memref<1x1x192xf32, #tpu.memory_space<vmem>>, %arg27: memref<1x1x192xf32, #tpu.memory_space<vmem>>, %arg28: memref<1x192x256xbf16, #tpu.memory_space<vmem>>, %arg29: memref<1x1x256xf32, #tpu.memory_space<vmem>>, %arg30: memref<1x256x192xbf16, #tpu.memory_space<vmem>>, %arg31: memref<1x1x192xf32, #tpu.memory_space<vmem>>, %arg32: memref<24x192xf32, #tpu.memory_space<vmem>>, %arg33: memref<24x192xf32, #tpu.memory_space<vmem>>) attributes {dimension_semantics = [#tpu.dimension_semantics<parallel>, #tpu.dimension_semantics<arbitrary>], iteration_bounds = array<i64: 1, 4>, scalar_prefetch = 0 : i64, scratch_operands = 1 : i64, tpu.core_type = #tpu.core_type<tc>, window_params = [{transform_indices = @transform_0, window_bounds = array<i64: 160, 192>}, {pipeline_mode = #tpu.pipeline_mode<synchronous>, transform_indices = @transform_1, window_bounds = array<i64: 24, 192>}, {pipeline_mode = #tpu.pipeline_mode<synchronous>, transform_indices = @transform_2, window_bounds = array<i64: 24, 24>}, {pipeline_mode = #tpu.pipeline_mode<synchronous>, transform_indices = @transform_3, window_bounds = array<i64: 24, 160>}, {transform_indices = @transform_4, window_bounds = array<i64: 1, 192, 192>}, {transform_indices = @transform_5, window_bounds = array<i64: 1, 192, 192>}, {transform_indices = @transform_6, window_bounds = array<i64: 1, 192, 192>}, {transform_indices = @transform_7, window_bounds = array<i64: 1, 1, 192>}, {transform_indices = @transform_8, window_bounds = array<i64: 1, 1, 192>}, {transform_indices = @transform_9, window_bounds = array<i64: 1, 1, 192>}, {transform_indices = @transform_10, window_bounds = array<i64: 1, 192, 192>}, {transform_indices = @transform_11, window_bounds = array<i64: 1, 1, 192>}, {transform_indices = @transform_12, window_bounds = array<i64: 1, 192, 192>}, {transform_indices = @transform_13, window_bounds = array<i64: 1, 192, 192>}, {transform_indices = @transform_14, window_bounds = array<i64: 1, 192, 192>}, {transform_indices = @transform_15, window_bounds = array<i64: 1, 1, 192>}, {transform_indices = @transform_16, window_bounds = array<i64: 1, 1, 192>}, {transform_indices = @transform_17, window_bounds = array<i64: 1, 1, 192>}, {transform_indices = @transform_18, window_bounds = array<i64: 1, 192, 192>}, {transform_indices = @transform_19, window_bounds = array<i64: 1, 1, 192>}, {transform_indices = @transform_20, window_bounds = array<i64: 1, 1, 192>}, {transform_indices = @transform_21, window_bounds = array<i64: 1, 1, 192>}, {transform_indices = @transform_22, window_bounds = array<i64: 1, 1, 192>}, {transform_indices = @transform_23, window_bounds = array<i64: 1, 1, 192>}, {transform_indices = @transform_24, window_bounds = array<i64: 1, 1, 192>}, {transform_indices = @transform_25, window_bounds = array<i64: 1, 1, 192>}, {transform_indices = @transform_26, window_bounds = array<i64: 1, 192, 256>}, {transform_indices = @transform_27, window_bounds = array<i64: 1, 1, 256>}, {transform_indices = @transform_28, window_bounds = array<i64: 1, 256, 192>}, {transform_indices = @transform_29, window_bounds = array<i64: 1, 1, 192>}, {transform_indices = @transform_30, window_bounds = array<i64: 24, 192>}]} {
    %c0_i32 = arith.constant 0 : i32
    %0 = arith.cmpi eq, %arg1, %c0_i32 : i32
    %1 = arith.extui %0 : i1 to i32
    %c0_i32_0 = arith.constant 0 : i32
    %2 = arith.cmpi ne, %1, %c0_i32_0 : i32
    scf.if %2 {
      %c0_146 = arith.constant 0 : index
      %c0_147 = arith.constant 0 : index
      %333 = vector.load %arg3[%c0_146, %c0_147] : memref<24x192xf32, #tpu.memory_space<vmem>>, vector<24x192xf32>
      %c0_148 = arith.constant 0 : index
      %c0_149 = arith.constant 0 : index
      %334 = vector.load %arg33[%c0_148, %c0_149] : memref<24x192xf32, #tpu.memory_space<vmem>>, vector<24x192xf32>
      tpu.vector_store %arg33[%c0_148, %c0_149], %333 {strides = array<i32>} : memref<24x192xf32, #tpu.memory_space<vmem>>, vector<24x192xf32>,
    } else {
    }
    %c0 = arith.constant 0 : index
    %c0_1 = arith.constant 0 : index
    %3 = vector.load %arg33[%c0, %c0_1] : memref<24x192xf32, #tpu.memory_space<vmem>>, vector<24x192xf32>
    %c0_2 = arith.constant 0 : index
    %c0_3 = arith.constant 0 : index
    %4 = vector.load %arg4[%c0_2, %c0_3] : memref<24x24xf32, #tpu.memory_space<vmem>>, vector<24x24xf32>
    %c0_4 = arith.constant 0 : index
    %c0_5 = arith.constant 0 : index
    %5 = vector.load %arg5[%c0_4, %c0_5] : memref<24x160xf32, #tpu.memory_space<vmem>>, vector<24x160xf32>
    %c0_6 = arith.constant 0 : index
    %c0_7 = arith.constant 0 : index
    %c0_8 = arith.constant 0 : index
    %6 = vector.load %arg22[%c0_6, %c0_7, %c0_8] : memref<1x1x192xf32, #tpu.memory_space<vmem>>, vector<1x1x192xf32>
    %7 = vector.shape_cast %6 : vector<1x1x192xf32> to vector<1x192xf32>
    %c0_9 = arith.constant 0 : index
    %c0_10 = arith.constant 0 : index
    %c0_11 = arith.constant 0 : index
    %8 = vector.load %arg23[%c0_9, %c0_10, %c0_11] : memref<1x1x192xf32, #tpu.memory_space<vmem>>, vector<1x1x192xf32>
    %9 = vector.shape_cast %8 : vector<1x1x192xf32> to vector<1x192xf32>
    %cst = arith.constant dense<0.000000e+00> : vector<24xf32>
    %10 = vector.multi_reduction <add>, %3, %cst [1] : vector<24x192xf32> to vector<24xf32>
    %11 = vector.shape_cast %10 : vector<24xf32> to vector<24x1xf32>
    %cst_12 = arith.constant 1.920000e+02 : f32
    %12 = vector.broadcast %cst_12 : f32 to vector<24x1xf32>
    %13 = arith.divf %11, %12 : vector<24x1xf32>
    %14 = vector.broadcast %13 : vector<24x1xf32> to vector<24x192xf32>
    %15 = arith.subf %3, %14 : vector<24x192xf32>
    %16 = arith.mulf %15, %15 : vector<24x192xf32>
    %cst_13 = arith.constant dense<0.000000e+00> : vector<24xf32>
    %17 = vector.multi_reduction <add>, %16, %cst_13 [1] : vector<24x192xf32> to vector<24xf32>
    %18 = vector.shape_cast %17 : vector<24xf32> to vector<24x1xf32>
    %cst_14 = arith.constant 1.920000e+02 : f32
    %19 = vector.broadcast %cst_14 : f32 to vector<24x1xf32>
    %20 = arith.divf %18, %19 : vector<24x1xf32>
    %21 = vector.broadcast %13 : vector<24x1xf32> to vector<24x192xf32>
    %22 = arith.subf %3, %21 : vector<24x192xf32>
    %cst_15 = arith.constant 9.99999974E-6 : f32
    %23 = vector.broadcast %cst_15 : f32 to vector<24x1xf32>
    %24 = arith.addf %20, %23 : vector<24x1xf32>
    %25 = math.rsqrt %24 : vector<24x1xf32>
    %26 = vector.broadcast %25 : vector<24x1xf32> to vector<24x192xf32>
    %27 = arith.mulf %22, %26 : vector<24x192xf32>
    %28 = vector.broadcast %7 : vector<1x192xf32> to vector<24x192xf32>
    %29 = arith.mulf %27, %28 : vector<24x192xf32>
    %30 = vector.broadcast %9 : vector<1x192xf32> to vector<24x192xf32>
    %31 = arith.addf %29, %30 : vector<24x192xf32>
    %c0_16 = arith.constant 0 : index
    %c0_17 = arith.constant 0 : index
    %c0_18 = arith.constant 0 : index
    %32 = vector.load %arg6[%c0_16, %c0_17, %c0_18] : memref<1x192x192xbf16, #tpu.memory_space<vmem>>, vector<1x192x192xbf16>
    %33 = vector.shape_cast %32 : vector<1x192x192xbf16> to vector<192x192xbf16>
    %c0_19 = arith.constant 0 : index
    %c0_20 = arith.constant 0 : index
    %c0_21 = arith.constant 0 : index
    %34 = vector.load %arg7[%c0_19, %c0_20, %c0_21] : memref<1x192x192xbf16, #tpu.memory_space<vmem>>, vector<1x192x192xbf16>
    %35 = vector.shape_cast %34 : vector<1x192x192xbf16> to vector<192x192xbf16>
    %c0_22 = arith.constant 0 : index
    %c0_23 = arith.constant 0 : index
    %c0_24 = arith.constant 0 : index
    %36 = vector.load %arg8[%c0_22, %c0_23, %c0_24] : memref<1x192x192xbf16, #tpu.memory_space<vmem>>, vector<1x192x192xbf16>
    %37 = vector.shape_cast %36 : vector<1x192x192xbf16> to vector<192x192xbf16>
    %c0_25 = arith.constant 0 : index
    %c0_26 = arith.constant 0 : index
    %c0_27 = arith.constant 0 : index
    %38 = vector.load %arg9[%c0_25, %c0_26, %c0_27] : memref<1x1x192xf32, #tpu.memory_space<vmem>>, vector<1x1x192xf32>
    %39 = vector.shape_cast %38 : vector<1x1x192xf32> to vector<1x192xf32>
    %c0_28 = arith.constant 0 : index
    %c0_29 = arith.constant 0 : index
    %c0_30 = arith.constant 0 : index
    %40 = vector.load %arg10[%c0_28, %c0_29, %c0_30] : memref<1x1x192xf32, #tpu.memory_space<vmem>>, vector<1x1x192xf32>
    %41 = vector.shape_cast %40 : vector<1x1x192xf32> to vector<1x192xf32>
    %c0_31 = arith.constant 0 : index
    %c0_32 = arith.constant 0 : index
    %c0_33 = arith.constant 0 : index
    %42 = vector.load %arg11[%c0_31, %c0_32, %c0_33] : memref<1x1x192xf32, #tpu.memory_space<vmem>>, vector<1x1x192xf32>
    %43 = vector.shape_cast %42 : vector<1x1x192xf32> to vector<1x192xf32>
    %c0_34 = arith.constant 0 : index
    %c0_35 = arith.constant 0 : index
    %c0_36 = arith.constant 0 : index
    %44 = vector.load %arg12[%c0_34, %c0_35, %c0_36] : memref<1x192x192xbf16, #tpu.memory_space<vmem>>, vector<1x192x192xbf16>
    %45 = vector.shape_cast %44 : vector<1x192x192xbf16> to vector<192x192xbf16>
    %c0_37 = arith.constant 0 : index
    %c0_38 = arith.constant 0 : index
    %c0_39 = arith.constant 0 : index
    %46 = vector.load %arg13[%c0_37, %c0_38, %c0_39] : memref<1x1x192xf32, #tpu.memory_space<vmem>>, vector<1x1x192xf32>
    %47 = vector.shape_cast %46 : vector<1x1x192xf32> to vector<1x192xf32>
    %48 = arith.truncf %31 : vector<24x192xf32> to vector<24x192xbf16>
    %49 = arith.truncf %31 : vector<24x192xf32> to vector<24x192xbf16>
    %cst_40 = arith.constant dense<0.000000e+00> : vector<24x192xf32>
    %50 = tpu.matmul %48, %33, %cst_40 {dimension_numbers = #tpu.dot_dimension_numbers<[1], [0], [0], [1], [0, 0, 1, 1], [], []>} : vector<24x192xbf16>, vector<192x192xbf16>, vector<24x192xf32> -> vector<24x192xf32>
    %51 = vector.broadcast %39 : vector<1x192xf32> to vector<24x192xf32>
    %52 = arith.addf %50, %51 : vector<24x192xf32>
    %cst_41 = arith.constant dense<0.000000e+00> : vector<24x192xf32>
    %53 = tpu.matmul %49, %35, %cst_41 {dimension_numbers = #tpu.dot_dimension_numbers<[1], [0], [0], [1], [0, 0, 1, 1], [], []>} : vector<24x192xbf16>, vector<192x192xbf16>, vector<24x192xf32> -> vector<24x192xf32>
    %54 = vector.broadcast %41 : vector<1x192xf32> to vector<24x192xf32>
    %55 = arith.addf %53, %54 : vector<24x192xf32>
    %cst_42 = arith.constant dense<0.000000e+00> : vector<24x192xf32>
    %56 = tpu.matmul %49, %37, %cst_42 {dimension_numbers = #tpu.dot_dimension_numbers<[1], [0], [0], [1], [0, 0, 1, 1], [], []>} : vector<24x192xbf16>, vector<192x192xbf16>, vector<24x192xf32> -> vector<24x192xf32>
    %57 = vector.broadcast %43 : vector<1x192xf32> to vector<24x192xf32>
    %58 = arith.addf %56, %57 : vector<24x192xf32>
    %59 = vector.extract_strided_slice %52 {offsets = [0, 0], sizes = [24, 48], strides = [1, 1]} : vector<24x192xf32> to vector<24x48xf32>
    %60 = arith.truncf %59 : vector<24x48xf32> to vector<24x48xbf16>
    %61 = vector.extract_strided_slice %55 {offsets = [0, 0], sizes = [24, 48], strides = [1, 1]} : vector<24x192xf32> to vector<24x48xf32>
    %62 = arith.truncf %61 : vector<24x48xf32> to vector<24x48xbf16>
    %63 = vector.extract_strided_slice %58 {offsets = [0, 0], sizes = [24, 48], strides = [1, 1]} : vector<24x192xf32> to vector<24x48xf32>
    %64 = arith.truncf %63 : vector<24x48xf32> to vector<24x48xbf16>
    %cst_43 = arith.constant dense<0.000000e+00> : vector<24x24xf32>
    %65 = tpu.matmul %60, %62, %cst_43 {dimension_numbers = #tpu.dot_dimension_numbers<[1], [1], [0], [0], [0, 0, 1, 0], [], []>} : vector<24x48xbf16>, vector<24x48xbf16>, vector<24x24xf32> -> vector<24x24xf32>
    %66 = arith.addf %65, %4 : vector<24x24xf32>
    %cst_44 = arith.constant dense<0xFF800000> : vector<24xf32>
    %67 = vector.multi_reduction <maximumf>, %66, %cst_44 [1] : vector<24x24xf32> to vector<24xf32>
    %68 = vector.shape_cast %67 : vector<24xf32> to vector<24x1xf32>
    %69 = vector.broadcast %68 : vector<24x1xf32> to vector<24x24xf32>
    %70 = arith.subf %66, %69 : vector<24x24xf32>
    %71 = math.exp %70 : vector<24x24xf32>
    %cst_45 = arith.constant dense<0.000000e+00> : vector<24xf32>
    %72 = vector.multi_reduction <add>, %71, %cst_45 [1] : vector<24x24xf32> to vector<24xf32>
    %73 = vector.shape_cast %72 : vector<24xf32> to vector<24x1xf32>
    %74 = tpu.reciprocal %73 {approx = true} : vector<24x1xf32> -> vector<24x1xf32>
    %75 = vector.broadcast %74 : vector<24x1xf32> to vector<24x24xf32>
    %76 = arith.mulf %71, %75 : vector<24x24xf32>
    %77 = arith.truncf %76 : vector<24x24xf32> to vector<24x24xbf16>
    %cst_46 = arith.constant dense<0.000000e+00> : vector<24x48xf32>
    %78 = tpu.matmul %77, %64, %cst_46 {dimension_numbers = #tpu.dot_dimension_numbers<[1], [0], [0], [1], [0, 0, 1, 1], [], []>} : vector<24x24xbf16>, vector<24x48xbf16>, vector<24x48xf32> -> vector<24x48xf32>
    %79 = vector.extract_strided_slice %52 {offsets = [0, 48], sizes = [24, 48], strides = [1, 1]} : vector<24x192xf32> to vector<24x48xf32>
    %80 = arith.truncf %79 : vector<24x48xf32> to vector<24x48xbf16>
    %81 = vector.extract_strided_slice %55 {offsets = [0, 48], sizes = [24, 48], strides = [1, 1]} : vector<24x192xf32> to vector<24x48xf32>
    %82 = arith.truncf %81 : vector<24x48xf32> to vector<24x48xbf16>
    %83 = vector.extract_strided_slice %58 {offsets = [0, 48], sizes = [24, 48], strides = [1, 1]} : vector<24x192xf32> to vector<24x48xf32>
    %84 = arith.truncf %83 : vector<24x48xf32> to vector<24x48xbf16>
    %cst_47 = arith.constant dense<0.000000e+00> : vector<24x24xf32>
    %85 = tpu.matmul %80, %82, %cst_47 {dimension_numbers = #tpu.dot_dimension_numbers<[1], [1], [0], [0], [0, 0, 1, 0], [], []>} : vector<24x48xbf16>, vector<24x48xbf16>, vector<24x24xf32> -> vector<24x24xf32>
    %86 = arith.addf %85, %4 : vector<24x24xf32>
    %cst_48 = arith.constant dense<0xFF800000> : vector<24xf32>
    %87 = vector.multi_reduction <maximumf>, %86, %cst_48 [1] : vector<24x24xf32> to vector<24xf32>
    %88 = vector.shape_cast %87 : vector<24xf32> to vector<24x1xf32>
    %89 = vector.broadcast %88 : vector<24x1xf32> to vector<24x24xf32>
    %90 = arith.subf %86, %89 : vector<24x24xf32>
    %91 = math.exp %90 : vector<24x24xf32>
    %cst_49 = arith.constant dense<0.000000e+00> : vector<24xf32>
    %92 = vector.multi_reduction <add>, %91, %cst_49 [1] : vector<24x24xf32> to vector<24xf32>
    %93 = vector.shape_cast %92 : vector<24xf32> to vector<24x1xf32>
    %94 = tpu.reciprocal %93 {approx = true} : vector<24x1xf32> -> vector<24x1xf32>
    %95 = vector.broadcast %94 : vector<24x1xf32> to vector<24x24xf32>
    %96 = arith.mulf %91, %95 : vector<24x24xf32>
    %97 = arith.truncf %96 : vector<24x24xf32> to vector<24x24xbf16>
    %cst_50 = arith.constant dense<0.000000e+00> : vector<24x48xf32>
    %98 = tpu.matmul %97, %84, %cst_50 {dimension_numbers = #tpu.dot_dimension_numbers<[1], [0], [0], [1], [0, 0, 1, 1], [], []>} : vector<24x24xbf16>, vector<24x48xbf16>, vector<24x48xf32> -> vector<24x48xf32>
    %99 = vector.extract_strided_slice %52 {offsets = [0, 96], sizes = [24, 48], strides = [1, 1]} : vector<24x192xf32> to vector<24x48xf32>
    %100 = arith.truncf %99 : vector<24x48xf32> to vector<24x48xbf16>
    %101 = vector.extract_strided_slice %55 {offsets = [0, 96], sizes = [24, 48], strides = [1, 1]} : vector<24x192xf32> to vector<24x48xf32>
    %102 = arith.truncf %101 : vector<24x48xf32> to vector<24x48xbf16>
    %103 = vector.extract_strided_slice %58 {offsets = [0, 96], sizes = [24, 48], strides = [1, 1]} : vector<24x192xf32> to vector<24x48xf32>
    %104 = arith.truncf %103 : vector<24x48xf32> to vector<24x48xbf16>
    %cst_51 = arith.constant dense<0.000000e+00> : vector<24x24xf32>
    %105 = tpu.matmul %100, %102, %cst_51 {dimension_numbers = #tpu.dot_dimension_numbers<[1], [1], [0], [0], [0, 0, 1, 0], [], []>} : vector<24x48xbf16>, vector<24x48xbf16>, vector<24x24xf32> -> vector<24x24xf32>
    %106 = arith.addf %105, %4 : vector<24x24xf32>
    %cst_52 = arith.constant dense<0xFF800000> : vector<24xf32>
    %107 = vector.multi_reduction <maximumf>, %106, %cst_52 [1] : vector<24x24xf32> to vector<24xf32>
    %108 = vector.shape_cast %107 : vector<24xf32> to vector<24x1xf32>
    %109 = vector.broadcast %108 : vector<24x1xf32> to vector<24x24xf32>
    %110 = arith.subf %106, %109 : vector<24x24xf32>
    %111 = math.exp %110 : vector<24x24xf32>
    %cst_53 = arith.constant dense<0.000000e+00> : vector<24xf32>
    %112 = vector.multi_reduction <add>, %111, %cst_53 [1] : vector<24x24xf32> to vector<24xf32>
    %113 = vector.shape_cast %112 : vector<24xf32> to vector<24x1xf32>
    %114 = tpu.reciprocal %113 {approx = true} : vector<24x1xf32> -> vector<24x1xf32>
    %115 = vector.broadcast %114 : vector<24x1xf32> to vector<24x24xf32>
    %116 = arith.mulf %111, %115 : vector<24x24xf32>
    %117 = arith.truncf %116 : vector<24x24xf32> to vector<24x24xbf16>
    %cst_54 = arith.constant dense<0.000000e+00> : vector<24x48xf32>
    %118 = tpu.matmul %117, %104, %cst_54 {dimension_numbers = #tpu.dot_dimension_numbers<[1], [0], [0], [1], [0, 0, 1, 1], [], []>} : vector<24x24xbf16>, vector<24x48xbf16>, vector<24x48xf32> -> vector<24x48xf32>
    %119 = vector.extract_strided_slice %52 {offsets = [0, 144], sizes = [24, 48], strides = [1, 1]} : vector<24x192xf32> to vector<24x48xf32>
    %120 = arith.truncf %119 : vector<24x48xf32> to vector<24x48xbf16>
    %121 = vector.extract_strided_slice %55 {offsets = [0, 144], sizes = [24, 48], strides = [1, 1]} : vector<24x192xf32> to vector<24x48xf32>
    %122 = arith.truncf %121 : vector<24x48xf32> to vector<24x48xbf16>
    %123 = vector.extract_strided_slice %58 {offsets = [0, 144], sizes = [24, 48], strides = [1, 1]} : vector<24x192xf32> to vector<24x48xf32>
    %124 = arith.truncf %123 : vector<24x48xf32> to vector<24x48xbf16>
    %cst_55 = arith.constant dense<0.000000e+00> : vector<24x24xf32>
    %125 = tpu.matmul %120, %122, %cst_55 {dimension_numbers = #tpu.dot_dimension_numbers<[1], [1], [0], [0], [0, 0, 1, 0], [], []>} : vector<24x48xbf16>, vector<24x48xbf16>, vector<24x24xf32> -> vector<24x24xf32>
    %126 = arith.addf %125, %4 : vector<24x24xf32>
    %cst_56 = arith.constant dense<0xFF800000> : vector<24xf32>
    %127 = vector.multi_reduction <maximumf>, %126, %cst_56 [1] : vector<24x24xf32> to vector<24xf32>
    %128 = vector.shape_cast %127 : vector<24xf32> to vector<24x1xf32>
    %129 = vector.broadcast %128 : vector<24x1xf32> to vector<24x24xf32>
    %130 = arith.subf %126, %129 : vector<24x24xf32>
    %131 = math.exp %130 : vector<24x24xf32>
    %cst_57 = arith.constant dense<0.000000e+00> : vector<24xf32>
    %132 = vector.multi_reduction <add>, %131, %cst_57 [1] : vector<24x24xf32> to vector<24xf32>
    %133 = vector.shape_cast %132 : vector<24xf32> to vector<24x1xf32>
    %134 = tpu.reciprocal %133 {approx = true} : vector<24x1xf32> -> vector<24x1xf32>
    %135 = vector.broadcast %134 : vector<24x1xf32> to vector<24x24xf32>
    %136 = arith.mulf %131, %135 : vector<24x24xf32>
    %137 = arith.truncf %136 : vector<24x24xf32> to vector<24x24xbf16>
    %cst_58 = arith.constant dense<0.000000e+00> : vector<24x48xf32>
    %138 = tpu.matmul %137, %124, %cst_58 {dimension_numbers = #tpu.dot_dimension_numbers<[1], [0], [0], [1], [0, 0, 1, 1], [], []>} : vector<24x24xbf16>, vector<24x48xbf16>, vector<24x48xf32> -> vector<24x48xf32>
    %139 = tpu.concatenate %78, %98, %118, %138 in 1 : vector<24x48xf32>, vector<24x48xf32>, vector<24x48xf32>, vector<24x48xf32> -> vector<24x192xf32>
    %140 = arith.truncf %139 : vector<24x192xf32> to vector<24x192xbf16>
    %cst_59 = arith.constant dense<0.000000e+00> : vector<24x192xf32>
    %141 = tpu.matmul %140, %45, %cst_59 {dimension_numbers = #tpu.dot_dimension_numbers<[1], [0], [0], [1], [0, 0, 1, 1], [], []>} : vector<24x192xbf16>, vector<192x192xbf16>, vector<24x192xf32> -> vector<24x192xf32>
    %142 = vector.broadcast %47 : vector<1x192xf32> to vector<24x192xf32>
    %143 = arith.addf %141, %142 : vector<24x192xf32>
    %144 = arith.addf %3, %143 : vector<24x192xf32>
    %c0_60 = arith.constant 0 : index
    %c0_61 = arith.constant 0 : index
    %c0_62 = arith.constant 0 : index
    %145 = vector.load %arg24[%c0_60, %c0_61, %c0_62] : memref<1x1x192xf32, #tpu.memory_space<vmem>>, vector<1x1x192xf32>
    %146 = vector.shape_cast %145 : vector<1x1x192xf32> to vector<1x192xf32>
    %c0_63 = arith.constant 0 : index
    %c0_64 = arith.constant 0 : index
    %c0_65 = arith.constant 0 : index
    %147 = vector.load %arg25[%c0_63, %c0_64, %c0_65] : memref<1x1x192xf32, #tpu.memory_space<vmem>>, vector<1x1x192xf32>
    %148 = vector.shape_cast %147 : vector<1x1x192xf32> to vector<1x192xf32>
    %cst_66 = arith.constant dense<0.000000e+00> : vector<24xf32>
    %149 = vector.multi_reduction <add>, %144, %cst_66 [1] : vector<24x192xf32> to vector<24xf32>
    %150 = vector.shape_cast %149 : vector<24xf32> to vector<24x1xf32>
    %cst_67 = arith.constant 1.920000e+02 : f32
    %151 = vector.broadcast %cst_67 : f32 to vector<24x1xf32>
    %152 = arith.divf %150, %151 : vector<24x1xf32>
    %153 = vector.broadcast %152 : vector<24x1xf32> to vector<24x192xf32>
    %154 = arith.subf %144, %153 : vector<24x192xf32>
    %155 = arith.mulf %154, %154 : vector<24x192xf32>
    %cst_68 = arith.constant dense<0.000000e+00> : vector<24xf32>
    %156 = vector.multi_reduction <add>, %155, %cst_68 [1] : vector<24x192xf32> to vector<24xf32>
    %157 = vector.shape_cast %156 : vector<24xf32> to vector<24x1xf32>
    %cst_69 = arith.constant 1.920000e+02 : f32
    %158 = vector.broadcast %cst_69 : f32 to vector<24x1xf32>
    %159 = arith.divf %157, %158 : vector<24x1xf32>
    %160 = vector.broadcast %152 : vector<24x1xf32> to vector<24x192xf32>
    %161 = arith.subf %144, %160 : vector<24x192xf32>
    %cst_70 = arith.constant 9.99999974E-6 : f32
    %162 = vector.broadcast %cst_70 : f32 to vector<24x1xf32>
    %163 = arith.addf %159, %162 : vector<24x1xf32>
    %164 = math.rsqrt %163 : vector<24x1xf32>
    %165 = vector.broadcast %164 : vector<24x1xf32> to vector<24x192xf32>
    %166 = arith.mulf %161, %165 : vector<24x192xf32>
    %167 = vector.broadcast %146 : vector<1x192xf32> to vector<24x192xf32>
    %168 = arith.mulf %166, %167 : vector<24x192xf32>
    %169 = vector.broadcast %148 : vector<1x192xf32> to vector<24x192xf32>
    %170 = arith.addf %168, %169 : vector<24x192xf32>
    %c0_71 = arith.constant 0 : index
    %c0_72 = arith.constant 0 : index
    %171 = vector.load %arg2[%c0_71, %c0_72] : memref<160x192xbf16, #tpu.memory_space<vmem>>, vector<160x192xbf16>
    %c0_73 = arith.constant 0 : index
    %c0_74 = arith.constant 0 : index
    %c0_75 = arith.constant 0 : index
    %172 = vector.load %arg14[%c0_73, %c0_74, %c0_75] : memref<1x192x192xbf16, #tpu.memory_space<vmem>>, vector<1x192x192xbf16>
    %173 = vector.shape_cast %172 : vector<1x192x192xbf16> to vector<192x192xbf16>
    %c0_76 = arith.constant 0 : index
    %c0_77 = arith.constant 0 : index
    %c0_78 = arith.constant 0 : index
    %174 = vector.load %arg15[%c0_76, %c0_77, %c0_78] : memref<1x192x192xbf16, #tpu.memory_space<vmem>>, vector<1x192x192xbf16>
    %175 = vector.shape_cast %174 : vector<1x192x192xbf16> to vector<192x192xbf16>
    %c0_79 = arith.constant 0 : index
    %c0_80 = arith.constant 0 : index
    %c0_81 = arith.constant 0 : index
    %176 = vector.load %arg16[%c0_79, %c0_80, %c0_81] : memref<1x192x192xbf16, #tpu.memory_space<vmem>>, vector<1x192x192xbf16>
    %177 = vector.shape_cast %176 : vector<1x192x192xbf16> to vector<192x192xbf16>
    %c0_82 = arith.constant 0 : index
    %c0_83 = arith.constant 0 : index
    %c0_84 = arith.constant 0 : index
    %178 = vector.load %arg17[%c0_82, %c0_83, %c0_84] : memref<1x1x192xf32, #tpu.memory_space<vmem>>, vector<1x1x192xf32>
    %179 = vector.shape_cast %178 : vector<1x1x192xf32> to vector<1x192xf32>
    %c0_85 = arith.constant 0 : index
    %c0_86 = arith.constant 0 : index
    %c0_87 = arith.constant 0 : index
    %180 = vector.load %arg18[%c0_85, %c0_86, %c0_87] : memref<1x1x192xf32, #tpu.memory_space<vmem>>, vector<1x1x192xf32>
    %181 = vector.shape_cast %180 : vector<1x1x192xf32> to vector<1x192xf32>
    %c0_88 = arith.constant 0 : index
    %c0_89 = arith.constant 0 : index
    %c0_90 = arith.constant 0 : index
    %182 = vector.load %arg19[%c0_88, %c0_89, %c0_90] : memref<1x1x192xf32, #tpu.memory_space<vmem>>, vector<1x1x192xf32>
    %183 = vector.shape_cast %182 : vector<1x1x192xf32> to vector<1x192xf32>
    %c0_91 = arith.constant 0 : index
    %c0_92 = arith.constant 0 : index
    %c0_93 = arith.constant 0 : index
    %184 = vector.load %arg20[%c0_91, %c0_92, %c0_93] : memref<1x192x192xbf16, #tpu.memory_space<vmem>>, vector<1x192x192xbf16>
    %185 = vector.shape_cast %184 : vector<1x192x192xbf16> to vector<192x192xbf16>
    %c0_94 = arith.constant 0 : index
    %c0_95 = arith.constant 0 : index
    %c0_96 = arith.constant 0 : index
    %186 = vector.load %arg21[%c0_94, %c0_95, %c0_96] : memref<1x1x192xf32, #tpu.memory_space<vmem>>, vector<1x1x192xf32>
    %187 = vector.shape_cast %186 : vector<1x1x192xf32> to vector<1x192xf32>
    %188 = arith.truncf %170 : vector<24x192xf32> to vector<24x192xbf16>
    %cst_97 = arith.constant dense<0.000000e+00> : vector<24x192xf32>
    %189 = tpu.matmul %188, %173, %cst_97 {dimension_numbers = #tpu.dot_dimension_numbers<[1], [0], [0], [1], [0, 0, 1, 1], [], []>} : vector<24x192xbf16>, vector<192x192xbf16>, vector<24x192xf32> -> vector<24x192xf32>
    %190 = vector.broadcast %179 : vector<1x192xf32> to vector<24x192xf32>
    %191 = arith.addf %189, %190 : vector<24x192xf32>
    %cst_98 = arith.constant dense<0.000000e+00> : vector<160x192xf32>
    %192 = tpu.matmul %171, %175, %cst_98 {dimension_numbers = #tpu.dot_dimension_numbers<[1], [0], [0], [1], [0, 0, 1, 1], [], []>} : vector<160x192xbf16>, vector<192x192xbf16>, vector<160x192xf32> -> vector<160x192xf32>
    %193 = vector.broadcast %181 : vector<1x192xf32> to vector<160x192xf32>
    %194 = arith.addf %192, %193 : vector<160x192xf32>
    %cst_99 = arith.constant dense<0.000000e+00> : vector<160x192xf32>
    %195 = tpu.matmul %171, %177, %cst_99 {dimension_numbers = #tpu.dot_dimension_numbers<[1], [0], [0], [1], [0, 0, 1, 1], [], []>} : vector<160x192xbf16>, vector<192x192xbf16>, vector<160x192xf32> -> vector<160x192xf32>
    %196 = vector.broadcast %183 : vector<1x192xf32> to vector<160x192xf32>
    %197 = arith.addf %195, %196 : vector<160x192xf32>
    %198 = vector.extract_strided_slice %191 {offsets = [0, 0], sizes = [24, 48], strides = [1, 1]} : vector<24x192xf32> to vector<24x48xf32>
    %199 = arith.truncf %198 : vector<24x48xf32> to vector<24x48xbf16>
    %200 = vector.extract_strided_slice %194 {offsets = [0, 0], sizes = [160, 48], strides = [1, 1]} : vector<160x192xf32> to vector<160x48xf32>
    %201 = arith.truncf %200 : vector<160x48xf32> to vector<160x48xbf16>
    %202 = vector.extract_strided_slice %197 {offsets = [0, 0], sizes = [160, 48], strides = [1, 1]} : vector<160x192xf32> to vector<160x48xf32>
    %203 = arith.truncf %202 : vector<160x48xf32> to vector<160x48xbf16>
    %cst_100 = arith.constant dense<0.000000e+00> : vector<24x160xf32>
    %204 = tpu.matmul %199, %201, %cst_100 {dimension_numbers = #tpu.dot_dimension_numbers<[1], [1], [0], [0], [0, 0, 1, 0], [], []>} : vector<24x48xbf16>, vector<160x48xbf16>, vector<24x160xf32> -> vector<24x160xf32>
    %205 = arith.addf %204, %5 : vector<24x160xf32>
    %cst_101 = arith.constant dense<0xFF800000> : vector<24xf32>
    %206 = vector.multi_reduction <maximumf>, %205, %cst_101 [1] : vector<24x160xf32> to vector<24xf32>
    %207 = vector.shape_cast %206 : vector<24xf32> to vector<24x1xf32>
    %208 = vector.broadcast %207 : vector<24x1xf32> to vector<24x160xf32>
    %209 = arith.subf %205, %208 : vector<24x160xf32>
    %210 = math.exp %209 : vector<24x160xf32>
    %cst_102 = arith.constant dense<0.000000e+00> : vector<24xf32>
    %211 = vector.multi_reduction <add>, %210, %cst_102 [1] : vector<24x160xf32> to vector<24xf32>
    %212 = vector.shape_cast %211 : vector<24xf32> to vector<24x1xf32>
    %213 = tpu.reciprocal %212 {approx = true} : vector<24x1xf32> -> vector<24x1xf32>
    %214 = vector.broadcast %213 : vector<24x1xf32> to vector<24x160xf32>
    %215 = arith.mulf %210, %214 : vector<24x160xf32>
    %216 = arith.truncf %215 : vector<24x160xf32> to vector<24x160xbf16>
    %cst_103 = arith.constant dense<0.000000e+00> : vector<24x48xf32>
    %217 = tpu.matmul %216, %203, %cst_103 {dimension_numbers = #tpu.dot_dimension_numbers<[1], [0], [0], [1], [0, 0, 1, 1], [], []>} : vector<24x160xbf16>, vector<160x48xbf16>, vector<24x48xf32> -> vector<24x48xf32>
    %218 = vector.extract_strided_slice %191 {offsets = [0, 48], sizes = [24, 48], strides = [1, 1]} : vector<24x192xf32> to vector<24x48xf32>
    %219 = arith.truncf %218 : vector<24x48xf32> to vector<24x48xbf16>
    %220 = vector.extract_strided_slice %194 {offsets = [0, 48], sizes = [160, 48], strides = [1, 1]} : vector<160x192xf32> to vector<160x48xf32>
    %221 = arith.truncf %220 : vector<160x48xf32> to vector<160x48xbf16>
    %222 = vector.extract_strided_slice %197 {offsets = [0, 48], sizes = [160, 48], strides = [1, 1]} : vector<160x192xf32> to vector<160x48xf32>
    %223 = arith.truncf %222 : vector<160x48xf32> to vector<160x48xbf16>
    %cst_104 = arith.constant dense<0.000000e+00> : vector<24x160xf32>
    %224 = tpu.matmul %219, %221, %cst_104 {dimension_numbers = #tpu.dot_dimension_numbers<[1], [1], [0], [0], [0, 0, 1, 0], [], []>} : vector<24x48xbf16>, vector<160x48xbf16>, vector<24x160xf32> -> vector<24x160xf32>
    %225 = arith.addf %224, %5 : vector<24x160xf32>
    %cst_105 = arith.constant dense<0xFF800000> : vector<24xf32>
    %226 = vector.multi_reduction <maximumf>, %225, %cst_105 [1] : vector<24x160xf32> to vector<24xf32>
    %227 = vector.shape_cast %226 : vector<24xf32> to vector<24x1xf32>
    %228 = vector.broadcast %227 : vector<24x1xf32> to vector<24x160xf32>
    %229 = arith.subf %225, %228 : vector<24x160xf32>
    %230 = math.exp %229 : vector<24x160xf32>
    %cst_106 = arith.constant dense<0.000000e+00> : vector<24xf32>
    %231 = vector.multi_reduction <add>, %230, %cst_106 [1] : vector<24x160xf32> to vector<24xf32>
    %232 = vector.shape_cast %231 : vector<24xf32> to vector<24x1xf32>
    %233 = tpu.reciprocal %232 {approx = true} : vector<24x1xf32> -> vector<24x1xf32>
    %234 = vector.broadcast %233 : vector<24x1xf32> to vector<24x160xf32>
    %235 = arith.mulf %230, %234 : vector<24x160xf32>
    %236 = arith.truncf %235 : vector<24x160xf32> to vector<24x160xbf16>
    %cst_107 = arith.constant dense<0.000000e+00> : vector<24x48xf32>
    %237 = tpu.matmul %236, %223, %cst_107 {dimension_numbers = #tpu.dot_dimension_numbers<[1], [0], [0], [1], [0, 0, 1, 1], [], []>} : vector<24x160xbf16>, vector<160x48xbf16>, vector<24x48xf32> -> vector<24x48xf32>
    %238 = vector.extract_strided_slice %191 {offsets = [0, 96], sizes = [24, 48], strides = [1, 1]} : vector<24x192xf32> to vector<24x48xf32>
    %239 = arith.truncf %238 : vector<24x48xf32> to vector<24x48xbf16>
    %240 = vector.extract_strided_slice %194 {offsets = [0, 96], sizes = [160, 48], strides = [1, 1]} : vector<160x192xf32> to vector<160x48xf32>
    %241 = arith.truncf %240 : vector<160x48xf32> to vector<160x48xbf16>
    %242 = vector.extract_strided_slice %197 {offsets = [0, 96], sizes = [160, 48], strides = [1, 1]} : vector<160x192xf32> to vector<160x48xf32>
    %243 = arith.truncf %242 : vector<160x48xf32> to vector<160x48xbf16>
    %cst_108 = arith.constant dense<0.000000e+00> : vector<24x160xf32>
    %244 = tpu.matmul %239, %241, %cst_108 {dimension_numbers = #tpu.dot_dimension_numbers<[1], [1], [0], [0], [0, 0, 1, 0], [], []>} : vector<24x48xbf16>, vector<160x48xbf16>, vector<24x160xf32> -> vector<24x160xf32>
    %245 = arith.addf %244, %5 : vector<24x160xf32>
    %cst_109 = arith.constant dense<0xFF800000> : vector<24xf32>
    %246 = vector.multi_reduction <maximumf>, %245, %cst_109 [1] : vector<24x160xf32> to vector<24xf32>
    %247 = vector.shape_cast %246 : vector<24xf32> to vector<24x1xf32>
    %248 = vector.broadcast %247 : vector<24x1xf32> to vector<24x160xf32>
    %249 = arith.subf %245, %248 : vector<24x160xf32>
    %250 = math.exp %249 : vector<24x160xf32>
    %cst_110 = arith.constant dense<0.000000e+00> : vector<24xf32>
    %251 = vector.multi_reduction <add>, %250, %cst_110 [1] : vector<24x160xf32> to vector<24xf32>
    %252 = vector.shape_cast %251 : vector<24xf32> to vector<24x1xf32>
    %253 = tpu.reciprocal %252 {approx = true} : vector<24x1xf32> -> vector<24x1xf32>
    %254 = vector.broadcast %253 : vector<24x1xf32> to vector<24x160xf32>
    %255 = arith.mulf %250, %254 : vector<24x160xf32>
    %256 = arith.truncf %255 : vector<24x160xf32> to vector<24x160xbf16>
    %cst_111 = arith.constant dense<0.000000e+00> : vector<24x48xf32>
    %257 = tpu.matmul %256, %243, %cst_111 {dimension_numbers = #tpu.dot_dimension_numbers<[1], [0], [0], [1], [0, 0, 1, 1], [], []>} : vector<24x160xbf16>, vector<160x48xbf16>, vector<24x48xf32> -> vector<24x48xf32>
    %258 = vector.extract_strided_slice %191 {offsets = [0, 144], sizes = [24, 48], strides = [1, 1]} : vector<24x192xf32> to vector<24x48xf32>
    %259 = arith.truncf %258 : vector<24x48xf32> to vector<24x48xbf16>
    %260 = vector.extract_strided_slice %194 {offsets = [0, 144], sizes = [160, 48], strides = [1, 1]} : vector<160x192xf32> to vector<160x48xf32>
    %261 = arith.truncf %260 : vector<160x48xf32> to vector<160x48xbf16>
    %262 = vector.extract_strided_slice %197 {offsets = [0, 144], sizes = [160, 48], strides = [1, 1]} : vector<160x192xf32> to vector<160x48xf32>
    %263 = arith.truncf %262 : vector<160x48xf32> to vector<160x48xbf16>
    %cst_112 = arith.constant dense<0.000000e+00> : vector<24x160xf32>
    %264 = tpu.matmul %259, %261, %cst_112 {dimension_numbers = #tpu.dot_dimension_numbers<[1], [1], [0], [0], [0, 0, 1, 0], [], []>} : vector<24x48xbf16>, vector<160x48xbf16>, vector<24x160xf32> -> vector<24x160xf32>
    %265 = arith.addf %264, %5 : vector<24x160xf32>
    %cst_113 = arith.constant dense<0xFF800000> : vector<24xf32>
    %266 = vector.multi_reduction <maximumf>, %265, %cst_113 [1] : vector<24x160xf32> to vector<24xf32>
    %267 = vector.shape_cast %266 : vector<24xf32> to vector<24x1xf32>
    %268 = vector.broadcast %267 : vector<24x1xf32> to vector<24x160xf32>
    %269 = arith.subf %265, %268 : vector<24x160xf32>
    %270 = math.exp %269 : vector<24x160xf32>
    %cst_114 = arith.constant dense<0.000000e+00> : vector<24xf32>
    %271 = vector.multi_reduction <add>, %270, %cst_114 [1] : vector<24x160xf32> to vector<24xf32>
    %272 = vector.shape_cast %271 : vector<24xf32> to vector<24x1xf32>
    %273 = tpu.reciprocal %272 {approx = true} : vector<24x1xf32> -> vector<24x1xf32>
    %274 = vector.broadcast %273 : vector<24x1xf32> to vector<24x160xf32>
    %275 = arith.mulf %270, %274 : vector<24x160xf32>
    %276 = arith.truncf %275 : vector<24x160xf32> to vector<24x160xbf16>
    %cst_115 = arith.constant dense<0.000000e+00> : vector<24x48xf32>
    %277 = tpu.matmul %276, %263, %cst_115 {dimension_numbers = #tpu.dot_dimension_numbers<[1], [0], [0], [1], [0, 0, 1, 1], [], []>} : vector<24x160xbf16>, vector<160x48xbf16>, vector<24x48xf32> -> vector<24x48xf32>
    %278 = tpu.concatenate %217, %237, %257, %277 in 1 : vector<24x48xf32>, vector<24x48xf32>, vector<24x48xf32>, vector<24x48xf32> -> vector<24x192xf32>
    %279 = arith.truncf %278 : vector<24x192xf32> to vector<24x192xbf16>
    %cst_116 = arith.constant dense<0.000000e+00> : vector<24x192xf32>
    %280 = tpu.matmul %279, %185, %cst_116 {dimension_numbers = #tpu.dot_dimension_numbers<[1], [0], [0], [1], [0, 0, 1, 1], [], []>} : vector<24x192xbf16>, vector<192x192xbf16>, vector<24x192xf32> -> vector<24x192xf32>
    %281 = vector.broadcast %187 : vector<1x192xf32> to vector<24x192xf32>
    %282 = arith.addf %280, %281 : vector<24x192xf32>
    %283 = arith.addf %144, %282 : vector<24x192xf32>
    %c0_117 = arith.constant 0 : index
    %c0_118 = arith.constant 0 : index
    %c0_119 = arith.constant 0 : index
    %284 = vector.load %arg26[%c0_117, %c0_118, %c0_119] : memref<1x1x192xf32, #tpu.memory_space<vmem>>, vector<1x1x192xf32>
    %285 = vector.shape_cast %284 : vector<1x1x192xf32> to vector<1x192xf32>
    %c0_120 = arith.constant 0 : index
    %c0_121 = arith.constant 0 : index
    %c0_122 = arith.constant 0 : index
    %286 = vector.load %arg27[%c0_120, %c0_121, %c0_122] : memref<1x1x192xf32, #tpu.memory_space<vmem>>, vector<1x1x192xf32>
    %287 = vector.shape_cast %286 : vector<1x1x192xf32> to vector<1x192xf32>
    %cst_123 = arith.constant dense<0.000000e+00> : vector<24xf32>
    %288 = vector.multi_reduction <add>, %283, %cst_123 [1] : vector<24x192xf32> to vector<24xf32>
    %289 = vector.shape_cast %288 : vector<24xf32> to vector<24x1xf32>
    %cst_124 = arith.constant 1.920000e+02 : f32
    %290 = vector.broadcast %cst_124 : f32 to vector<24x1xf32>
    %291 = arith.divf %289, %290 : vector<24x1xf32>
    %292 = vector.broadcast %291 : vector<24x1xf32> to vector<24x192xf32>
    %293 = arith.subf %283, %292 : vector<24x192xf32>
    %294 = arith.mulf %293, %293 : vector<24x192xf32>
    %cst_125 = arith.constant dense<0.000000e+00> : vector<24xf32>
    %295 = vector.multi_reduction <add>, %294, %cst_125 [1] : vector<24x192xf32> to vector<24xf32>
    %296 = vector.shape_cast %295 : vector<24xf32> to vector<24x1xf32>
    %cst_126 = arith.constant 1.920000e+02 : f32
    %297 = vector.broadcast %cst_126 : f32 to vector<24x1xf32>
    %298 = arith.divf %296, %297 : vector<24x1xf32>
    %299 = vector.broadcast %291 : vector<24x1xf32> to vector<24x192xf32>
    %300 = arith.subf %283, %299 : vector<24x192xf32>
    %cst_127 = arith.constant 9.99999974E-6 : f32
    %301 = vector.broadcast %cst_127 : f32 to vector<24x1xf32>
    %302 = arith.addf %298, %301 : vector<24x1xf32>
    %303 = math.rsqrt %302 : vector<24x1xf32>
    %304 = vector.broadcast %303 : vector<24x1xf32> to vector<24x192xf32>
    %305 = arith.mulf %300, %304 : vector<24x192xf32>
    %306 = vector.broadcast %285 : vector<1x192xf32> to vector<24x192xf32>
    %307 = arith.mulf %305, %306 : vector<24x192xf32>
    %308 = vector.broadcast %287 : vector<1x192xf32> to vector<24x192xf32>
    %309 = arith.addf %307, %308 : vector<24x192xf32>
    %310 = arith.truncf %309 : vector<24x192xf32> to vector<24x192xbf16>
    %c0_128 = arith.constant 0 : index
    %c0_129 = arith.constant 0 : index
    %c0_130 = arith.constant 0 : index
    %311 = vector.load %arg28[%c0_128, %c0_129, %c0_130] : memref<1x192x256xbf16, #tpu.memory_space<vmem>>, vector<1x192x256xbf16>
    %312 = vector.shape_cast %311 : vector<1x192x256xbf16> to vector<192x256xbf16>
    %cst_131 = arith.constant dense<0.000000e+00> : vector<24x256xf32>
    %313 = tpu.matmul %310, %312, %cst_131 {dimension_numbers = #tpu.dot_dimension_numbers<[1], [0], [0], [1], [0, 0, 1, 1], [], []>} : vector<24x192xbf16>, vector<192x256xbf16>, vector<24x256xf32> -> vector<24x256xf32>
    %c0_132 = arith.constant 0 : index
    %c0_133 = arith.constant 0 : index
    %c0_134 = arith.constant 0 : index
    %314 = vector.load %arg29[%c0_132, %c0_133, %c0_134] : memref<1x1x256xf32, #tpu.memory_space<vmem>>, vector<1x1x256xf32>
    %315 = vector.shape_cast %314 : vector<1x1x256xf32> to vector<1x256xf32>
    %316 = vector.broadcast %315 : vector<1x256xf32> to vector<24x256xf32>
    %317 = arith.addf %313, %316 : vector<24x256xf32>
    %cst_135 = arith.constant 0.000000e+00 : f32
    %318 = vector.broadcast %cst_135 : f32 to vector<24x256xf32>
    %319 = arith.maximumf %317, %318 : vector<24x256xf32>
    %320 = arith.truncf %319 : vector<24x256xf32> to vector<24x256xbf16>
    %c0_136 = arith.constant 0 : index
    %c0_137 = arith.constant 0 : index
    %c0_138 = arith.constant 0 : index
    %321 = vector.load %arg30[%c0_136, %c0_137, %c0_138] : memref<1x256x192xbf16, #tpu.memory_space<vmem>>, vector<1x256x192xbf16>
    %322 = vector.shape_cast %321 : vector<1x256x192xbf16> to vector<256x192xbf16>
    %cst_139 = arith.constant dense<0.000000e+00> : vector<24x192xf32>
    %323 = tpu.matmul %320, %322, %cst_139 {dimension_numbers = #tpu.dot_dimension_numbers<[1], [0], [0], [1], [0, 0, 1, 1], [], []>} : vector<24x256xbf16>, vector<256x192xbf16>, vector<24x192xf32> -> vector<24x192xf32>
    %324 = arith.addf %283, %323 : vector<24x192xf32>
    %c0_140 = arith.constant 0 : index
    %c0_141 = arith.constant 0 : index
    %c0_142 = arith.constant 0 : index
    %325 = vector.load %arg31[%c0_140, %c0_141, %c0_142] : memref<1x1x192xf32, #tpu.memory_space<vmem>>, vector<1x1x192xf32>
    %326 = vector.shape_cast %325 : vector<1x1x192xf32> to vector<1x192xf32>
    %327 = vector.broadcast %326 : vector<1x192xf32> to vector<24x192xf32>
    %328 = arith.addf %324, %327 : vector<24x192xf32>
    %c0_143 = arith.constant 0 : index
    %c0_144 = arith.constant 0 : index
    %329 = vector.load %arg33[%c0_143, %c0_144] : memref<24x192xf32, #tpu.memory_space<vmem>>, vector<24x192xf32>
    tpu.vector_store %arg33[%c0_143, %c0_144], %328 {strides = array<i32>} : memref<24x192xf32, #tpu.memory_space<vmem>>, vector<24x192xf32>,
    %c3_i32 = arith.constant 3 : i32
    %330 = arith.cmpi eq, %arg1, %c3_i32 : i32
    %331 = arith.extui %330 : i1 to i32
    %c0_i32_145 = arith.constant 0 : i32
    %332 = arith.cmpi ne, %331, %c0_i32_145 : i32
    scf.if %332 {
      %c0_146 = arith.constant 0 : index
      %c0_147 = arith.constant 0 : index
      %333 = vector.load %arg32[%c0_146, %c0_147] : memref<24x192xf32, #tpu.memory_space<vmem>>, vector<24x192xf32>
      tpu.vector_store %arg32[%c0_146, %c0_147], %328 {strides = array<i32>} : memref<24x192xf32, #tpu.memory_space<vmem>>, vector<24x192xf32>,
    } else {
    }
    return
  }
  func.func @transform_0(%arg0: i32, %arg1: i32) -> (i32, i32) {
    %c0_i32 = arith.constant 0 : i32
    %c0_i32_0 = arith.constant 0 : i32
    return %arg0, %c0_i32 : i32, i32
  }
  func.func @transform_1(%arg0: i32, %arg1: i32) -> (i32, i32) {
    %c0_i32 = arith.constant 0 : i32
    %c0_i32_0 = arith.constant 0 : i32
    %c0_i32_1 = arith.constant 0 : i32
    return %c0_i32, %c0_i32_0 : i32, i32
  }
  func.func @transform_2(%arg0: i32, %arg1: i32) -> (i32, i32) {
    %c0_i32 = arith.constant 0 : i32
    %c0_i32_0 = arith.constant 0 : i32
    %c0_i32_1 = arith.constant 0 : i32
    return %c0_i32, %c0_i32_0 : i32, i32
  }
  func.func @transform_3(%arg0: i32, %arg1: i32) -> (i32, i32) {
    %c0_i32 = arith.constant 0 : i32
    %c0_i32_0 = arith.constant 0 : i32
    %c0_i32_1 = arith.constant 0 : i32
    return %c0_i32, %c0_i32_0 : i32, i32
  }
  func.func @transform_4(%arg0: i32, %arg1: i32) -> (i32, i32, i32) {
    %c0_i32 = arith.constant 0 : i32
    %c0_i32_0 = arith.constant 0 : i32
    %c0_i32_1 = arith.constant 0 : i32
    return %arg1, %c0_i32, %c0_i32_0 : i32, i32, i32
  }
  func.func @transform_5(%arg0: i32, %arg1: i32) -> (i32, i32, i32) {
    %c0_i32 = arith.constant 0 : i32
    %c0_i32_0 = arith.constant 0 : i32
    %c0_i32_1 = arith.constant 0 : i32
    return %arg1, %c0_i32, %c0_i32_0 : i32, i32, i32
  }
  func.func @transform_6(%arg0: i32, %arg1: i32) -> (i32, i32, i32) {
    %c0_i32 = arith.constant 0 : i32
    %c0_i32_0 = arith.constant 0 : i32
    %c0_i32_1 = arith.constant 0 : i32
    return %arg1, %c0_i32, %c0_i32_0 : i32, i32, i32
  }
  func.func @transform_7(%arg0: i32, %arg1: i32) -> (i32, i32, i32) {
    %c0_i32 = arith.constant 0 : i32
    %c0_i32_0 = arith.constant 0 : i32
    %c0_i32_1 = arith.constant 0 : i32
    return %arg1, %c0_i32, %c0_i32_0 : i32, i32, i32
  }
  func.func @transform_8(%arg0: i32, %arg1: i32) -> (i32, i32, i32) {
    %c0_i32 = arith.constant 0 : i32
    %c0_i32_0 = arith.constant 0 : i32
    %c0_i32_1 = arith.constant 0 : i32
    return %arg1, %c0_i32, %c0_i32_0 : i32, i32, i32
  }
  func.func @transform_9(%arg0: i32, %arg1: i32) -> (i32, i32, i32) {
    %c0_i32 = arith.constant 0 : i32
    %c0_i32_0 = arith.constant 0 : i32
    %c0_i32_1 = arith.constant 0 : i32
    return %arg1, %c0_i32, %c0_i32_0 : i32, i32, i32
  }
  func.func @transform_10(%arg0: i32, %arg1: i32) -> (i32, i32, i32) {
    %c0_i32 = arith.constant 0 : i32
    %c0_i32_0 = arith.constant 0 : i32
    %c0_i32_1 = arith.constant 0 : i32
    return %arg1, %c0_i32, %c0_i32_0 : i32, i32, i32
  }
  func.func @transform_11(%arg0: i32, %arg1: i32) -> (i32, i32, i32) {
    %c0_i32 = arith.constant 0 : i32
    %c0_i32_0 = arith.constant 0 : i32
    %c0_i32_1 = arith.constant 0 : i32
    return %arg1, %c0_i32, %c0_i32_0 : i32, i32, i32
  }
  func.func @transform_12(%arg0: i32, %arg1: i32) -> (i32, i32, i32) {
    %c0_i32 = arith.constant 0 : i32
    %c0_i32_0 = arith.constant 0 : i32
    %c0_i32_1 = arith.constant 0 : i32
    return %arg1, %c0_i32, %c0_i32_0 : i32, i32, i32
  }
  func.func @transform_13(%arg0: i32, %arg1: i32) -> (i32, i32, i32) {
    %c0_i32 = arith.constant 0 : i32
    %c0_i32_0 = arith.constant 0 : i32
    %c0_i32_1 = arith.constant 0 : i32
    return %arg1, %c0_i32, %c0_i32_0 : i32, i32, i32
  }
  func.func @transform_14(%arg0: i32, %arg1: i32) -> (i32, i32, i32) {
    %c0_i32 = arith.constant 0 : i32
    %c0_i32_0 = arith.constant 0 : i32
    %c0_i32_1 = arith.constant 0 : i32
    return %arg1, %c0_i32, %c0_i32_0 : i32, i32, i32
  }
  func.func @transform_15(%arg0: i32, %arg1: i32) -> (i32, i32, i32) {
    %c0_i32 = arith.constant 0 : i32
    %c0_i32_0 = arith.constant 0 : i32
    %c0_i32_1 = arith.constant 0 : i32
    return %arg1, %c0_i32, %c0_i32_0 : i32, i32, i32
  }
  func.func @transform_16(%arg0: i32, %arg1: i32) -> (i32, i32, i32) {
    %c0_i32 = arith.constant 0 : i32
    %c0_i32_0 = arith.constant 0 : i32
    %c0_i32_1 = arith.constant 0 : i32
    return %arg1, %c0_i32, %c0_i32_0 : i32, i32, i32
  }
  func.func @transform_17(%arg0: i32, %arg1: i32) -> (i32, i32, i32) {
    %c0_i32 = arith.constant 0 : i32
    %c0_i32_0 = arith.constant 0 : i32
    %c0_i32_1 = arith.constant 0 : i32
    return %arg1, %c0_i32, %c0_i32_0 : i32, i32, i32
  }
  func.func @transform_18(%arg0: i32, %arg1: i32) -> (i32, i32, i32) {
    %c0_i32 = arith.constant 0 : i32
    %c0_i32_0 = arith.constant 0 : i32
    %c0_i32_1 = arith.constant 0 : i32
    return %arg1, %c0_i32, %c0_i32_0 : i32, i32, i32
  }
  func.func @transform_19(%arg0: i32, %arg1: i32) -> (i32, i32, i32) {
    %c0_i32 = arith.constant 0 : i32
    %c0_i32_0 = arith.constant 0 : i32
    %c0_i32_1 = arith.constant 0 : i32
    return %arg1, %c0_i32, %c0_i32_0 : i32, i32, i32
  }
  func.func @transform_20(%arg0: i32, %arg1: i32) -> (i32, i32, i32) {
    %c0_i32 = arith.constant 0 : i32
    %c0_i32_0 = arith.constant 0 : i32
    %c0_i32_1 = arith.constant 0 : i32
    return %arg1, %c0_i32, %c0_i32_0 : i32, i32, i32
  }
  func.func @transform_21(%arg0: i32, %arg1: i32) -> (i32, i32, i32) {
    %c0_i32 = arith.constant 0 : i32
    %c0_i32_0 = arith.constant 0 : i32
    %c0_i32_1 = arith.constant 0 : i32
    return %arg1, %c0_i32, %c0_i32_0 : i32, i32, i32
  }
  func.func @transform_22(%arg0: i32, %arg1: i32) -> (i32, i32, i32) {
    %c0_i32 = arith.constant 0 : i32
    %c0_i32_0 = arith.constant 0 : i32
    %c0_i32_1 = arith.constant 0 : i32
    return %arg1, %c0_i32, %c0_i32_0 : i32, i32, i32
  }
  func.func @transform_23(%arg0: i32, %arg1: i32) -> (i32, i32, i32) {
    %c0_i32 = arith.constant 0 : i32
    %c0_i32_0 = arith.constant 0 : i32
    %c0_i32_1 = arith.constant 0 : i32
    return %arg1, %c0_i32, %c0_i32_0 : i32, i32, i32
  }
  func.func @transform_24(%arg0: i32, %arg1: i32) -> (i32, i32, i32) {
    %c0_i32 = arith.constant 0 : i32
    %c0_i32_0 = arith.constant 0 : i32
    %c0_i32_1 = arith.constant 0 : i32
    return %arg1, %c0_i32, %c0_i32_0 : i32, i32, i32
  }
  func.func @transform_25(%arg0: i32, %arg1: i32) -> (i32, i32, i32) {
    %c0_i32 = arith.constant 0 : i32
    %c0_i32_0 = arith.constant 0 : i32
    %c0_i32_1 = arith.constant 0 : i32
    return %arg1, %c0_i32, %c0_i32_0 : i32, i32, i32
  }
  func.func @transform_26(%arg0: i32, %arg1: i32) -> (i32, i32, i32) {
    %c0_i32 = arith.constant 0 : i32
    %c0_i32_0 = arith.constant 0 : i32
    %c0_i32_1 = arith.constant 0 : i32
    return %arg1, %c0_i32, %c0_i32_0 : i32, i32, i32
  }
  func.func @transform_27(%arg0: i32, %arg1: i32) -> (i32, i32, i32) {
    %c0_i32 = arith.constant 0 : i32
    %c0_i32_0 = arith.constant 0 : i32
    %c0_i32_1 = arith.constant 0 : i32
    return %arg1, %c0_i32, %c0_i32_0 : i32, i32, i32
  }
  func.func @transform_28(%arg0: i32, %arg1: i32) -> (i32, i32, i32) {
    %c0_i32 = arith.constant 0 : i32
    %c0_i32_0 = arith.constant 0 : i32
    %c0_i32_1 = arith.constant 0 : i32
    return %arg1, %c0_i32, %c0_i32_0 : i32, i32, i32
  }
  func.func @transform_29(%arg0: i32, %arg1: i32) -> (i32, i32, i32) {
    %c0_i32 = arith.constant 0 : i32
    %c0_i32_0 = arith.constant 0 : i32
    %c0_i32_1 = arith.constant 0 : i32
    return %arg1, %c0_i32, %c0_i32_0 : i32, i32, i32
  }
  func.func @transform_30(%arg0: i32, %arg1: i32) -> (i32, i32) {
    %c0_i32 = arith.constant 0 : i32
    %c0_i32_0 = arith.constant 0 : i32
    return %arg0, %c0_i32 : i32, i32
  }
}

</mosaic_0001>

<bundles_post_ra>
// kernel: eq.15
= control target key start
LH: loop header
LB: loop body
LE: loop exit
PB: predicated region body
PF: predicated region fallthrough
CT: control target
= control target key end

     0   :  { %s67_s10 = smov 21   ;;  %s68_s11 = smov 15   ;;  %vm3_vm0 = vcmask 23552   ;;  %vm9_vm1 = vcmask 195752   ;;  %vm15_vm2 = vcmask 171152   ;;  %vm21_vm3 = vcmask 146552   ;;  %s111_s0 = inlined_call_operand.vmem [shape: s32[8,3], index: 0, kind: input, shape index: {}]   ;;  %s112_s1 = inlined_call_operand.vmem [shape: s32[24], index: 1, kind: output, shape index: {}]  }
   0x1   :  { %v53_v0 = vld [vmem:[%s111_s0 + $0x7] sm:$0x1]   ;;  %v55_v1 = vld [vmem:[%s111_s0 + $0x5] sm:$0x1]   ;;  %v54_v2 = vld [vmem:[%s111_s0 + $0x6] sm:$0x1]  }
   0x2   :  { %7 = vrot.lane.b32.xlu0 %v53_v0, %s67_s10  ;;  %19 = vrot.lane.b32.xlu1 %v55_v1, %s68_s11  ;;  %v56_v3 = vld [vmem:[%s111_s0 + $0x4] sm:$0x1]   ;;  %v2_v4 = vld [vmem:[%s111_s0] sm:$0x1]   ;;  %s69_s18 = smov 18   ;;  %s70_s19 = smov 12  }
   0x3   :  { %4 = vst.msk [vmem:[#allocation0] sm:$0x1] %vm3_vm0, %v2_v4   ;;  %v57_v5 = vld [vmem:[%s111_s0 + $0x3] sm:$0x1]   ;;  %v58_v6 = vld [vmem:[%s111_s0 + $0x2] sm:$0x1]  }
   0x4   :  { %s71_s24 = smov 9   ;;  %s72_s25 = smov 6   ;;  %v59_v7 = vld [vmem:[%s111_s0 + $0x1] sm:$0x1]   ;;  %vm27_vm4 = vcmask 121952   ;;  %vm33_vm5 = vcmask 97352  }
   0x5   :  { %s73_s0 = smov 3   ;;  %vm39_vm6 = vcmask 72752   ;;  %vm45_vm7 = vcmask 48152  }
   0x6   :  { %13 = vrot.lane.b32.xlu0 %v54_v2, %s69_s18  ;;  %25 = vrot.lane.b32.xlu1 %v56_v3, %s70_s19 }
   0xa   :  { %31 = vrot.lane.b32.xlu0 %v57_v5, %s71_s24  ;;  %37 = vrot.lane.b32.xlu1 %v58_v6, %s72_s25 }
   0xe   :  { %43 = vrot.lane.b32.xlu0 %v59_v7, %s73_s0 }
  0x74   :  { %v8_v8 = vpop.permute.xlu0 %7   ;;  %v20_v9 = vpop.permute.xlu1 %19  }
  0x75   :  { %10 = vst.msk [vmem:[#allocation0] sm:$0x1] %vm9_vm1, %v8_v8  }
  0x78   :  { %v14_v10 = vpop.permute.xlu0 %13   ;;  %v26_v11 = vpop.permute.xlu1 %25  }
  0x79   :  { %16 = vst.msk [vmem:[#allocation0] sm:$0x1] %vm15_vm2, %v14_v10  }
  0x7a   :  { %22 = vst.msk [vmem:[#allocation0] sm:$0x1] %vm21_vm3, %v20_v9  }
  0x7b   :  { %28 = vst.msk [vmem:[#allocation0] sm:$0x1] %vm27_vm4, %v26_v11  }
  0x7c   :  { %v32_v12 = vpop.permute.xlu0 %31   ;;  %v38_v13 = vpop.permute.xlu1 %37  }
  0x7d   :  { %34 = vst.msk [vmem:[#allocation0] sm:$0x1] %vm33_vm5, %v32_v12  }
  0x7e   :  { %40 = vst.msk [vmem:[#allocation0] sm:$0x1] %vm39_vm6, %v38_v13  }
  0x80   :  { %v44_v14 = vpop.permute.xlu0 %43  }
  0x81   :  { %46 = vst.msk [vmem:[#allocation0] sm:$0x1] %vm45_vm7, %v44_v14  }
  0x88   :  { %v50_v15 = vld [vmem:[#allocation0] sm:$0x1] }
  0x89   :  { %52 = vst [vmem:[%s112_s1] sm:$0x1] %v50_v15 }

// kernel: eq.25
= control target key start
LH: loop header
LB: loop body
LE: loop exit
PB: predicated region body
PF: predicated region fallthrough
CT: control target
= control target key end

     0   :  { %vm9_vm0 = vcmask 64512   ;;  %s76_s12 = smov 120   ;;  %s77_s13 = smov 80   ;;  %vm3_vm1 = vcmask 162816   ;;  %vm13_vm2 = vcmask 97280   ;;  %vm16_vm3 = vcmask 1048512   ;;  %s123_s0 = inlined_call_operand.vmem [shape: s32[8,20], index: 0, kind: input, shape index: {}]   ;;  %s124_s1 = inlined_call_operand.vmem [shape: s32[160], index: 1, kind: output, shape index: {}]  }
   0x1   :  { %v61_v0 = vld [vmem:[%s123_s0 + $0x6] sm:$0x1]   ;;  %v64_v3 = vld [vmem:[%s123_s0 + $0x4] sm:$0x1]   ;;  %v63_v4 = vld [vmem:[%s123_s0 + $0x5] sm:$0x1]  }
   0x2   :  { %v62_v1 = vld [vmem:[%s123_s0 + $0x6] sm:$0x1]   ;;  %26 = vrot.lane.b32.xlu1 %v64_v3, %s77_s13  ;;  %v65_v5 = vld [vmem:[%s123_s0 + $0x3] sm:$0x1]   ;;  %v2_v6 = vld [vmem:[%s123_s0] sm:$0x1]  }
   0x3   :  { %v10_v2 = vsel %vm9_vm0, %v62_v1, %v61_v0  ;;  %4 = vst.msk [vmem:[#allocation0] sm:$0x1] %vm3_vm1, %v2_v6   ;;  %s78_s20 = smov 100   ;;  %s79_s21 = smov 60   ;;  %v66_v7 = vld [vmem:[%s123_s0 + $0x2] sm:$0x1]  }
   0x4   :  { %11 = vrot.lane.b32.xlu0 %v10_v2, %s76_s12  ;;  %v67_v8 = vld [vmem:[%s123_s0 + $0x1] sm:$0x1]   ;;  %s80_s26 = smov 40   ;;  %s81_s27 = smov 20   ;;  %v68_v9 = vld [vmem:[%s123_s0 + $0x7] sm:$0x1]  }
   0x5   :  { %s82_s0 = smov 12   ;;  %vm22_vm4 = vcmask 982816   ;;  %vm28_vm5 = vcmask 818816   ;;  %vm34_vm6 = vcmask 654816   ;;  %vm40_vm7 = vcmask 490816  }
   0x6   :  { %32 = vrot.lane.b32.xlu1 %v65_v5, %s79_s21  ;;  %vm46_vm8 = vcmask 326816   ;;  %vm52_vm9 = vcmask 261216  }
   0x8   :  { %20 = vrot.lane.b32.xlu0 %v63_v4, %s78_s20 }
   0xa   :  { %44 = vrot.lane.b32.xlu1 %v67_v8, %s81_s27 }
   0xc   :  { %38 = vrot.lane.b32.xlu0 %v66_v7, %s80_s26 }
  0x10   :  { %50 = vrot.lane.b32.xlu0 %v68_v9, %s82_s0 }
  0x74   :  { %v27_v11 = vpop.permute.xlu1 %26  }
  0x76   :  { %v12_v10 = vpop.permute.xlu0 %11  }
  0x77   :  { %15 = vst.msk [vmem:[#allocation0 + $0x1] sm:$0x1] %vm13_vm2, %v12_v10  }
  0x78   :  { %17 = vst.msk [vmem:[#allocation0] sm:$0x1] %vm16_vm3, %v12_v10   ;;  %v33_v13 = vpop.permute.xlu1 %32  }
  0x7a   :  { %v21_v12 = vpop.permute.xlu0 %20  }
  0x7b   :  { %23 = vst.msk [vmem:[#allocation0] sm:$0x1] %vm22_vm4, %v21_v12  }
  0x7c   :  { %29 = vst.msk [vmem:[#allocation0] sm:$0x1] %vm28_vm5, %v27_v11   ;;  %v45_v15 = vpop.permute.xlu1 %44  }
  0x7d   :  { %35 = vst.msk [vmem:[#allocation0] sm:$0x1] %vm34_vm6, %v33_v13  }
  0x7e   :  { %v39_v14 = vpop.permute.xlu0 %38  }
  0x7f   :  { %41 = vst.msk [vmem:[#allocation0] sm:$0x1] %vm40_vm7, %v39_v14  }
  0x80   :  { %47 = vst.msk [vmem:[#allocation0] sm:$0x1] %vm46_vm8, %v45_v15  }
  0x82   :  { %v51_v16 = vpop.permute.xlu0 %50  }
  0x83   :  { %54 = vst.msk [vmem:[#allocation0 + $0x1] sm:$0x1] %vm52_vm9, %v51_v16  }
  0x8a   :  { %v58_v17 = vld [vmem:[#allocation0] sm:$0x3] }
  0x8b   :  { %60 = vst [vmem:[%s124_s1] sm:$0x3] %v58_v17 }

// kernel: tile.9
= control target key start
LH: loop header
LB: loop body
LE: loop exit
PB: predicated region body
PF: predicated region fallthrough
CT: control target
= control target key end

     0   :  { %vm82_vm0 = vcmask 523264   ;;  %s334_s0 = inlined_call_operand.vmem [shape: f32[8,3,192], index: 0, kind: input, shape index: {}]   ;;  %s335_s1 = inlined_call_operand.vmem [shape: f32[24,192], index: 1, kind: output, shape index: {}]  }
   0x1   :  { %v172_v0 = vld [vmem:[%s334_s0 + $0x3c] sm:$0xf]  ;;  %v173_v1 = vld [vmem:[%s334_s0 + $0x38] sm:$0xf]  ;;  %v174_v2 = vld [vmem:[%s334_s0 + $0x34] sm:$0xf] }
   0x2   :  { %8 = vst [vmem:[#allocation0 + $0x78] sm:$0xf] %v172_v0  ;;  %13 = vst [vmem:[#allocation0 + $0x70] sm:$0xf] %v173_v1  ;;  %v175_v3 = vld [vmem:[%s334_s0 + $0x30] sm:$0xf] }
   0x3   :  { %18 = vst [vmem:[#allocation0 + $0x68] sm:$0xf] %v174_v2  ;;  %v176_v4 = vld [vmem:[%s334_s0 + $0x2c] sm:$0xf]  ;;  %v177_v5 = vld [vmem:[%s334_s0 + $0x28] sm:$0xf] }
   0x4   :  { %23 = vst [vmem:[#allocation0 + $0x60] sm:$0xf] %v175_v3  ;;  %28 = vst [vmem:[#allocation0 + $0x58] sm:$0xf] %v176_v4  ;;  %v178_v6 = vld [vmem:[%s334_s0 + $0x24] sm:$0xf] }
   0x5   :  { %33 = vst [vmem:[#allocation0 + $0x50] sm:$0xf] %v177_v5  ;;  %v179_v7 = vld [vmem:[%s334_s0 + $0x20] sm:$0xf]  ;;  %v180_v8 = vld [vmem:[%s334_s0 + $0x1c] sm:$0xf] }
   0x6   :  { %38 = vst [vmem:[#allocation0 + $0x48] sm:$0xf] %v178_v6  ;;  %43 = vst [vmem:[#allocation0 + $0x40] sm:$0xf] %v179_v7  ;;  %v181_v9 = vld [vmem:[%s334_s0 + $0x18] sm:$0xf] }
   0x7   :  { %48 = vst [vmem:[#allocation0 + $0x38] sm:$0xf] %v180_v8  ;;  %v182_v10 = vld [vmem:[%s334_s0 + $0x14] sm:$0xf]  ;;  %v183_v11 = vld [vmem:[%s334_s0 + $0x10] sm:$0xf] }
   0x8   :  { %53 = vst [vmem:[#allocation0 + $0x30] sm:$0xf] %v181_v9  ;;  %58 = vst [vmem:[#allocation0 + $0x28] sm:$0xf] %v182_v10  ;;  %v184_v12 = vld [vmem:[%s334_s0 + $0xc] sm:$0xf] }
   0x9   :  { %63 = vst [vmem:[#allocation0 + $0x20] sm:$0xf] %v183_v11  ;;  %v185_v13 = vld [vmem:[%s334_s0 + $0x8] sm:$0xf]  ;;  %v186_v14 = vld [vmem:[%s334_s0 + $0x4] sm:$0xf] }
   0xa   :  { %68 = vst [vmem:[#allocation0 + $0x18] sm:$0xf] %v184_v12  ;;  %73 = vst [vmem:[#allocation0 + $0x10] sm:$0xf] %v185_v13  ;;  %v78_v15 = vld [vmem:[%s334_s0] sm:$0xf] }
   0xb   :  { %77 = vst [vmem:[#allocation0 + $0x8] sm:$0xf] %v186_v14  ;;  %79 = vst [vmem:[#allocation0] sm:$0xf] %v78_v15  ;;  %v115_v16 = vld [vmem:[#allocation0 + $0x68] sm:$0x7]  }
   0xc   :  { %v120_v17 = vld [vmem:[#allocation0 + $0x78] sm:$0x7]   ;;  %v155_v18 = vld [vmem:[#allocation0 + $0x70] sm:$0x7]   ;;  %195 = vst.msk [vmem:[%s335_s1 + $0x2a] sm:$0x7] %vm82_vm0, %v115_v16  }
   0xd   :  { %v108_v19 = vld [vmem:[#allocation0 + $0x58] sm:$0x7]   ;;  %196 = vst.msk [vmem:[%s335_s1 + $0x2d] sm:$0x7] %vm82_vm0, %v120_v17   ;;  %v145_v20 = vld [vmem:[#allocation0 + $0x50] sm:$0x7]  }
   0xe   :  { %v151_v21 = vld [vmem:[#allocation0 + $0x60] sm:$0x7]   ;;  %205 = vst [vmem:[%s335_s1 + $0x25] sm:$0x7] %v155_v18   ;;  %v98_v22 = vld [vmem:[#allocation0 + $0x38] sm:$0x7]  }
   0xf   :  { %v103_v23 = vld [vmem:[#allocation0 + $0x48] sm:$0x7]   ;;  %193 = vst.msk [vmem:[%s335_s1 + $0x1f] ss:$9 sm:$0x3] %vm82_vm0, %v108_v19  }
  0x10   :  { %194 = vst.msk [vmem:[%s335_s1 + $0x27] sm:$0x4] %vm82_vm0, %v108_v19   ;;  %v141_v24 = vld [vmem:[#allocation0 + $0x40] sm:$0x7]   ;;  %203 = vst [vmem:[%s335_s1 + $0x1f] sm:$0x4] %v145_v20  }
  0x11   :  { %202 = vst [vmem:[%s335_s1 + $0x17] ss:$9 sm:$0x3] %v145_v20   ;;  %204 = vst [vmem:[%s335_s1 + $0x22] sm:$0x7] %v151_v21  }
  0x12   :  { %v91_v25 = vld [vmem:[#allocation0 + $0x28] sm:$0x7]   ;;  %191 = vst.msk [vmem:[%s335_s1 + $0x19] sm:$0x7] %vm82_vm0, %v98_v22   ;;  %192 = vst.msk [vmem:[%s335_s1 + $0x1c] sm:$0x7] %vm82_vm0, %v103_v23  }
  0x13   :  { %v131_v26 = vld [vmem:[#allocation0 + $0x20] sm:$0x7]   ;;  %v137_v27 = vld [vmem:[#allocation0 + $0x30] sm:$0x7]   ;;  %201 = vst [vmem:[%s335_s1 + $0x14] sm:$0x7] %v141_v24  }
  0x14   :  { %v81_v28 = vld [vmem:[#allocation0 + $0x8] sm:$0x7]   ;;  %v86_v29 = vld [vmem:[#allocation0 + $0x18] sm:$0x7]   ;;  %189 = vst.msk [vmem:[%s335_s1 + $0xe] sm:$0x3] %vm82_vm0, %v91_v25  }
  0x15   :  { %190 = vst.msk [vmem:[%s335_s1 + $0x16] sm:$0x4] %vm82_vm0, %v91_v25   ;;  %v127_v30 = vld [vmem:[#allocation0 + $0x10] sm:$0x7]   ;;  %198 = vst [vmem:[%s335_s1 + $0x6] sm:$0x3] %v131_v26  }
  0x16   :  { %199 = vst [vmem:[%s335_s1 + $0xe] sm:$0x4] %v131_v26   ;;  %200 = vst [vmem:[%s335_s1 + $0x11] sm:$0x7] %v137_v27   ;;  %v124_v31 = vld [vmem:[#allocation0] sm:$0x7]  }
  0x17   :  { %187 = vst.msk [vmem:[%s335_s1 + $0x8] sm:$0x7] %vm82_vm0, %v81_v28   ;;  %188 = vst.msk [vmem:[%s335_s1 + $0xb] sm:$0x7] %vm82_vm0, %v86_v29  }
  0x18   :  { %197 = vst [vmem:[%s335_s1 + $0x3] sm:$0x7] %v127_v30   ;;  %125 = vst [vmem:[%s335_s1] sm:$0x7] %v124_v31  }

// kernel: transformer_planner.1
= control target key start
LH: loop header
LB: loop body
LE: loop exit
PB: predicated region body
PF: predicated region fallthrough
CT: control target
= control target key end

     0   :  { %s7694_s6 = smov 1   ;;  %s7695_s10 = smov 2   ;;  %s9724_s0 = inlined_call_operand.smem [shape: u32[31], index: -1, kind: input, shape index: {}] }
   0x1   :  { %s7739_s5 = sld [smem:[%s9724_s0]]   ;;  %s7696_s14 = smov 3  }
   0x2   :  { %s7744_s9 = sld [smem:[%s9724_s0 + %s7694_s6]]   ;;  %s7697_s18 = smov 4  }
   0x3   :  { %s7749_s13 = sld [smem:[%s9724_s0 + %s7695_s10]]   ;;  %s7698_s22 = smov 5  }
   0x4   :  { %s7754_s17 = sld [smem:[%s9724_s0 + %s7696_s14]]   ;;  %s7699_s26 = smov 6  }
   0x5   :  { %s7759_s21 = sld [smem:[%s9724_s0 + %s7697_s18]]   ;;  %s7700_s30 = smov 7  }
   0x6   :  { %s7764_s25 = sld [smem:[%s9724_s0 + %s7698_s22]]   ;;  %s7701_s4 = smov 8  }
   0x7   :  { %9767 = sst [smem:[#allocation3_spill]] %s7739_s5  ;;  %s7702_s10 = smov 9  }
   0x8   :  { %9768 = sst [smem:[#allocation4_spill]] %s7744_s9  ;;  %s7703_s15 = smov 10  }
   0x9   :  { %9769 = sst [smem:[#allocation5_spill]] %s7749_s13  ;;  %s7704_s20 = smov 11  }
   0xa   :  { %9770 = sst [smem:[#allocation6_spill]] %s7754_s17  ;;  %s7706_s1 = smov 13  }
   0xb   :  { %9771 = sst [smem:[#allocation7_spill]] %s7759_s21  ;;  %s7707_s7 = smov 14  }
   0xc   :  { %9772 = sst [smem:[#allocation8_spill]] %s7764_s25  ;;  %s7709_s22 = smov 16  }
   0xd   :  { %s7769_s29 = sld [smem:[%s9724_s0 + %s7699_s26]]   ;;  %s7705_s26 = smov 12  }
   0xe   :  { %s7774_s3 = sld [smem:[%s9724_s0 + %s7700_s30]]   ;;  %s7710_s28 = smov 17  }
   0xf   :  { %s7779_s8 = sld [smem:[%s9724_s0 + %s7701_s4]]   ;;  %s7893_s16 = smov 0  }
  0x10   :  { %s7784_s14 = sld [smem:[%s9724_s0 + %s7702_s10]]   ;;  %s7895_s18 = smov 0  }
  0x11   :  { %s7789_s19 = sld [smem:[%s9724_s0 + %s7703_s15]]   ;;  %s7708_s15 = smov 15  }
  0x12   :  { %s7794_s24 = sld [smem:[%s9724_s0 + %s7704_s20]]  }
  0x13   :  { %9773 = sst [smem:[#allocation9_spill]] %s7769_s29 }
  0x14   :  { %9774 = sst [smem:[#allocation10_spill]] %s7774_s3 }
  0x15   :  { %9775 = sst [smem:[#allocation11_spill]] %s7779_s8 }
  0x16   :  { %9776 = sst [smem:[#allocation12_spill]] %s7784_s14 }
  0x17   :  { %9777 = sst [smem:[#allocation13_spill]] %s7789_s19 }
  0x18   :  { %9778 = sst [smem:[#allocation14_spill]] %s7794_s24 }
  0x19   :  { %s7799_s30 = sld [smem:[%s9724_s0 + %s7705_s26]]  }
  0x1a   :  { %s7804_s6 = sld [smem:[%s9724_s0 + %s7706_s1]]  }
  0x1b   :  { %s7809_s12 = sld [smem:[%s9724_s0 + %s7707_s7]]   ;;  %s7711_s7 = smov 18  }
  0x1c   :  { %s7814_s20 = sld [smem:[%s9724_s0 + %s7708_s15]]   ;;  %s7712_s15 = smov 19  }
  0x1d   :  { %s7819_s27 = sld [smem:[%s9724_s0 + %s7709_s22]]   ;;  %s7713_s22 = smov 20  }
  0x1e   :  { %s7824_s4 = sld [smem:[%s9724_s0 + %s7710_s28]]   ;;  %s7714_s28 = smov 21  }
  0x1f   :  { %9779 = sst [smem:[#allocation15_spill]] %s7799_s30 }
  0x20   :  { %9780 = sst [smem:[#allocation16_spill]] %s7804_s6 }
  0x21   :  { %9781 = sst [smem:[#allocation17_spill]] %s7809_s12 }
  0x22   :  { %9782 = sst [smem:[#allocation18_spill]] %s7814_s20 }
  0x23   :  { %9783 = sst [smem:[#allocation19_spill]] %s7819_s27 }
  0x24   :  { %s7829_s17 = sld [smem:[%s9724_s0 + %s7711_s7]]   ;;  %s7715_s7 = smov 22  }
  0x25   :  { %s7834_s5 = sld [smem:[%s9724_s0 + %s7712_s15]]   ;;  %s7716_s15 = smov 23  }
  0x26   :  { %s7839_s13 = sld [smem:[%s9724_s0 + %s7713_s22]]   ;;  %s7717_s22 = smov 24  }
  0x27   :  { %s7844_s9 = sld [smem:[%s9724_s0 + %s7714_s28]]   ;;  %s7718_s28 = smov 25  }
  0x2a   :  { %9784 = sst [smem:[#allocation20_spill]] %s7829_s17 }
  0x2b   :  { %9785 = sst [smem:[#allocation21_spill]] %s7834_s5 }
  0x2c   :  { %9786 = sst [smem:[#allocation22_spill]] %s7839_s13 }
  0x2d   :  { %9787 = sst [smem:[#allocation23_spill]] %s7844_s9 }
  0x2e   :  { %s7849_s17 = sld [smem:[%s9724_s0 + %s7715_s7]]   ;;  %s7719_s7 = smov 26  }
  0x2f   :  { %s7854_s5 = sld [smem:[%s9724_s0 + %s7716_s15]]   ;;  %s7720_s15 = smov 27  }
  0x30   :  { %s7859_s13 = sld [smem:[%s9724_s0 + %s7717_s22]]   ;;  %s7721_s22 = smov 28  }
  0x31   :  { %s7864_s9 = sld [smem:[%s9724_s0 + %s7718_s28]]   ;;  %s7722_s28 = smov 29  }
  0x34   :  { %9788 = sst [smem:[#allocation24_spill]] %s7849_s17 }
  0x35   :  { %9789 = sst [smem:[#allocation25_spill]] %s7854_s5 }
  0x36   :  { %9790 = sst [smem:[#allocation26_spill]] %s7859_s13 }
  0x37   :  { %9791 = sst [smem:[#allocation27_spill]] %s7864_s9 }
  0x38   :  { %s7869_s17 = sld [smem:[%s9724_s0 + %s7719_s7]]   ;;  %s7723_s7 = smov 30  }
  0x39   :  { %s7874_s5 = sld [smem:[%s9724_s0 + %s7720_s15]]   ;;  %s7891_s15 = smov 0  }
  0x3a   :  { %s7879_s13 = sld [smem:[%s9724_s0 + %s7721_s22]]  }
  0x3b   :  { %s7884_s9 = sld [smem:[%s9724_s0 + %s7722_s28]]  }
  0x3e   :  { %9792 = sst [smem:[#allocation28_spill]] %s7869_s17 }
  0x3f   :  { %s7889_s17 = sld [smem:[%s9724_s0 + %s7723_s7]]  }
  0x40   :  { %9793 = sst [smem:[#allocation29_spill]] %s7879_s13 }
  0x41   :  { %9794 = sst [smem:[#allocation30_spill]] %s7884_s9 }
  0x45   :  { %9795 = sst [smem:[#allocation31_spill]] %s7889_s17 }
  0x46 LB: > { %9796 = sst [smem:[#allocation32_spill]] %s7684_s15  ;;  %s80_s0 = sadd.s32 1, %s7688_s16  ;;  %s7692_s18 = sphi %s7895_s18, %s71_s18   ;;  %s7688_s16 = sphi %s7893_s16, %s9916_s16   ;;  %s7684_s15 = sphi %s7891_s15, %s9915_s15  }
  0x47   : > { %9797 = sst [smem:[#allocation33_spill]] %s7688_s16  ;;  %p6549_p0 = scmp.ge.s32.totalorder %s7692_s18, 1 }
  0x48   : > { %9798 = sst [smem:[#allocation34_spill]] %s7692_s18  ;;  %p81_p1 = scmp.ge.s32.totalorder %s80_s0, 4 }
  0x49   : > { %p1101_p2 = scmp.lt.s32.totalorder %s7692_s18, 5 }
  0x4a   : > { %s9918_s0 = smov (%p81_p1, %s80_s0), 0 }
  0x4b   : > { %9799 = sst [smem:[#allocation35_spill]] %s9918_s0  ;;  %p1102_p3 = pnand %p6549_p0, %p1101_p2 }
  0x4d   : > { %1105 = sbr.rel (%p1102_p3) target bundleno = 6774 (0x1a76), region = 140 }
  0x54   : > { %s9802_s21 = sld [smem:[#allocation7_spill]]  ;;  %s9803_s25 = sld [smem:[#allocation8_spill]] }
  0x55   : > { %s9804_s29 = sld [smem:[#allocation9_spill]]  ;;  %s9806_s19 = sld [smem:[#allocation13_spill]] }
  0x56   : > { %s9808_s30 = sld [smem:[#allocation15_spill]]  ;;  %s9809_s6 = sld [smem:[#allocation16_spill]] }
  0x57   : > { %s9810_s12 = sld [smem:[#allocation17_spill]]  ;;  %p1302_p4 = scmp.lt.s32.totalorder %s7684_s15, 3 }
  0x58   : > { %s9813_s26 = sld [smem:[#allocation20_spill]]  ;;  %s9814_s1 = sld [smem:[#allocation21_spill]] }
  0x59   : > { %s7913_s22 = scalar_select %p1302_p4, %s7684_s15, 3 }
  0x5a   : > { %s9815_s7 = sld [smem:[#allocation22_spill]]  ;;  %s9816_s11 = sld [smem:[#allocation23_spill]] }
  0x5b   : > { %s7026_s23 = smul.u32 192, %s7913_s22  ;;  %s7917_s28 = sshll.u32 %s7913_s22, 1 }
  0x5c   : > { %s9818_s16 = sld [smem:[#allocation24_spill]]  ;;  %s9820_s17 = sld [smem:[#allocation25_spill]] }
  0x5d   : > { %s7924_s0 = scalar_lea.vmem %s9802_s21, %s7026_s23  ;;  %s7927_s18 = scalar_lea.vmem %s9803_s25, %s7026_s23 }
  0x5e   : > { %9817 = sst [smem:[#allocation36_spill]] %s7924_s0  ;;  %s7930_s15 = scalar_lea.vmem %s9804_s29, %s7026_s23 }
  0x5f   : > { %9819 = sst [smem:[#allocation37_spill]] %s7927_s18  ;;  %s9822_s13 = sld [smem:[#allocation26_spill]] }
  0x60   : > { %9821 = sst [smem:[#allocation38_spill]] %s7930_s15  ;;  %s9823_s2 = sld [smem:[#allocation27_spill]] }
  0x61   : > { %s7935_s3 = scalar_lea.vmem %s9806_s19, %s7026_s23  ;;  %s9825_s10 = sld [smem:[#allocation28_spill]] }
  0x62   : > { %9824 = sst [smem:[#allocation39_spill]] %s7935_s3  ;;  %s7940_s21 = scalar_lea.vmem %s9808_s30, %s7026_s23 }
  0x63   : > { %9826 = sst [smem:[#allocation40_spill]] %s7940_s21  ;;  %s7943_s25 = scalar_lea.vmem %s9809_s6, %s7026_s23 }
  0x64   : > { %9827 = sst [smem:[#allocation41_spill]] %s7943_s25  ;;  %s9828_s18 = sld [smem:[#allocation30_spill]] }
  0x65   : > { %s7946_s29 = scalar_lea.vmem %s9810_s12, %s7026_s23  ;;  %s9830_s15 = sld [smem:[#allocation29_spill]] }
  0x66   : > { %9829 = sst [smem:[#allocation42_spill]] %s7946_s29  ;;  %s7955_s19 = scalar_lea.vmem %s9813_s26, %s7026_s23 }
  0x67   : > { %s1373_s3 = scalar_lea.vmem %s9814_s1, %s7917_s28  ;;  %s1377_s8 = scalar_lea.vmem %s9815_s7, %s7917_s28 }
  0x68   : > { %s1381_s24 = scalar_lea.vmem %s9816_s11, %s7917_s28  ;;  %s1385_s30 = scalar_lea.vmem %s9818_s16, %s7917_s28 }
  0x69   : > { %s1389_s21 = scalar_lea.vmem %s9820_s17, %s7917_s28  ;;  %s1393_s6 = scalar_lea.vmem %s9822_s13, %s7917_s28 }
  0x6a   : > { %s1397_s25 = scalar_lea.vmem %s9823_s2, %s7917_s28  ;;  %s7972_s12 = scalar_lea.vmem %s9825_s10, %s7026_s23 }
  0x6b   : > { %s1406_s29 = scalar_lea.vmem %s7874_s5, %s7917_s28  ;;  %s6917_s0 = sshll.u32 %s7913_s22, 8 }
  0x6c   : > { %s1415_s20 = scalar_lea.vmem %s9828_s18, %s7917_s28  ;;  %s7980_s9 = scalar_lea.vmem %s9830_s15, %s6917_s0 }
  0x6d   : > { %s9831_s27 = sld [smem:[#allocation32_spill]] }
  0x73   : > { %p6577_p5 = scmp.ne.s32.totalorder %s9831_s27, 0 }
  0x74   : > { %s9832_s14 = sld [smem:[#allocation4_spill]] (!%p6577_p5)  ;;  %vm1435_vm0 = vcmask (!%p6577_p5), 523264  }
  0x75   : > { %1427 = sbr.rel (%p6577_p5) target bundleno = 126 (0x7e), region = 144 }
  0x7a   : > { %v1428_v0 = vld [vmem:[%s9832_s14] sm:$0xff] (!%p6577_p5)  ;;  %v1429_v1 = vld [vmem:[%s9832_s14 + $0x8] sm:$0xff] (!%p6577_p5)  ;;  %v1430_v2 = vld [vmem:[%s9832_s14 + $0x10] sm:$0xff] (!%p6577_p5) }
  0x7b   : > { %1434 = vst [vmem:[#allocation2] sm:$0xff] (!%p6577_p5), %v1428_v0  ;;  %1436 = vst.msk [vmem:[#allocation2 + $0x8] sm:$0xff] (!%p6577_p5), %vm1435_vm0, %v1429_v1  ;;  %v1431_v3 = vld [vmem:[%s9832_s14 + $0x18] sm:$0xff] (!%p6577_p5)  ;;  %v1432_v4 = vld [vmem:[%s9832_s14 + $0x20] sm:$0xff] (!%p6577_p5) }
  0x7c   : > { %1437 = vst [vmem:[#allocation2 + $0x10] sm:$0xff] %v1430_v2  ;;  %v1433_v5 = vld [vmem:[%s9832_s14 + $0x28] sm:$0xff]  ;;  %1438 = vst.msk [vmem:[#allocation2 + $0x18] sm:$0xff] %vm1435_vm0, %v1431_v3 }
  0x7d   : > { %1439 = vst [vmem:[#allocation2 + $0x20] sm:$0xff] %v1432_v4  ;;  %1440 = vst.msk [vmem:[#allocation2 + $0x28] sm:$0xff] %vm1435_vm0, %v1433_v5 }
  0x7e PF: > { %s9833_s13 = sld [smem:[#allocation36_spill]]  ;;  %vm1458_vm1 = vcmask 523264   ;;  %s9834_s17 = sld [smem:[#allocation37_spill]]  ;;  %vm2210_vm2 = vcmask 392192   ;;  %vm2313_vm3 = vcmask 1043456   ;;  %vm2271_vm4 = vcmask 195584  }
  0x7f   : > { %s9835_s27 = sld [smem:[#allocation38_spill]]  ;;  %s9844_s22 = sld [smem:[#allocation12_spill]]  ;;  %vm2552_vm5 = vcmask 261120   ;;  %vm2936_vm6 = vcmask 785408   ;;  %vm2940_vm7 = vcmask 130048  }
  0x80   : > { %s9846_s26 = sld [smem:[#allocation5_spill]]  ;;  %s7724_s1 = smov 80  }
  0x81   : > { %s7725_s2 = smov 32   ;;  %s7726_s7 = smov 112  }
  0x82   : > { %s7727_s10 = smov 48   ;;  %s7728_s11 = smov 96  }
  0x83   : > { %s9854_s16 = sld [smem:[#allocation41_spill]] }
  0x84   : > { %v1441_v6 = vld [vmem:[#allocation2] sm:$0xff]  ;;  %v1442_v7 = vld [vmem:[#allocation2 + $0x8] sm:$0xff]  ;;  %v7124_v22 = vld [vmem:[%s9833_s13 + $0x14] ss:$8 sps:$4 sm:$0xff]  }
  0x85   : > { %v1445_v8 = vld [vmem:[#allocation2 + $0x20] sm:$0xff]  ;;  %v1459_v9 = vsel %vm1458_vm1, %v1442_v7, 0.0  ;;  %v1446_v10 = vld [vmem:[#allocation2 + $0x28] sm:$0xff]  ;;  %v7990_v11 = vld [vmem:[#allocation2 + $0x10] sm:$0xff]  ;;  %s9845_s23 = scalar_lea.vmem %s9844_s22, %s7917_s28 }
  0x86   : > { %v7992_v12 = vld [vmem:[#allocation2 + $0x18] sm:$0xff]  ;;  %v1460_v13 = vadd.f32 %v1459_v9, %v1441_v6  ;;  %v1467_v14 = vsel %vm1458_vm1, %v1446_v10, 0.0  ;;  %v7118_v18 = vld [vmem:[%s9833_s13 + $0x4] ss:$8 sps:$4 sm:$0xff]   ;;  %v7120_v19 = vld [vmem:[%s9833_s13] ss:$8 sps:$4 sm:$0xff]  }
  0x87   : > { %v1463_v15 = vsel %vm1458_vm1, %v7992_v12, 0.0  ;;  %v1468_v16 = vadd.f32 %v1467_v14, %v1445_v8  ;;  %v7121_v20 = vld [vmem:[%s9834_s17 + $0x4] ss:$8 sps:$4 sm:$0xff]   ;;  %v7123_v21 = vld [vmem:[%s9834_s17] ss:$8 sps:$4 sm:$0xff]   ;;  %1789 = vmatprep.subr.bf16.mxu0 %v7118_v18 }
  0x88   : > { %1461 = vadd.xlane.f32.xlu0 %v1460_v13  ;;  %v1464_v17 = vadd.f32 %v1463_v15, %v7990_v11  ;;  %1971 = vmatprep.subr.bf16.mxu1 %v7121_v20  ;;  %v7127_v23 = vld [vmem:[%s9834_s17 + $0x14] ss:$8 sps:$4 sm:$0xff]   ;;  %v7126_v24 = vld [vmem:[%s9833_s13 + $0x10] ss:$8 sps:$4 sm:$0xff]   ;;  %v7130_v26 = vld [vmem:[%s9833_s13 + $0x24] ss:$8 sps:$4 sm:$0xff]  }
  0x89   : > { %1469 = vadd.xlane.f32.xlu1 %v1468_v16  ;;  %1790 = vmatpush1.bf16.msra.mxu0 %v7120_v19  ;;  %v7129_v25 = vld [vmem:[%s9834_s17 + $0x10] ss:$8 sps:$4 sm:$0xff]   ;;  %v7133_v27 = vld [vmem:[%s9834_s17 + $0x24] ss:$8 sps:$4 sm:$0xff]   ;;  %v7132_v28 = vld [vmem:[%s9833_s13 + $0x20] ss:$8 sps:$4 sm:$0xff]  }
  0x8a   : > { %1972 = vmatpush1.bf16.msra.mxu1 %v7123_v21  ;;  %1791 = vmatprep.subr.bf16.mxu0 %v7124_v22  ;;  %v7135_v29 = vld [vmem:[%s9834_s17 + $0x20] ss:$8 sps:$4 sm:$0xff]   ;;  %v7136_v30 = vld [vmem:[%s9833_s13 + $0x34] ss:$8 sps:$4 sm:$0xff]   ;;  %v7138_v32 = vld [vmem:[%s9833_s13 + $0x30] ss:$8 sps:$4 sm:$0xff]  }
  0x8b   : > { %1973 = vmatprep.subr.bf16.mxu1 %v7127_v23  ;;  %v7139_v31 = vld [vmem:[%s9834_s17 + $0x34] ss:$8 sps:$4 sm:$0xff]   ;;  %v7141_v33 = vld [vmem:[%s9834_s17 + $0x30] ss:$8 sps:$4 sm:$0xff]   ;;  %v7142_v34 = vld [vmem:[%s9833_s13 + $0x44] ss:$8 sps:$4 sm:$0xff]  }
  0x8c   : > { %1465 = vadd.xlane.f32.xlu0 %v1464_v17  ;;  %v7145_v35 = vld [vmem:[%s9834_s17 + $0x44] ss:$8 sps:$4 sm:$0xff]   ;;  %v7144_v36 = vld [vmem:[%s9833_s13 + $0x40] ss:$8 sps:$4 sm:$0xff]   ;;  %v7148_v38 = vld [vmem:[%s9833_s13 + $0x54] ss:$8 sps:$4 sm:$0xff]  }
  0x8d   : > { %1792 = vmatpush1.bf16.msra.mxu0 %v7126_v24  ;;  %v7147_v37 = vld [vmem:[%s9834_s17 + $0x40] ss:$8 sps:$4 sm:$0xff]   ;;  %v7150_v63 = vld [vmem:[%s9833_s13 + $0x50] ss:$8 sps:$4 sm:$0xff]   ;;  %v7151_v0 = vld [vmem:[%s9834_s17 + $0x54] ss:$8 sps:$4 sm:$0xff]  }
  0x8e   : > { %1974 = vmatpush1.bf16.msra.mxu1 %v7129_v25  ;;  %1793 = vmatprep.subr.bf16.mxu0 %v7130_v26  ;;  %v7153_v1 = vld [vmem:[%s9834_s17 + $0x50] ss:$8 sps:$4 sm:$0xff]   ;;  %v7154_v2 = vld [vmem:[%s9833_s13 + $0x64] ss:$8 sps:$4 sm:$0xff]   ;;  %v7156_v3 = vld [vmem:[%s9833_s13 + $0x60] ss:$8 sps:$4 sm:$0xff]  }
  0x8f   : > { %1975 = vmatprep.subr.bf16.mxu1 %v7133_v27  ;;  %v7157_v4 = vld [vmem:[%s9834_s17 + $0x64] ss:$8 sps:$4 sm:$0xff]   ;;  %v7159_v5 = vld [vmem:[%s9834_s17 + $0x60] ss:$8 sps:$4 sm:$0xff]   ;;  %v7165_v9 = vld [vmem:[%s9834_s17 + $0x70] ss:$8 sps:$4 sm:$0xff]  }
  0x90   : > { %v7171_v13 = vld [vmem:[%s9834_s17 + $0x80] ss:$8 sps:$4 sm:$0xff]   ;;  %v7172_v14 = vld [vmem:[%s9833_s13 + $0x94] ss:$8 sps:$4 sm:$0xff]   ;;  %v7174_v16 = vld [vmem:[%s9833_s13 + $0x90] ss:$8 sps:$4 sm:$0xff]  }
  0x91   : > { %1794 = vmatpush1.bf16.msra.mxu0 %v7132_v28  ;;  %v7175_v15 = vld [vmem:[%s9834_s17 + $0x94] ss:$8 sps:$4 sm:$0xff]   ;;  %v7177_v17 = vld [vmem:[%s9834_s17 + $0x90] ss:$8 sps:$4 sm:$0xff]   ;;  %v7178_v18 = vld [vmem:[%s9833_s13 + $0xa4] ss:$8 sps:$4 sm:$0xff]  }
  0x92   : > { %1976 = vmatpush1.bf16.msra.mxu1 %v7135_v29  ;;  %1795 = vmatprep.subr.bf16.mxu0 %v7136_v30  ;;  %v7181_v19 = vld [vmem:[%s9834_s17 + $0xa4] ss:$8 sps:$4 sm:$0xff]   ;;  %v7180_v20 = vld [vmem:[%s9833_s13 + $0xa0] ss:$8 sps:$4 sm:$0xff]   ;;  %v7184_v22 = vld [vmem:[%s9833_s13 + $0xb4] ss:$8 sps:$4 sm:$0xff]  }
  0x93   : > { %1977 = vmatprep.subr.bf16.mxu1 %v7139_v31  ;;  %v7183_v21 = vld [vmem:[%s9834_s17 + $0xa0] ss:$8 sps:$4 sm:$0xff]   ;;  %v7187_v23 = vld [vmem:[%s9834_s17 + $0xb4] ss:$8 sps:$4 sm:$0xff]   ;;  %v7186_v24 = vld [vmem:[%s9833_s13 + $0xb0] ss:$8 sps:$4 sm:$0xff]  }
  0x94   : > { %v7189_v25 = vld [vmem:[%s9834_s17 + $0xb0] ss:$8 sps:$4 sm:$0xff]   ;;  %v7192_v26 = vld [vmem:[%s9835_s27 + $0x4] ss:$8 sps:$4 sm:$0xff]  }
  0x95   : > { %1796 = vmatpush1.bf16.msra.mxu0 %v7138_v32  ;;  %v1515_v32 = vlaneseq }
  0x96   : > { %1978 = vmatpush1.bf16.msra.mxu1 %v7141_v33  ;;  %1797 = vmatprep.subr.bf16.mxu0 %v7142_v34 }
  0x97   : > { %1979 = vmatprep.subr.bf16.mxu1 %v7145_v35 }
  0x99   : > { %1798 = vmatpush1.bf16.msra.mxu0 %v7144_v36 }
  0x9a   : > { %1980 = vmatpush1.bf16.msra.mxu1 %v7147_v37  ;;  %1799 = vmatprep.subr.bf16.mxu0 %v7148_v38  ;;  %v1516_v37 = vshrl.u32 %v1515_v32, 7 }
  0x9b   : > { %1981 = vmatprep.subr.bf16.mxu1 %v7151_v0 }
  0x9c   : > { %v8076_v38 = vsub.s32 1, %v1516_v37 }
  0x9d   : > { %1800 = vmatpush1.bf16.msra.mxu0 %v7150_v63 }
  0x9e   : > { %1982 = vmatpush1.bf16.msra.mxu1 %v7153_v1  ;;  %1801 = vmatprep.subr.bf16.mxu0 %v7154_v2  ;;  %9838 = vst [vmem:[#allocation43_spill] sm:$0xff] %v8076_v38 }
  0x9f   : > { %1983 = vmatprep.subr.bf16.mxu1 %v7157_v4 }
  0xa1   : > { %1802 = vmatpush1.bf16.msra.mxu0 %v7156_v3 }
  0xa2   : > { %1984 = vmatpush1.bf16.msra.mxu1 %v7159_v5 }
 0x115   : > { %v1462_v39 = vpop.xlane.xlu0 %1461 }
 0x116   : > { %v1472_v40 = vmul.f32 0.0052083335, %v1462_v39  ;;  %v1470_v41 = vpop.xlane.xlu1 %1469  ;;  %v1456_v39 = vld [vmem:[%s1377_s8] sm:$0x3]  ;;  %s9840_s8 = sld [smem:[#allocation11_spill]] }
 0x117   : > { %v1474_v42 = vmul.f32 0.0052083335, %v1470_v41 }
 0x118   : > { %v8019_v43 = vsub.f32 %v1441_v6, %v1472_v40  ;;  %v8021_v44 = vsub.f32 %v1442_v7, %v1472_v40  ;;  %v7160_v6 = vld [vmem:[%s9833_s13 + $0x74] ss:$8 sps:$4 sm:$0xff]   ;;  %v7162_v7 = vld [vmem:[%s9833_s13 + $0x70] ss:$8 sps:$4 sm:$0xff]   ;;  %v8081_v40 = vsub.s32 0, %v1516_v37 }
 0x119   : > { %v8023_v45 = vsub.f32 %v1445_v8, %v1474_v42  ;;  %v8025_v46 = vsub.f32 %v1446_v10, %v1474_v42  ;;  %v1466_v47 = vpop.xlane.xlu0 %1465  ;;  %v7163_v8 = vld [vmem:[%s9834_s17 + $0x74] ss:$8 sps:$4 sm:$0xff]   ;;  %1803 = vmatprep.subr.bf16.mxu0 %v7160_v6  ;;  %v7166_v10 = vld [vmem:[%s9833_s13 + $0x84] ss:$8 sps:$4 sm:$0xff]  }
 0x11a   : > { %v1473_v48 = vmul.f32 0.0052083335, %v1466_v47  ;;  %v1481_v49 = vmul.f32 %v8019_v43, %v8019_v43  ;;  %v1482_v50 = vmul.f32 %v8021_v44, %v8021_v44  ;;  %1804 = vmatpush1.bf16.msra.mxu0 %v7162_v7  ;;  %1985 = vmatprep.subr.bf16.mxu1 %v7163_v8  ;;  %9839 = vst [vmem:[#allocation44_spill] sm:$0xff] %v8081_v40  ;;  %v7198_v8 = vld [vmem:[%s9835_s27 + $0x24] ss:$8 sps:$4 sm:$0xff]  }
 0x11b   : > { %v1485_v51 = vmul.f32 %v8023_v45, %v8023_v45  ;;  %v1486_v52 = vmul.f32 %v8025_v46, %v8025_v46  ;;  %1986 = vmatpush1.bf16.msra.mxu1 %v7165_v9  ;;  %1805 = vmatprep.subr.bf16.mxu0 %v7166_v10  ;;  %v1522_v47 = vrot.slane %v1456_v39, %v8076_v38  ;;  %v7196_v10 = vld [vmem:[%s9835_s27 + $0x20] ss:$8 sps:$4 sm:$0xff]  }
 0x11c   : > { %v8036_v53 = vsub.f32 %v7990_v11, %v1473_v48  ;;  %v8039_v54 = vsub.f32 %v7992_v12, %v1473_v48  ;;  %v1487_v55 = vsel %vm1458_vm1, %v1482_v50, 0.0  ;;  %v7168_v11 = vld [vmem:[%s9833_s13 + $0x80] ss:$8 sps:$4 sm:$0xff]   ;;  %v7169_v12 = vld [vmem:[%s9834_s17 + $0x84] ss:$8 sps:$4 sm:$0xff]   ;;  %v1518_v50 = vrot.slane %v1456_v39, %v8081_v40  ;;  %s9842_s18 = scalar_lea.vmem %s9840_s8, %s7917_s28  ;;  %s9847_s13 = sld [smem:[#allocation39_spill]] }
 0x11d   : > { %v1488_v56 = vadd.f32 %v1487_v55, %v1481_v49  ;;  %v1495_v57 = vsel %vm1458_vm1, %v1486_v52, 0.0  ;;  %1987 = vmatprep.subr.bf16.mxu1 %v7169_v12  ;;  %v1457_v48 = vld [vmem:[%s1381_s24] sm:$0x3]  ;;  %v7201_v12 = vld [vmem:[%s9835_s27 + $0x34] ss:$8 sps:$4 sm:$0xff]   ;;  %s9841_s24 = sld [smem:[#allocation10_spill]] }
 0x11e   : > { %v1483_v58 = vmul.f32 %v8036_v53, %v8036_v53  ;;  %v1484_v59 = vmul.f32 %v8039_v54, %v8039_v54  ;;  %v1496_v60 = vadd.f32 %v1495_v57, %v1485_v51  ;;  %1806 = vmatpush1.bf16.msra.mxu0 %v7168_v11  ;;  %s7729_s17 = smov 16   ;;  %s9857_s8 = sld [smem:[#allocation3_spill]] }
 0x11f   : > { %1489 = vadd.xlane.f32.xlu1 %v1488_v56  ;;  %1988 = vmatpush1.bf16.msra.mxu1 %v7171_v13  ;;  %v1539_v56 = vrot.slane %v1457_v48, %v8076_v38  ;;  %v7199_v13 = vld [vmem:[%s9835_s27 + $0x30] ss:$8 sps:$4 sm:$0xff]  }
 0x120   : > { %v1491_v61 = vsel %vm1458_vm1, %v1484_v59, 0.0  ;;  %1807 = vmatprep.subr.bf16.mxu0 %v7172_v14  ;;  %1989 = vmatprep.subr.bf16.mxu1 %v7175_v15  ;;  %v7204_v14 = vld [vmem:[%s9835_s27 + $0x44] ss:$8 sps:$4 sm:$0xff]   ;;  %v7202_v15 = vld [vmem:[%s9835_s27 + $0x40] ss:$8 sps:$4 sm:$0xff]  }
 0x121   : > { %v1492_v62 = vadd.f32 %v1491_v61, %v1483_v58 }
 0x122   : > { %1808 = vmatpush1.bf16.msra.mxu0 %v7174_v16  ;;  %v7207_v16 = vld [vmem:[%s9835_s27 + $0x54] ss:$8 sps:$4 sm:$0xff]  }
 0x123   : > { %1497 = vadd.xlane.f32.xlu1 %v1496_v60  ;;  %1493 = vadd.xlane.f32.xlu0 %v1492_v62  ;;  %v1535_v60 = vrot.slane %v1457_v48, %v8081_v40  ;;  %s9843_s0 = scalar_lea.vmem %s9841_s24, %s7917_s28  ;;  %s9858_s24 = sld [smem:[#allocation40_spill]] }
 0x124   : > { %1990 = vmatpush1.bf16.msra.mxu1 %v7177_v17  ;;  %1809 = vmatprep.subr.bf16.mxu0 %v7178_v18  ;;  %v7205_v17 = vld [vmem:[%s9835_s27 + $0x50] ss:$8 sps:$4 sm:$0xff]   ;;  %v7210_v18 = vld [vmem:[%s9835_s27 + $0x64] ss:$8 sps:$4 sm:$0xff]  }
 0x125   : > { %1991 = vmatprep.subr.bf16.mxu1 %v7181_v19  ;;  %v7208_v19 = vld [vmem:[%s9835_s27 + $0x60] ss:$8 sps:$4 sm:$0xff]  }
 0x126   : > { %1810 = vmatpush1.bf16.msra.mxu0 %v7180_v20  ;;  %v7213_v20 = vld [vmem:[%s9835_s27 + $0x74] ss:$8 sps:$4 sm:$0xff]  }
 0x127   : > { %1811 = vmatprep.subr.bf16.mxu0 %v7184_v22  ;;  %v7216_v22 = vld [vmem:[%s9835_s27 + $0x84] ss:$8 sps:$4 sm:$0xff]  }
 0x128   : > { %1992 = vmatpush1.bf16.msra.mxu1 %v7183_v21  ;;  %v7211_v21 = vld [vmem:[%s9835_s27 + $0x70] ss:$8 sps:$4 sm:$0xff]  }
 0x129   : > { %1993 = vmatprep.subr.bf16.mxu1 %v7187_v23  ;;  %v7214_v23 = vld [vmem:[%s9835_s27 + $0x80] ss:$8 sps:$4 sm:$0xff]  }
 0x12a   : > { %1812 = vmatpush1.bf16.msra.mxu0 %v7186_v24  ;;  %v7219_v24 = vld [vmem:[%s9835_s27 + $0x94] ss:$8 sps:$4 sm:$0xff]  }
 0x12b   : > { %2153 = vmatprep.subr.bf16.mxu0 %v7192_v26  ;;  %v7222_v26 = vld [vmem:[%s9835_s27 + $0xa4] ss:$8 sps:$4 sm:$0xff]  }
 0x12c   : > { %1994 = vmatpush1.bf16.msra.mxu1 %v7189_v25  ;;  %v7217_v25 = vld [vmem:[%s9835_s27 + $0x90] ss:$8 sps:$4 sm:$0xff]  }
 0x1ac   : > { %v1490_v27 = vpop.xlane.xlu1 %1489 }
 0x1ad   : > { %v1499_v28 = vmul.f32 0.0052083335, %v1490_v27  ;;  %v7220_v27 = vld [vmem:[%s9835_s27 + $0xa0] ss:$8 sps:$4 sm:$0xff]  }
 0x1af   : > { %v1502_v29 = vadd.f32 1e-05, %v1499_v28  ;;  %v7225_v28 = vld [vmem:[%s9835_s27 + $0xb4] ss:$8 sps:$4 sm:$0xff]  }
 0x1b0   : > { %v1498_v30 = vpop.xlane.xlu1 %1497  ;;  %v1494_v31 = vpop.xlane.xlu0 %1493 }
 0x1b1   : > { %7520 = vrsqrt.f32 %v1502_v29  ;;  %v1501_v33 = vmul.f32 0.0052083335, %v1498_v30  ;;  %v1500_v34 = vmul.f32 0.0052083335, %v1494_v31  ;;  %v7223_v29 = vld [vmem:[%s9835_s27 + $0xb0] ss:$8 sps:$4 sm:$0xff]  }
 0x1b2   : > { %v1621_v30 = vld [vmem:[%s9842_s18] sm:$0x3]  ;;  %s9859_s18 = sld [smem:[#allocation42_spill]] }
 0x1b3   : > { %v1504_v35 = vadd.f32 1e-05, %v1501_v33  ;;  %v1503_v36 = vadd.f32 1e-05, %v1500_v34  ;;  %v1620_v31 = vld [vmem:[%s9843_s0] sm:$0x3]  ;;  %v1848_v32 = vrot.slane %v1621_v30, %v8076_v38  ;;  %v1844_v34 = vrot.slane %v1621_v30, %v8081_v40 }
 0x1b4   : > { %v1656_v33 = vrot.slane %v1620_v31, %v8081_v40  ;;  %v8135_v37 = vrot.slane %v1620_v31, %v8076_v38  ;;  %v8187_v30 = vld [vmem:[%s9846_s26] sm:$0xff]  ;;  %s9860_s0 = sld [smem:[#allocation19_spill]] }
 0x1b5   : > { %7522 = vrsqrt.f32 %v1504_v35 }
 0x1b6   : > { %7524 = vrsqrt.f32 %v1503_v36 }
 0x1ba   : > { %s9861_s22 = scalar_lea.vmem %s9860_s0, %s7917_s28 }
 0x1bb   : > { %v7521_v41 = vpop.eup %7520 }
 0x1bc   : > { %v1509_v42 = vmul.f32 %v7521_v41, %v8021_v44  ;;  %v1508_v49 = vmul.f32 %v7521_v41, %v8019_v43 }
 0x1be   : > { %v1526_v55 = vmul.f32 %v1522_v47, %v1509_v42  ;;  %v1525_v59 = vmul.f32 %v1518_v50, %v1508_v49 }
 0x1bf   : > { %v7523_v51 = vpop.eup %7522 }
 0x1c0   : > { %v7525_v52 = vpop.eup %7524  ;;  %v1513_v57 = vmul.f32 %v7523_v51, %v8025_v46  ;;  %v1543_v63 = vadd.f32 %v1539_v56, %v1526_v55  ;;  %v1512_v0 = vmul.f32 %v7523_v51, %v8023_v45  ;;  %v1542_v2 = vadd.f32 %v1535_v60, %v1525_v59  ;;  %v7193_v45 = vld [vmem:[%s9835_s27 + $0x10] ss:$8 sps:$4 sm:$0xff]  }
 0x1c1   : > { %v1511_v58 = vmul.f32 %v7525_v52, %v8039_v54  ;;  %v1510_v44 = vmul.f32 %v7525_v52, %v8036_v53  ;;  %v7190_v54 = vld [vmem:[%s9835_s27] ss:$8 sps:$4 sm:$0xff]   ;;  %v7195_v53 = vld [vmem:[%s9835_s27 + $0x14] ss:$8 sps:$4 sm:$0xff]   ;;  %s9848_s27 = sld [smem:[#allocation14_spill]] }
 0x1c2   : > { %v1530_v61 = vmul.f32 %v1522_v47, %v1513_v57  ;;  %v1529_v6 = vmul.f32 %v1518_v50, %v1512_v0 }
 0x1c3   : > { %v1528_v43 = vmul.f32 %v1522_v47, %v1511_v58  ;;  %v1527_v62 = vmul.f32 %v1518_v50, %v1510_v44 }
 0x1c4   : > { %v1547_v4 = vadd.f32 %v1539_v56, %v1530_v61  ;;  %v1546_v9 = vadd.f32 %v1535_v60, %v1529_v6 }
 0x1c5   : > { %v1545_v1 = vadd.f32 %v1539_v56, %v1528_v43  ;;  %v1544_v3 = vadd.f32 %v1535_v60, %v1527_v62 }
 0x1c6   : > { %v1651_v7 = vpack.c.bf16 %v1547_v4, %v1547_v4  ;;  %v1650_v11 = vpack.c.bf16 %v1546_v9, %v1546_v9  ;;  %v1622_v9 = vld [vmem:[%s9845_s23] sm:$0x3] }
 0x1c7   : > { %v1649_v46 = vpack.c.bf16 %v1545_v1, %v1543_v63  ;;  %v1648_v5 = vpack.c.bf16 %v1544_v3, %v1542_v2  ;;  %s9849_s15 = scalar_lea.vmem %s9848_s27, %s7917_s28  ;;  %s9867_s27 = scalar_lea.vmem %s7824_s4, %s7917_s28 }
 0x1c9   : > { %6602 = vmatprep.mubr.msk.bf16.mxu0 %vm1458_vm1, %v1649_v46  ;;  %6628 = vmatprep.mubr.msk.bf16.mxu1 %vm1458_vm1, %v1649_v46 }
 0x1ca   : > { %1822 = vmatmul.mubr.bf16.vlgmr.msra.gmra.mrb[0].mxu0 %v1648_v5  ;;  %2004 = vmatmul.mubr.bf16.vlgmr.msra.gmra.mrb[0].mxu1 %v1648_v5 }
 0x1cb   : > { %2154 = vmatpush1.bf16.msra.mxu0 %v7190_v54  ;;  %6603 = vmatprep.mubr.msk.bf16.mxu0 %vm1458_vm1, %v1651_v7 }
 0x1cc   : > { %6629 = vmatprep.mubr.msk.bf16.mxu1 %vm1458_vm1, %v1651_v7  ;;  %2155 = vmatprep.subr.bf16.mxu0 %v7195_v53 }
 0x1cf   : > { %2156 = vmatpush1.bf16.msra.mxu0 %v7193_v45 }
 0x1d0   : > { %2157 = vmatprep.subr.bf16.mxu0 %v7198_v8 }
 0x1d2   : > { %1832 = vmatmul.mubr.bf16.gmra.mrb[4].mxu0 %v1650_v11  ;;  %2014 = vmatmul.mubr.bf16.gmra.mrb[4].mxu1 %v1650_v11 }
 0x1d3   : > { %2158 = vmatpush1.bf16.msra.mxu0 %v7196_v10  ;;  %6654 = vmatprep.mubr.msk.bf16.mxu0 %vm1458_vm1, %v1649_v46  ;;  %v2030_v10 = vrot.slane %v1622_v9, %v8076_v38 }
 0x1d4   : > { %2159 = vmatprep.subr.bf16.mxu0 %v7201_v12 }
 0x1d7   : > { %2160 = vmatpush1.bf16.msra.mxu0 %v7199_v13 }
 0x1d8   : > { %2161 = vmatprep.subr.bf16.mxu0 %v7204_v14 }
 0x1db   : > { %2162 = vmatpush1.bf16.msra.mxu0 %v7202_v15 }
 0x1dc   : > { %2163 = vmatprep.subr.bf16.mxu0 %v7207_v16 }
 0x1df   : > { %2164 = vmatpush1.bf16.msra.mxu0 %v7205_v17 }
 0x1e0   : > { %2165 = vmatprep.subr.bf16.mxu0 %v7210_v18 }
 0x1e3   : > { %2166 = vmatpush1.bf16.msra.mxu0 %v7208_v19 }
 0x1e4   : > { %2167 = vmatprep.subr.bf16.mxu0 %v7213_v20 }
 0x1e7   : > { %2168 = vmatpush1.bf16.msra.mxu0 %v7211_v21 }
 0x1e8   : > { %2169 = vmatprep.subr.bf16.mxu0 %v7216_v22 }
 0x1eb   : > { %2170 = vmatpush1.bf16.msra.mxu0 %v7214_v23 }
 0x1ec   : > { %2171 = vmatprep.subr.bf16.mxu0 %v7219_v24 }
 0x1ef   : > { %2172 = vmatpush1.bf16.msra.mxu0 %v7217_v25 }
 0x1f0   : > { %2173 = vmatprep.subr.bf16.mxu0 %v7222_v26 }
 0x1f3   : > { %2174 = vmatpush1.bf16.msra.mxu0 %v7220_v27 }
 0x1f4   : > { %2175 = vmatprep.subr.bf16.mxu0 %v7225_v28 }
 0x1f7   : > { %2176 = vmatpush1.bf16.msra.mxu0 %v7223_v29 }
 0x1fa   : > { %2186 = vmatmul.mubr.bf16.vlgmr.msra.gmra.mrb[8].mxu0 %v1648_v5 }
 0x1fb   : > { %6655 = vmatprep.mubr.msk.bf16.mxu0 %vm1458_vm1, %v1651_v7 }
 0x202   : > { %2196 = vmatmul.mubr.bf16.gmra.mrb[12].mxu0 %v1650_v11  ;;  %v2026_v11 = vrot.slane %v1622_v9, %v8081_v40 }
 0x29d   : > { %v1823_v35 = vpop.f32.mrb[0].mxu0  ;;  %v2005_v36 = vpop.f32.mrb[0].mxu1 }
 0x29e   : > { %v1825_v39 = vpop.f32.mrb[1].mxu0  ;;  %v2007_v41 = vpop.f32.mrb[1].mxu1  ;;  %v1824_v49 = vadd.f32 %v1823_v35, %v1656_v33  ;;  %v2006_v50 = vadd.f32 %v2005_v36, %v1844_v34 }
 0x29f   : > { %v2008_v42 = vadd.f32 %v2007_v41, %v1848_v32  ;;  %v1827_v47 = vpop.f32.mrb[2].mxu0  ;;  %v2009_v48 = vpop.f32.mrb[2].mxu1  ;;  %v1826_v57 = vadd.f32 %v1825_v39, %v8135_v37 }
 0x2a0   : > { %v1828_v51 = vadd.f32 %v1827_v47, %v1656_v33  ;;  %v2010_v52 = vadd.f32 %v2009_v48, %v1844_v34  ;;  %v1829_v55 = vpop.f32.mrb[3].mxu0  ;;  %v2011_v56 = vpop.f32.mrb[3].mxu1 }
 0x2a1   : > { %v1830_v58 = vadd.f32 %v1829_v55, %v8135_v37  ;;  %v2012_v44 = vadd.f32 %v2011_v56, %v1848_v32 }
 0x2a2   : > { %v8139_v59 = vpack.c.bf16 %v1828_v51, %v1824_v49  ;;  %v8141_v60 = vpack.c.bf16 %v2010_v52, %v2006_v50 }
 0x2a3   : > { %v8143_v61 = vpack.c.bf16 %v1830_v58, %v1826_v57  ;;  %v8145_v43 = vpack.c.bf16 %v2012_v44, %v2008_v42 }
 0x2a4   : > { %7014 = vmatprep.subr.msk.bf16.mxu0 %vm2210_vm2, %v8141_v60  ;;  %6954 = vmatprep.mubr.msk.bf16.mxu0 %vm2210_vm2, %v8139_v59  ;;  %v2218_v62 = vsel %vm2210_vm2, %v8141_v60, 0 }
 0x2a5   : > { %v1833_v63 = vpop.f32.mrb[4].mxu0  ;;  %v2015_v0 = vpop.f32.mrb[4].mxu1  ;;  %6951 = vmatpush3.bf16.xpose.msra.mxu0 %v2218_v62 }
 0x2a6   : > { %v2016_v1 = vadd.f32 %v2015_v0, %v1844_v34  ;;  %v8153_v2 = vpop.f32.mrb[5].mxu0  ;;  %v2017_v3 = vpop.f32.mrb[5].mxu1  ;;  %v1834_v45 = vadd.f32 %v1833_v63, %v1656_v33  ;;  %v8193_v34 = vld [vmem:[%s9846_s26 + $0x8] sm:$0xff] }
 0x2a7   : > { %v8155_v4 = vadd.f32 %v2017_v3, %v1848_v32  ;;  %v1837_v46 = vpop.f32.mrb[6].mxu0  ;;  %v2019_v54 = vpop.f32.mrb[6].mxu1  ;;  %v8190_v32 = vld [vmem:[%s9846_s26 + $0x10] sm:$0xff] }
 0x2a8   : > { %v8157_v5 = vpack.c.bf16 %v2016_v1, %v2016_v1  ;;  %v1838_v53 = vpop.f32.mrb[7].mxu0  ;;  %v2020_v6 = vpop.f32.mrb[7].mxu1  ;;  %v8163_v8 = vpack.c.bf16 %v1834_v45, %v1834_v45 }
 0x2a9   : > { %v8222_v53 = vpack.c.bf16 %v8155_v4, %v8155_v4 }
 0x2aa   : > { %7015 = vmatprep.subr.msk.bf16.mxu0 %vm2210_vm2, %v8157_v5  ;;  %v2221_v7 = vsel %vm2210_vm2, %v8157_v5, 0 }
 0x2ad   : > { %6953 = vmatpush3.bf16.xpose.msra.mxu0 %v2221_v7 }
 0x2b4   : > { %6955 = vmatmul.mubr.msk.bf16.vlgmr.msra.gmra.mrb[16].mxu0 %vm2210_vm2, %v8163_v8 }
 0x2cd   : > { %v2187_v12 = vpop.f32.mrb[8].mxu0 }
 0x2ce   : > { %v2189_v13 = vpop.f32.mrb[9].mxu0  ;;  %v2188_v16 = vadd.f32 %v2187_v12, %v2026_v11 }
 0x2cf   : > { %v2190_v14 = vadd.f32 %v2189_v13, %v2030_v10  ;;  %v2191_v15 = vpop.f32.mrb[10].mxu0 }
 0x2d0   : > { %v2192_v17 = vadd.f32 %v2191_v15, %v2026_v11  ;;  %v2193_v18 = vpop.f32.mrb[11].mxu0 }
 0x2d1   : > { %v2194_v19 = vadd.f32 %v2193_v18, %v2030_v10 }
 0x2d2   : > { %v8172_v20 = vpack.c.bf16 %v2192_v17, %v2188_v16 }
 0x2d3   : > { %v8174_v21 = vpack.c.bf16 %v2194_v19, %v2190_v14 }
 0x2d4   : > { %6958 = vmatprep.subr.bf16.mxu1 %v8172_v20 }
 0x2d5   : > { %v2197_v22 = vpop.f32.mrb[12].mxu0  ;;  %6959 = vmatpush3.bf16.msra.mxu1 %v8172_v20 }
 0x2d6   : > { %v2198_v23 = vadd.f32 %v2197_v22, %v2026_v11  ;;  %v2199_v24 = vpop.f32.mrb[13].mxu0 }
 0x2d7   : > { %v8178_v25 = vadd.f32 %v2199_v24, %v2030_v10  ;;  %v2201_v26 = vpop.f32.mrb[14].mxu0 }
 0x2d8   : > { %v8180_v27 = vpack.c.bf16 %v2198_v23, %v2198_v23  ;;  %v2202_v28 = vpop.f32.mrb[15].mxu0 }
 0x2da   : > { %7016 = vmatprep.subr.msk.bf16.mxu1 %vm2313_vm3, %v8180_v27  ;;  %v2315_v29 = vsel %vm2313_vm3, %v8180_v27, 0 }
 0x2db   : > { %6961 = vmatpush3.bf16.msra.mxu1 %v2315_v29 }
 0x387   : > { %v6956_v31 = vpop.f32.mrb[16].mxu0 }
 0x388   : > { %v2257_v33 = vpop.f32.mrb[17].mxu0  ;;  %v2266_v41 = vadd.f32 %v6956_v31, %v8190_v32 }
 0x389   : > { %v2258_v35 = vadd.f32 %v2257_v33, %v8187_v30  ;;  %v6957_v36 = vpop.f32.mrb[18].mxu0 }
 0x38a   : > { %v2260_v39 = vpop.f32.mrb[19].mxu0  ;;  %v2278_v49 = vsel %vm2271_vm4, %v2266_v41, -inf }
 0x38b   : > { %v2261_v42 = vadd.f32 %v2260_v39, %v8193_v34  ;;  %v2272_v47 = vsel %vm2271_vm4, %v2258_v35, -inf }
 0x38c   : > { %2273 = vmax.xlane.f32.xlu0 %v2272_v47 }
 0x38d   : > { %v2275_v48 = vsel %vm2271_vm4, %v2261_v42, -inf }
 0x38e   : > { %2276 = vmax.xlane.f32.xlu1 %v2275_v48 }
 0x390   : > { %2279 = vmax.xlane.f32.xlu0 %v2278_v49 }
 0x419   : > { %v2274_v50 = vpop.xlane.xlu0 %2273 }
 0x41a   : > { %v2281_v52 = vsub.f32 %v2258_v35, %v2274_v50 }
 0x41b   : > { %v2277_v51 = vpop.xlane.xlu1 %2276 }
 0x41c   : > { %v2282_v55 = vsub.f32 %v2261_v42, %v2277_v51  ;;  %v2284_v44 = vmul.f32 1.442695, %v2281_v52 }
 0x41d   : > { %v2280_v56 = vpop.xlane.xlu0 %2279 }
 0x41e   : > { %v2286_v57 = vmul.f32 1.442695, %v2282_v55  ;;  %v2283_v58 = vsub.f32 %v2266_v41, %v2280_v56 }
 0x420   : > { %7526 = vpow2.f32 %v2286_v57  ;;  %v2288_v62 = vmul.f32 1.442695, %v2283_v58 }
 0x422   : > { %7528 = vpow2.f32 %v2288_v62 }
 0x423   : > { %7530 = vpow2.f32 %v2284_v44 }
 0x42a   : > { %v7527_v63 = vpop.eup %7526 }
 0x42b   : > { %v2293_v0 = vsel %vm2271_vm4, %v7527_v63, 0.0 }
 0x42c   : > { %v7529_v1 = vpop.eup %7528  ;;  %2294 = vadd.xlane.f32.xlu0 %v2293_v0 }
 0x42d   : > { %v2296_v3 = vsel %vm2271_vm4, %v7529_v1, 0.0  ;;  %v7531_v46 = vpop.eup %7530 }
 0x42e   : > { %2297 = vadd.xlane.f32.xlu1 %v2296_v3  ;;  %v2290_v54 = vsel %vm2271_vm4, %v7531_v46, 0.0 }
 0x432   : > { %2291 = vadd.xlane.f32.xlu1 %v2290_v54 }
 0x442   : > { %2373 = vrot.lane.b32.xlu0 %v8141_v60, %s7724_s1 }
 0x443   : > { %2375 = vrot.lane.b32.xlu1 %v8157_v5, %s7724_s1 }
 0x446   : > { %2367 = vrot.lane.b32.xlu0 %v8139_v59, %s7724_s1 }
 0x447   : > { %2557 = vrot.lane.b32.xlu1 %v8141_v60, %s7725_s2  ;;  %v1836_v60 = vadd.f32 %v8153_v2, %v8135_v37 }
 0x44a   : > { %2561 = vrot.lane.b32.xlu0 %v8157_v5, %s7725_s2 }
 0x44b   : > { %2559 = vrot.lane.b32.xlu1 %v8145_v43, %s7725_s2 }
 0x44e   : > { %2544 = vrot.lane.b32.xlu0 %v8139_v59, %s7725_s2  ;;  %v8232_v59 = vpack.c.bf16 %v1836_v60, %v1836_v60 }
 0x44f   : > { %2369 = vrot.lane.b32.xlu1 %v8163_v8, %s7724_s1 }
 0x452   : > { %2548 = vrot.lane.b32.xlu0 %v8163_v8, %s7725_s2 }
 0x453   : > { %2563 = vrot.lane.b32.xlu1 %v8222_v53, %s7725_s2 }
 0x457   : > { %2546 = vrot.lane.b32.xlu1 %v8143_v61, %s7725_s2 }
 0x45b   : > { %2550 = vrot.lane.b32.xlu1 %v8232_v59, %s7725_s2 }
 0x4b9   : > { %v2295_v5 = vpop.xlane.xlu0 %2294 }
 0x4bb   : > { %v2298_v4 = vpop.xlane.xlu1 %2297 }
 0x4bc   : > { %7532 = vrcp.f32 %v2298_v4 }
 0x4bd   : > { %v2374_v6 = vpop.permute.xlu0 %2373  ;;  %7534 = vrcp.f32 %v2295_v5 }
 0x4be   : > { %7017 = vmatprep.subr.msk.bf16.mxu1 %vm2210_vm2, %v2374_v6  ;;  %v2384_v23 = vsel %vm2210_vm2, %v2374_v6, 0 }
 0x4bf   : > { %v2292_v7 = vpop.xlane.xlu1 %2291 }
 0x4c0   : > { %7536 = vrcp.f32 %v2292_v7 }
 0x4c1   : > { %v2368_v9 = vpop.permute.xlu0 %2367 }
 0x4c3   : > { %v2376_v45 = vpop.permute.xlu1 %2375 }
 0x4c4   : > { %v2387_v35 = vsel %vm2210_vm2, %v2376_v45, 0 }
 0x4c5   : > { %v2562_v19 = vpop.permute.xlu0 %2561 }
 0x4c6   : > { %v7533_v8 = vpop.eup %7532 }
 0x4c7   : > { %v2558_v37 = vpop.permute.xlu1 %2557  ;;  %v7535_v2 = vpop.eup %7534  ;;  %v2304_v11 = vmul.f32 %v7533_v8, %v7529_v1 }
 0x4c8   : > { %v2303_v14 = vmul.f32 %v7535_v2, %v7527_v63 }
 0x4c9   : > { %v2306_v18 = vpack.c.bf16 %v2304_v11, %v2304_v11  ;;  %v2545_v28 = vpop.permute.xlu0 %2544 }
 0x4ca   : > { %v7537_v10 = vpop.eup %7536 }
 0x4cb   : > { %v2560_v12 = vpop.permute.xlu1 %2559  ;;  %v2302_v13 = vmul.f32 %v7537_v10, %v7531_v46 }
 0x4cc   : > { %v2565_v15 = vsel %vm2552_vm5, %v2558_v37, %v2560_v12 }
 0x4cd   : > { %v2574_v16 = vsel %vm2210_vm2, %v2565_v15, 0  ;;  %7020 = vmatprep.subr.msk.bf16.mxu0 %vm2210_vm2, %v2565_v15  ;;  %v2305_v17 = vpack.c.bf16 %v2303_v14, %v2302_v13  ;;  %v2549_v36 = vpop.permute.xlu0 %2548 }
 0x4ce   : > { %6983 = vmatpush3.bf16.xpose.msra.mxu0 %v2574_v16 }
 0x4cf   : > { %v2370_v22 = vpop.permute.xlu1 %2369  ;;  %6962 = vmatprep.mubr.msk.bf16.mxu1 %vm2271_vm4, %v2305_v17 }
 0x4d0   : > { %6963 = vmatmul.mubr.msk.bf16.vlgmr.msra.gmra.mrb[8].mxu1 %vm2271_vm4, %v2306_v18 }
 0x4d1   : > { %6967 = vmatpush3.bf16.xpose.msra.mxu1 %v2384_v23  ;;  %6970 = vmatprep.mubr.msk.bf16.mxu1 %vm2210_vm2, %v2368_v9 }
 0x4d2   : > { %7018 = vmatprep.subr.msk.bf16.mxu1 %vm2210_vm2, %v2376_v45 }
 0x4d3   : > { %v2564_v24 = vpop.permute.xlu1 %2563 }
 0x4d4   : > { %v2566_v26 = vsel %vm2552_vm5, %v2562_v19, %v2564_v24 }
 0x4d5   : > { %v2577_v29 = vsel %vm2210_vm2, %v2566_v26, 0  ;;  %7021 = vmatprep.subr.msk.bf16.mxu0 %vm2210_vm2, %v2566_v26 }
 0x4d6   : > { %6985 = vmatpush3.bf16.xpose.msra.mxu0 %v2577_v29 }
 0x4d7   : > { %v2547_v31 = vpop.permute.xlu1 %2546 }
 0x4d8   : > { %v2553_v33 = vsel %vm2552_vm5, %v2545_v28, %v2547_v31 }
 0x4d9   : > { %6969 = vmatpush3.bf16.xpose.msra.mxu1 %v2387_v35  ;;  %6986 = vmatprep.mubr.msk.bf16.mxu0 %vm2210_vm2, %v2553_v33 }
 0x4db   : > { %v2551_v39 = vpop.permute.xlu1 %2550 }
 0x4dc   : > { %v2554_v41 = vsel %vm2552_vm5, %v2549_v36, %v2551_v39 }
 0x4dd   : > { %6987 = vmatmul.mubr.msk.bf16.vlgmr.msra.gmra.mrb[20].mxu0 %vm2210_vm2, %v2554_v41 }
 0x4e0   : > { %6971 = vmatmul.mubr.msk.bf16.vlgmr.msra.gmra.mrb[12].mxu1 %vm2210_vm2, %v2370_v22 }
 0x5a3   : > { %v8254_v42 = vpop.f32.mrb[8].mxu1 }
 0x5a4   : > { %v8256_v47 = vpop.f32.mrb[9].mxu1 }
 0x5a5   : > { %v6965_v48 = vpop.f32.mrb[10].mxu1 }
 0x5a6   : > { %v8258_v49 = vpop.f32.mrb[11].mxu1 }
 0x5b0   : > { %v6988_v50 = vpop.f32.mrb[20].mxu0 }
 0x5b1   : > { %v2613_v51 = vpop.f32.mrb[21].mxu0  ;;  %v2622_v3 = vadd.f32 %v6988_v50, %v8190_v32 }
 0x5b2   : > { %v6989_v52 = vpop.f32.mrb[22].mxu0  ;;  %v2614_v54 = vadd.f32 %v2613_v51, %v8187_v30 }
 0x5b3   : > { %v6972_v55 = vpop.f32.mrb[12].mxu1  ;;  %v2616_v56 = vpop.f32.mrb[23].mxu0  ;;  %v2633_v5 = vsel %vm2271_vm4, %v2622_v3, -inf }
 0x5b4   : > { %v2423_v57 = vpop.f32.mrb[13].mxu1  ;;  %v2432_v63 = vadd.f32 %v6972_v55, %v8190_v32  ;;  %v2617_v4 = vadd.f32 %v2616_v56, %v8193_v34  ;;  %v2627_v6 = vsel %vm2271_vm4, %v2614_v54, -inf }
 0x5b5   : > { %v2424_v58 = vadd.f32 %v2423_v57, %v8187_v30  ;;  %v6973_v44 = vpop.f32.mrb[14].mxu1 }
 0x5b6   : > { %v2426_v62 = vpop.f32.mrb[15].mxu1  ;;  %v2443_v60 = vsel %vm2271_vm4, %v2432_v63, -inf  ;;  %v2630_v7 = vsel %vm2271_vm4, %v2617_v4, -inf }
 0x5b7   : > { %v2427_v0 = vadd.f32 %v2426_v62, %v8193_v34  ;;  %v2437_v1 = vsel %vm2271_vm4, %v2424_v58, -inf }
 0x5b8   : > { %2438 = vmax.xlane.f32.xlu0 %v2437_v1 }
 0x5b9   : > { %v2440_v46 = vsel %vm2271_vm4, %v2427_v0, -inf }
 0x5ba   : > { %2441 = vmax.xlane.f32.xlu1 %v2440_v46 }
 0x5bc   : > { %2444 = vmax.xlane.f32.xlu0 %v2443_v60 }
 0x5be   : > { %2634 = vmax.xlane.f32.xlu1 %v2633_v5 }
 0x5c0   : > { %2628 = vmax.xlane.f32.xlu0 %v2627_v6 }
 0x5c4   : > { %2631 = vmax.xlane.f32.xlu0 %v2630_v7 }
 0x645   : > { %v2439_v45 = vpop.xlane.xlu0 %2438 }
 0x646   : > { %v2446_v17 = vsub.f32 %v2424_v58, %v2439_v45 }
 0x647   : > { %v2442_v8 = vpop.xlane.xlu1 %2441 }
 0x648   : > { %v2449_v22 = vmul.f32 1.442695, %v2446_v17  ;;  %v2447_v41 = vsub.f32 %v2427_v0, %v2442_v8 }
 0x649   : > { %v2445_v37 = vpop.xlane.xlu0 %2444 }
 0x64a   : > { %v2448_v12 = vsub.f32 %v2432_v63, %v2445_v37  ;;  %v2451_v48 = vmul.f32 1.442695, %v2447_v41 }
 0x64b   : > { %v2635_v2 = vpop.xlane.xlu1 %2634 }
 0x64c   : > { %v2638_v9 = vsub.f32 %v2622_v3, %v2635_v2  ;;  %v2453_v18 = vmul.f32 1.442695, %v2448_v12 }
 0x64d   : > { %v2629_v10 = vpop.xlane.xlu0 %2628 }
 0x64e   : > { %v2636_v11 = vsub.f32 %v2614_v54, %v2629_v10  ;;  %v2643_v13 = vmul.f32 1.442695, %v2638_v9 }
 0x650   : > { %v2639_v14 = vmul.f32 1.442695, %v2636_v11 }
 0x651   : > { %v2632_v15 = vpop.xlane.xlu0 %2631 }
 0x652   : > { %7538 = vpow2.f32 %v2639_v14  ;;  %v2637_v16 = vsub.f32 %v2617_v4, %v2632_v15 }
 0x653   : > { %7540 = vpow2.f32 %v2643_v13 }
 0x654   : > { %v2641_v19 = vmul.f32 1.442695, %v2637_v16 }
 0x656   : > { %7542 = vpow2.f32 %v2641_v19 }
 0x657   : > { %7544 = vpow2.f32 %v2453_v18 }
 0x658   : > { %7546 = vpow2.f32 %v2449_v22 }
 0x659   : > { %7548 = vpow2.f32 %v2451_v48 }
 0x65c   : > { %v8272_v23 = vpop.eup %7538 }
 0x65d   : > { %v2645_v24 = vsel %vm2271_vm4, %v8272_v23, 0.0  ;;  %v8276_v26 = vpop.eup %7540 }
 0x65e   : > { %2646 = vadd.xlane.f32.xlu1 %v2645_v24  ;;  %v2651_v29 = vsel %vm2271_vm4, %v8276_v26, 0.0 }
 0x660   : > { %v7543_v28 = vpop.eup %7542 }
 0x661   : > { %v2648_v31 = vsel %vm2271_vm4, %v7543_v28, 0.0  ;;  %v7545_v33 = vpop.eup %7544 }
 0x662   : > { %2652 = vadd.xlane.f32.xlu1 %v2651_v29  ;;  %2649 = vadd.xlane.f32.xlu0 %v2648_v31  ;;  %v2461_v35 = vsel %vm2271_vm4, %v7545_v33, 0.0  ;;  %v7547_v36 = vpop.eup %7546 }
 0x663   : > { %v2455_v39 = vsel %vm2271_vm4, %v7547_v36, 0.0  ;;  %v7549_v50 = vpop.eup %7548 }
 0x664   : > { %v2458_v51 = vsel %vm2271_vm4, %v7549_v50, 0.0 }
 0x666   : > { %2462 = vadd.xlane.f32.xlu0 %v2461_v35 }
 0x66a   : > { %2456 = vadd.xlane.f32.xlu0 %v2455_v39 }
 0x673   : > { %2476 = vrot.lane.b32.xlu1 %v8180_v27, %s7724_s1 }
 0x677   : > { %2664 = vrot.lane.b32.xlu1 %v8172_v20, %s7725_s2 }
 0x67b   : > { %2666 = vrot.lane.b32.xlu1 %v8174_v21, %s7725_s2 }
 0x680   : > { %2474 = vrot.lane.b32.xlu0 %v8172_v20, %s7724_s1  ;;  %v8300_v20 = vpack.c.bf16 %v8178_v25, %v8178_v25 }
 0x684   : > { %2668 = vrot.lane.b32.xlu0 %v8180_v27, %s7725_s2 }
 0x688   : > { %2736 = vrot.lane.b32.xlu0 %v8145_v43, %s7726_s7 }
 0x68c   : > { %2732 = vrot.lane.b32.xlu0 %v8143_v61, %s7726_s7 }
 0x69f   : > { %2459 = vadd.xlane.f32.xlu1 %v2458_v51 }
 0x6b0   : > { %2670 = vrot.lane.b32.xlu1 %v8300_v20, %s7725_s2 }
 0x6b4   : > { %2738 = vrot.lane.b32.xlu1 %v8222_v53, %s7726_s7 }
 0x6b8   : > { %2734 = vrot.lane.b32.xlu1 %v8232_v59, %s7726_s7 }
 0x6eb   : > { %v2647_v61 = vpop.xlane.xlu1 %2646 }
 0x6ef   : > { %v2653_v43 = vpop.xlane.xlu1 %2652  ;;  %v2650_v27 = vpop.xlane.xlu0 %2649 }
 0x6f0   : > { %7550 = vrcp.f32 %v2650_v27 }
 0x6f3   : > { %v2477_v52 = vpop.permute.xlu1 %2476  ;;  %v2463_v55 = vpop.xlane.xlu0 %2462 }
 0x6f4   : > { %v2486_v44 = vsel %vm2313_vm3, %v2477_v52, 0  ;;  %7552 = vrcp.f32 %v2463_v55 }
 0x6f7   : > { %v2457_v56 = vpop.xlane.xlu0 %2456  ;;  %v2665_v57 = vpop.permute.xlu1 %2664 }
 0x6f8   : > { %7554 = vrcp.f32 %v2457_v56 }
 0x6f9   : > { %7556 = vrcp.f32 %v2647_v61 }
 0x6fa   : > { %v7551_v62 = vpop.eup %7550 }
 0x6fb   : > { %v2475_v58 = vpop.permute.xlu0 %2474  ;;  %v2667_v25 = vpop.permute.xlu1 %2666  ;;  %v2658_v5 = vmul.f32 %v7551_v62, %v7543_v28 }
 0x6fc   : > { %6974 = vmatprep.subr.bf16.mxu1 %v2475_v58  ;;  %v2672_v53 = vsel %vm2552_vm5, %v2665_v57, %v2667_v25 }
 0x6fd   : > { %6975 = vmatpush3.bf16.msra.mxu1 %v2475_v58 }
 0x6fe   : > { %7019 = vmatprep.subr.msk.bf16.mxu1 %vm2313_vm3, %v2477_v52  ;;  %v7553_v63 = vpop.eup %7552 }
 0x6ff   : > { %v2469_v46 = vmul.f32 %v7553_v63, %v7545_v33  ;;  %v2669_v4 = vpop.permute.xlu0 %2668 }
 0x701   : > { %6977 = vmatpush3.bf16.msra.mxu1 %v2486_v44  ;;  %v2471_v8 = vpack.c.bf16 %v2469_v46, %v2469_v46 }
 0x702   : > { %6990 = vmatprep.subr.bf16.mxu1 %v2672_v53  ;;  %v7555_v0 = vpop.eup %7554 }
 0x703   : > { %v7557_v1 = vpop.eup %7556  ;;  %v2467_v54 = vmul.f32 %v7555_v0, %v7547_v36  ;;  %v2737_v10 = vpop.permute.xlu0 %2736 }
 0x704   : > { %v2657_v7 = vmul.f32 %v7557_v1, %v8272_v23  ;;  %v2747_v15 = vsel %vm2210_vm2, %v2737_v10, 0 }
 0x706   : > { %v2660_v2 = vpack.c.bf16 %v2658_v5, %v2657_v7 }
 0x707   : > { %v2733_v14 = vpop.permute.xlu0 %2732 }
 0x72c   : > { %v2460_v59 = vpop.xlane.xlu1 %2459 }
 0x72d   : > { %7558 = vrcp.f32 %v2460_v59 }
 0x72e   : > { %7560 = vrcp.f32 %v2653_v43 }
 0x730   : > { %v2671_v45 = vpop.permute.xlu1 %2670 }
 0x731   : > { %v2673_v9 = vsel %vm2552_vm5, %v2669_v4, %v2671_v45 }
 0x732   : > { %v2682_v12 = vsel %vm2313_vm3, %v2673_v9, 0 }
 0x734   : > { %v2739_v16 = vpop.permute.xlu1 %2738 }
 0x735   : > { %v2750_v17 = vsel %vm2210_vm2, %v2739_v16, 0 }
 0x737   : > { %v7559_v3 = vpop.eup %7558 }
 0x738   : > { %v2468_v60 = vmul.f32 %v7559_v3, %v7549_v50  ;;  %v7561_v37 = vpop.eup %7560  ;;  %v2735_v18 = vpop.permute.xlu1 %2734 }
 0x739   : > { %v2659_v11 = vmul.f32 %v7561_v37, %v8276_v26 }
 0x73a   : > { %v2470_v6 = vpack.c.bf16 %v2468_v60, %v2467_v54 }
 0x73b   : > { %v2661_v13 = vpack.c.bf16 %v2659_v11, %v2659_v11 }
 0x73c   : > { %6978 = vmatprep.mubr.msk.bf16.mxu1 %vm2271_vm4, %v2470_v6 }
 0x73d   : > { %6979 = vmatmul.mubr.msk.bf16.vlgmr.msra.gmra.mrb[16].mxu1 %vm2271_vm4, %v2471_v8 }
 0x73e   : > { %6991 = vmatpush3.bf16.msra.mxu1 %v2672_v53  ;;  %6994 = vmatprep.mubr.msk.bf16.mxu1 %vm2271_vm4, %v2660_v2 }
 0x73f   : > { %7022 = vmatprep.subr.msk.bf16.mxu1 %vm2313_vm3, %v2673_v9 }
 0x742   : > { %6993 = vmatpush3.bf16.msra.mxu1 %v2682_v12 }
 0x743   : > { %7023 = vmatprep.subr.msk.bf16.mxu1 %vm2210_vm2, %v2737_v10 }
 0x745   : > { %6995 = vmatmul.mubr.msk.bf16.vlgmr.msra.gmra.mrb[20].mxu1 %vm2271_vm4, %v2661_v13 }
 0x746   : > { %7002 = vmatprep.mubr.msk.bf16.mxu1 %vm2210_vm2, %v2733_v14 }
 0x74b   : > { %6999 = vmatpush3.bf16.xpose.msra.mxu1 %v2747_v15 }
 0x74c   : > { %7024 = vmatprep.subr.msk.bf16.mxu1 %vm2210_vm2, %v2739_v16 }
 0x753   : > { %7001 = vmatpush3.bf16.xpose.msra.mxu1 %v2750_v17 }
 0x75a   : > { %7003 = vmatmul.mubr.msk.bf16.vlgmr.msra.gmra.mrb[24].mxu1 %vm2210_vm2, %v2735_v18 }
 0x810   : > { %v6980_v19 = vpop.f32.mrb[16].mxu1 }
 0x811   : > { %v2522_v22 = vpop.f32.mrb[17].mxu1 }
 0x812   : > { %v6981_v23 = vpop.f32.mrb[18].mxu1 }
 0x813   : > { %v2525_v24 = vpop.f32.mrb[19].mxu1  ;;  %v7229_v23 = vld [vmem:[%s9847_s13 + $0x10] ss:$8 sps:$4 sm:$0xff]  }
 0x814   : > { %v7088_v26 = vpack.i.bf16 %v2525_v24, %v2522_v22  ;;  %v7231_v22 = vld [vmem:[%s9847_s13 + $0x14] ss:$8 sps:$4 sm:$0xff]   ;;  %v7234_v24 = vld [vmem:[%s9847_s13 + $0x24] ss:$8 sps:$4 sm:$0xff]  }
 0x818   : > { %v8326_v28 = vpop.f32.mrb[20].mxu1 }
 0x819   : > { %v2718_v29 = vpop.f32.mrb[21].mxu1 }
 0x81a   : > { %v6997_v31 = vpop.f32.mrb[22].mxu1 }
 0x81b   : > { %v2721_v33 = vpop.f32.mrb[23].mxu1  ;;  %v7235_v31 = vld [vmem:[%s9847_s13 + $0x30] ss:$8 sps:$4 sm:$0xff]  }
 0x81c   : > { %v7093_v35 = vpack.i.bf16 %v2721_v33, %v2718_v29  ;;  %v7237_v29 = vld [vmem:[%s9847_s13 + $0x34] ss:$8 sps:$4 sm:$0xff]   ;;  %v7240_v33 = vld [vmem:[%s9847_s13 + $0x44] ss:$8 sps:$4 sm:$0xff]  }
 0x82d   : > { %v7004_v36 = vpop.f32.mrb[24].mxu1 }
 0x82e   : > { %v2786_v39 = vpop.f32.mrb[25].mxu1  ;;  %v2795_v51 = vadd.f32 %v7004_v36, %v8190_v32  ;;  %v7243_v36 = vld [vmem:[%s9847_s13 + $0x54] ss:$8 sps:$4 sm:$0xff]  }
 0x82f   : > { %v2787_v41 = vadd.f32 %v2786_v39, %v8187_v30  ;;  %v7005_v48 = vpop.f32.mrb[26].mxu1  ;;  %v7241_v39 = vld [vmem:[%s9847_s13 + $0x50] ss:$8 sps:$4 sm:$0xff]  }
 0x830   : > { %v2789_v50 = vpop.f32.mrb[27].mxu1  ;;  %v2806_v52 = vsel %vm2271_vm4, %v2795_v51, -inf  ;;  %v7244_v48 = vld [vmem:[%s9847_s13 + $0x60] ss:$8 sps:$4 sm:$0xff]  }
 0x831   : > { %v2790_v61 = vadd.f32 %v2789_v50, %v8193_v34  ;;  %v2800_v43 = vsel %vm2271_vm4, %v2787_v41, -inf  ;;  %v7249_v50 = vld [vmem:[%s9847_s13 + $0x74] ss:$8 sps:$4 sm:$0xff]  }
 0x832   : > { %2801 = vmax.xlane.f32.xlu0 %v2800_v43  ;;  %v7250_v43 = vld [vmem:[%s9847_s13 + $0x80] ss:$8 sps:$4 sm:$0xff]  }
 0x833   : > { %v2803_v27 = vsel %vm2271_vm4, %v2790_v61, -inf }
 0x834   : > { %2804 = vmax.xlane.f32.xlu1 %v2803_v27  ;;  %v7255_v27 = vld [vmem:[%s9847_s13 + $0x94] ss:$8 sps:$4 sm:$0xff]  }
 0x836   : > { %2807 = vmax.xlane.f32.xlu0 %v2806_v52  ;;  %v7253_v52 = vld [vmem:[%s9847_s13 + $0x90] ss:$8 sps:$4 sm:$0xff]  }
 0x8bf   : > { %v2802_v55 = vpop.xlane.xlu0 %2801 }
 0x8c0   : > { %v2809_v56 = vsub.f32 %v2787_v41, %v2802_v55  ;;  %v7246_v41 = vld [vmem:[%s9847_s13 + $0x64] ss:$8 sps:$4 sm:$0xff]   ;;  %v7256_v55 = vld [vmem:[%s9847_s13 + $0xa0] ss:$8 sps:$4 sm:$0xff]  }
 0x8c1   : > { %v2805_v57 = vpop.xlane.xlu1 %2804 }
 0x8c2   : > { %v2812_v58 = vmul.f32 1.442695, %v2809_v56  ;;  %v2810_v30 = vsub.f32 %v2790_v61, %v2805_v57  ;;  %v7252_v61 = vld [vmem:[%s9847_s13 + $0x84] ss:$8 sps:$4 sm:$0xff]   ;;  %v7261_v57 = vld [vmem:[%s9847_s13 + $0xb4] ss:$8 sps:$4 sm:$0xff]  }
 0x8c3   : > { %v2808_v25 = vpop.xlane.xlu0 %2807  ;;  %v7258_v56 = vld [vmem:[%s9847_s13 + $0xa4] ss:$8 sps:$4 sm:$0xff]  }
 0x8c4   : > { %7562 = vpow2.f32 %v2812_v58  ;;  %v2814_v44 = vmul.f32 1.442695, %v2810_v30  ;;  %v2811_v32 = vsub.f32 %v2795_v51, %v2808_v25  ;;  %v7247_v51 = vld [vmem:[%s9847_s13 + $0x70] ss:$8 sps:$4 sm:$0xff]  }
 0x8c5   : > { %v7259_v58 = vld [vmem:[%s9847_s13 + $0xb0] ss:$8 sps:$4 sm:$0xff]  }
 0x8c6   : > { %7564 = vpow2.f32 %v2814_v44  ;;  %v2816_v34 = vmul.f32 1.442695, %v2811_v32 }
 0x8c8   : > { %7566 = vpow2.f32 %v2816_v34 }
 0x8ce   : > { %v7563_v53 = vpop.eup %7562 }
 0x8cf   : > { %v2818_v59 = vsel %vm2271_vm4, %v7563_v53, 0.0 }
 0x8d0   : > { %v7565_v62 = vpop.eup %7564  ;;  %2819 = vadd.xlane.f32.xlu0 %v2818_v59 }
 0x8d1   : > { %v2821_v0 = vsel %vm2271_vm4, %v7565_v62, 0.0 }
 0x8d2   : > { %v7567_v63 = vpop.eup %7566 }
 0x8d3   : > { %v2824_v1 = vsel %vm2271_vm4, %v7567_v63, 0.0 }
 0x8d4   : > { %2822 = vadd.xlane.f32.xlu0 %v2821_v0  ;;  %2825 = vadd.xlane.f32.xlu1 %v2824_v1 }
 0x8e5   : > { %2837 = vrot.lane.b32.xlu1 %v8300_v20, %s7726_s7 }
 0x8e9   : > { %7089 = vrot.lane.b32.xlu1 %v7088_v26, %s7727_s10  ;;  %v7232_v26 = vld [vmem:[%s9847_s13 + $0x20] ss:$8 sps:$4 sm:$0xff]  }
 0x8ea   : > { %2835 = vrot.lane.b32.xlu0 %v8174_v21, %s7726_s7 }
 0x8ed   : > { %7094 = vrot.lane.b32.xlu1 %v7093_v35, %s7728_s11  ;;  %v7238_v35 = vld [vmem:[%s9847_s13 + $0x40] ss:$8 sps:$4 sm:$0xff]  }
 0x8f1   : > { %2904 = vrot.lane.b32.xlu1 %v6980_v19, %s7727_s10  ;;  %v7228_v19 = vld [vmem:[%s9847_s13 + $0x4] ss:$8 sps:$4 sm:$0xff]  }
 0x95d   : > { %v2820_v3 = vpop.xlane.xlu0 %2819 }
 0x95e   : > { %7568 = vrcp.f32 %v2820_v3 }
 0x961   : > { %v2826_v46 = vpop.xlane.xlu1 %2825  ;;  %v2823_v54 = vpop.xlane.xlu0 %2822 }
 0x962   : > { %7570 = vrcp.f32 %v2826_v46 }
 0x963   : > { %7572 = vrcp.f32 %v2823_v54 }
 0x965   : > { %v2838_v60 = vpop.permute.xlu1 %2837  ;;  %v2836_v5 = vpop.permute.xlu0 %2835 }
 0x966   : > { %7006 = vmatprep.subr.bf16.mxu0 %v2836_v5  ;;  %v2847_v21 = vsel %vm2313_vm3, %v2838_v60, 0 }
 0x967   : > { %7007 = vmatpush3.bf16.msra.mxu0 %v2836_v5 }
 0x968   : > { %7025 = vmatprep.subr.msk.bf16.mxu0 %vm2313_vm3, %v2838_v60  ;;  %v7569_v4 = vpop.eup %7568 }
 0x969   : > { %v7090_v20 = vpop.permute.xlu1 %7089  ;;  %v2830_v11 = vmul.f32 %v7569_v4, %v7563_v53  ;;  %v1647_v4 = vld [vmem:[%s9849_s15] sm:$0x3]  ;;  %s9874_s15 = sld [smem:[#allocation6_spill]] }
 0x96a   : > { %v7092_v6 = vunpack.i.h.bf16 %v7090_v20  ;;  %v7091_v7 = vunpack.i.l.bf16 %v7090_v20 }
 0x96b   : > { %7009 = vmatpush3.bf16.msra.mxu0 %v2847_v21 }
 0x96c   : > { %v7571_v45 = vpop.eup %7570  ;;  %v2934_v13 = vsel %vm2210_vm2, %v8258_v49, %v7092_v6  ;;  %v2933_v14 = vsel %vm2210_vm2, %v8256_v47, %v7091_v7  ;;  %v7226_v47 = vld [vmem:[%s9847_s13] ss:$8 sps:$4 sm:$0xff]   ;;  %3085 = vmatprep.subr.bf16.mxu0 %v7228_v19  ;;  %v2952_v6 = vrot.slane %v1647_v4, %v8081_v40  ;;  %v2956_v7 = vrot.slane %v1647_v4, %v8076_v38  ;;  %v7288_v4 = vld [vmem:[%s9854_s16 + $0x84] ss:$8 sps:$4 sm:$0xff]  }
 0x96d   : > { %v7573_v8 = vpop.eup %7572  ;;  %v8346_v37 = vpop.permute.xlu1 %7094  ;;  %v2832_v2 = vmul.f32 %v7571_v45, %v7567_v63 }
 0x96e   : > { %v7097_v9 = vunpack.i.h.bf16 %v8346_v37  ;;  %v7096_v10 = vunpack.i.l.bf16 %v8346_v37  ;;  %v2831_v12 = vmul.f32 %v7573_v8, %v7565_v62 }
 0x96f   : > { %v2834_v15 = vpack.c.bf16 %v2832_v2, %v2832_v2 }
 0x970   : > { %v8357_v16 = vsel %vm2936_vm6, %v2933_v14, %v7096_v10  ;;  %v8362_v17 = vsel %vm2936_vm6, %v2934_v13, %v7097_v9  ;;  %v2833_v18 = vpack.c.bf16 %v2831_v12, %v2830_v11  ;;  %v7658_v12 = vld [vmem:[#allocation2 + $0x8] sm:$0xff]  ;;  %v7659_v14 = vld [vmem:[#allocation2] sm:$0xff] }
 0x971   : > { %v2944_v49 = vpack.c.bf16 %v8362_v17, %v8357_v16  ;;  %v2905_v53 = vpop.permute.xlu1 %2904  ;;  %v7660_v16 = vld [vmem:[#allocation2 + $0x18] sm:$0xff] }
 0x972   : > { %7010 = vmatprep.mubr.msk.bf16.mxu0 %vm2271_vm4, %v2833_v18  ;;  %v2935_v5 = vsel %vm2210_vm2, %v8254_v42, %v2905_v53  ;;  %v7316_v53 = vld [vmem:[%s9858_s24 + $0x10] ss:$8 sps:$4 sm:$0xff]  }
 0x973   : > { %7011 = vmatmul.mubr.msk.bf16.vlgmr.msra.gmra.mrb[24].mxu0 %vm2271_vm4, %v2834_v15 }
 0x974   : > { %3086 = vmatpush1.bf16.msra.mxu0 %v7226_v47 }
 0x975   : > { %3087 = vmatprep.subr.bf16.mxu0 %v7231_v22 }
 0x978   : > { %3088 = vmatpush1.bf16.msra.mxu0 %v7229_v23 }
 0x979   : > { %3089 = vmatprep.subr.bf16.mxu0 %v7234_v24 }
 0x97c   : > { %3090 = vmatpush1.bf16.msra.mxu0 %v7232_v26 }
 0x97d   : > { %3091 = vmatprep.subr.bf16.mxu0 %v7237_v29 }
 0x980   : > { %3092 = vmatpush1.bf16.msra.mxu0 %v7235_v31 }
 0x981   : > { %3093 = vmatprep.subr.bf16.mxu0 %v7240_v33 }
 0x984   : > { %3094 = vmatpush1.bf16.msra.mxu0 %v7238_v35 }
 0x985   : > { %3095 = vmatprep.subr.bf16.mxu0 %v7243_v36  ;;  %v7662_v36 = vld [vmem:[#allocation2 + $0x28] sm:$0xff] }
 0x988   : > { %3096 = vmatpush1.bf16.msra.mxu0 %v7241_v39 }
 0x989   : > { %3097 = vmatprep.subr.bf16.mxu0 %v7246_v41  ;;  %v7663_v41 = vld [vmem:[#allocation2 + $0x20] sm:$0xff] }
 0x98c   : > { %3098 = vmatpush1.bf16.msra.mxu0 %v7244_v48 }
 0x98d   : > { %3099 = vmatprep.subr.bf16.mxu0 %v7249_v50 }
 0x990   : > { %3100 = vmatpush1.bf16.msra.mxu0 %v7247_v51 }
 0x991   : > { %3101 = vmatprep.subr.bf16.mxu0 %v7252_v61  ;;  %v7262_v61 = vld [vmem:[%s9854_s16] ss:$8 sps:$4 sm:$0xff]  }
 0x994   : > { %3102 = vmatpush1.bf16.msra.mxu0 %v7250_v43  ;;  %v7264_v43 = vld [vmem:[%s9854_s16 + $0x4] ss:$8 sps:$4 sm:$0xff]  }
 0x995   : > { %3103 = vmatprep.subr.bf16.mxu0 %v7255_v27  ;;  %v7267_v27 = vld [vmem:[%s9854_s16 + $0x14] ss:$8 sps:$4 sm:$0xff]  }
 0x998   : > { %3104 = vmatpush1.bf16.msra.mxu0 %v7253_v52  ;;  %v7265_v52 = vld [vmem:[%s9854_s16 + $0x10] ss:$8 sps:$4 sm:$0xff]  }
 0x999   : > { %3105 = vmatprep.subr.bf16.mxu0 %v7258_v56  ;;  %v7268_v56 = vld [vmem:[%s9854_s16 + $0x20] ss:$8 sps:$4 sm:$0xff]  }
 0x99c   : > { %3106 = vmatpush1.bf16.msra.mxu0 %v7256_v55  ;;  %v7270_v55 = vld [vmem:[%s9854_s16 + $0x24] ss:$8 sps:$4 sm:$0xff]  }
 0x99d   : > { %3107 = vmatprep.subr.bf16.mxu0 %v7261_v57  ;;  %v7273_v57 = vld [vmem:[%s9854_s16 + $0x34] ss:$8 sps:$4 sm:$0xff]  }
 0x9a0   : > { %3108 = vmatpush1.bf16.msra.mxu0 %v7259_v58  ;;  %v8445_v58 = vld [vmem:[%s9857_s8 + $0x4] ss:$8 sps:$4 sm:$0xff]  }
 0x9a1   : > { %3795 = vmatprep.subr.bf16.mxu0 %v7264_v43 }
 0xa46   : > { %v7012_v30 = vpop.f32.mrb[24].mxu0 }
 0xa47   : > { %2928 = vrot.lane.b32.xlu1 %v7012_v30, %s7729_s17  ;;  %v2883_v25 = vpop.f32.mrb[25].mxu0  ;;  %v7271_v30 = vld [vmem:[%s9854_s16 + $0x30] ss:$8 sps:$4 sm:$0xff]  }
 0xa48   : > { %v7013_v44 = vpop.f32.mrb[26].mxu0 }
 0xa49   : > { %v2886_v32 = vpop.f32.mrb[27].mxu0  ;;  %v7315_v44 = vld [vmem:[%s9858_s24 + $0x4] ss:$8 sps:$4 sm:$0xff]  }
 0xa4a   : > { %v7098_v34 = vpack.i.bf16 %v2886_v32, %v2883_v25  ;;  %v7313_v25 = vld [vmem:[%s9858_s24] ss:$8 sps:$4 sm:$0xff]   ;;  %v7276_v32 = vld [vmem:[%s9854_s16 + $0x44] ss:$8 sps:$4 sm:$0xff]   ;;  %3493 = vmatprep.subr.bf16.mxu1 %v7315_v44 }
 0xa4b   : > { %3494 = vmatpush1.bf16.msra.mxu1 %v7313_v25 }
 0xa4c   : > { %7099 = vrot.lane.b32.xlu0 %v7098_v34, %s7729_s17  ;;  %v7318_v34 = vld [vmem:[%s9858_s24 + $0x14] ss:$8 sps:$4 sm:$0xff]  }
 0xa4d   : > { %3495 = vmatprep.subr.bf16.mxu1 %v7318_v34 }
 0xa4f   : > { %3496 = vmatpush1.bf16.msra.mxu1 %v7316_v53 }
 0xa50   : > { %2916 = vrot.lane.b32.xlu0 %v8326_v28, %s7728_s11 }
 0xab9   : > { %v2929_v3 = vpop.permute.xlu1 %2928 }
 0xabe   : > { %v7100_v59 = vpop.permute.xlu0 %7099 }
 0xabf   : > { %v7102_v62 = vunpack.i.h.bf16 %v7100_v59  ;;  %v7101_v63 = vunpack.i.l.bf16 %v7100_v59  ;;  %v7274_v59 = vld [vmem:[%s9854_s16 + $0x40] ss:$8 sps:$4 sm:$0xff]  }
 0xac1   : > { %v2942_v0 = vsel %vm2940_vm7, %v7097_v9, %v7102_v62  ;;  %v2941_v1 = vsel %vm2940_vm7, %v7096_v10, %v7101_v63  ;;  %v7324_v62 = vld [vmem:[%s9858_s24 + $0x24] ss:$8 sps:$4 sm:$0xff]   ;;  %v7279_v63 = vld [vmem:[%s9854_s16 + $0x54] ss:$8 sps:$4 sm:$0xff]  }
 0xac2   : > { %v2917_v46 = vpop.permute.xlu0 %2916  ;;  %v2945_v54 = vpack.c.bf16 %v2942_v0, %v2941_v1  ;;  %v7322_v0 = vld [vmem:[%s9858_s24 + $0x20] ss:$8 sps:$4 sm:$0xff]   ;;  %v7277_v1 = vld [vmem:[%s9854_s16 + $0x50] ss:$8 sps:$4 sm:$0xff]   ;;  %3497 = vmatprep.subr.bf16.mxu1 %v7324_v62 }
 0xac3   : > { %v2943_v28 = vsel %vm2940_vm7, %v2917_v46, %v2929_v3  ;;  %v2939_v20 = vsel %vm2936_vm6, %v2935_v5, %v2917_v46  ;;  %v7327_v3 = vld [vmem:[%s9858_s24 + $0x34] ss:$8 sps:$4 sm:$0xff]   ;;  %v7282_v46 = vld [vmem:[%s9854_s16 + $0x64] ss:$8 sps:$4 sm:$0xff]   ;;  %3498 = vmatpush1.bf16.msra.mxu1 %v7322_v0 }
 0xac4   : > { %v2947_v60 = vpack.c.bf16 %v2943_v28, %v2943_v28  ;;  %6696 = vmatprep.mubr.msk.bf16.mxu0 %vm1458_vm1, %v2945_v54  ;;  %v2946_v21 = vpack.c.bf16 %v2939_v20, %v2939_v20  ;;  %v7325_v54 = vld [vmem:[%s9858_s24 + $0x30] ss:$8 sps:$4 sm:$0xff]   ;;  %v7280_v28 = vld [vmem:[%s9854_s16 + $0x60] ss:$8 sps:$4 sm:$0xff]   ;;  %3499 = vmatprep.subr.bf16.mxu1 %v7327_v3  ;;  %v7285_v5 = vld [vmem:[%s9854_s16 + $0x74] ss:$8 sps:$4 sm:$0xff]  }
 0xac5   : > { %3118 = vmatmul.mubr.bf16.vlgmr.msra.gmra.mrb[28].mxu0 %v2944_v49  ;;  %v7661_v49 = vld [vmem:[#allocation2 + $0x10] sm:$0xff]  ;;  %v7331_v20 = vld [vmem:[%s9858_s24 + $0x40] ss:$8 sps:$4 sm:$0xff]  }
 0xac6   : > { %6697 = vmatprep.mubr.msk.bf16.mxu0 %vm1458_vm1, %v2947_v60  ;;  %3796 = vmatpush1.bf16.msra.mxu0 %v7262_v61  ;;  %v7333_v60 = vld [vmem:[%s9858_s24 + $0x44] ss:$8 sps:$4 sm:$0xff]   ;;  %v7336_v0 = vld [vmem:[%s9858_s24 + $0x54] ss:$8 sps:$4 sm:$0xff]   ;;  %v7334_v3 = vld [vmem:[%s9858_s24 + $0x50] ss:$8 sps:$4 sm:$0xff]  }
 0xac7   : > { %3797 = vmatprep.subr.bf16.mxu0 %v7267_v27  ;;  %3500 = vmatpush1.bf16.msra.mxu1 %v7325_v54  ;;  %v7342_v54 = vld [vmem:[%s9858_s24 + $0x64] ss:$8 sps:$4 sm:$0xff]  }
 0xac8   : > { %3501 = vmatprep.subr.bf16.mxu1 %v7333_v60  ;;  %v7345_v60 = vld [vmem:[%s9858_s24 + $0x74] ss:$8 sps:$4 sm:$0xff]  }
 0xaca   : > { %3798 = vmatpush1.bf16.msra.mxu0 %v7265_v52 }
 0xacb   : > { %3799 = vmatprep.subr.bf16.mxu0 %v7270_v55  ;;  %3502 = vmatpush1.bf16.msra.mxu1 %v7331_v20  ;;  %v7343_v20 = vld [vmem:[%s9858_s24 + $0x70] ss:$8 sps:$4 sm:$0xff]  }
 0xacc   : > { %3503 = vmatprep.subr.bf16.mxu1 %v7336_v0 }
 0xacd   : > { %3128 = vmatmul.mubr.bf16.gmra.mrb[32].mxu0 %v2946_v21  ;;  %v7283_v21 = vld [vmem:[%s9854_s16 + $0x70] ss:$8 sps:$4 sm:$0xff]  }
 0xace   : > { %6768 = vmatprep.mubr.msk.bf16.mxu0 %vm1458_vm1, %v8445_v58  ;;  %3800 = vmatpush1.bf16.msra.mxu0 %v7268_v56 }
 0xacf   : > { %3801 = vmatprep.subr.bf16.mxu0 %v7273_v57  ;;  %3504 = vmatpush1.bf16.msra.mxu1 %v7334_v3 }
 0xad0   : > { %3505 = vmatprep.subr.bf16.mxu1 %v7342_v54 }
 0xad2   : > { %3802 = vmatpush1.bf16.msra.mxu0 %v7271_v30 }
 0xad3   : > { %3803 = vmatprep.subr.bf16.mxu0 %v7276_v32 }
 0xad6   : > { %3804 = vmatpush1.bf16.msra.mxu0 %v7274_v59 }
 0xad7   : > { %3805 = vmatprep.subr.bf16.mxu0 %v7279_v63 }
 0xada   : > { %3806 = vmatpush1.bf16.msra.mxu0 %v7277_v1  ;;  %v8569_v1 = vld [vmem:[%s9857_s8 + $0x74] ss:$8 sps:$4 sm:$0xff]  }
 0xadb   : > { %3807 = vmatprep.subr.bf16.mxu0 %v7282_v46  ;;  %v8573_v46 = vld [vmem:[%s9857_s8 + $0x70] ss:$8 sps:$4 sm:$0xff]  }
 0xade   : > { %3808 = vmatpush1.bf16.msra.mxu0 %v7280_v28  ;;  %v7340_v28 = vld [vmem:[%s9858_s24 + $0x60] ss:$8 sps:$4 sm:$0xff]  }
 0xadf   : > { %3809 = vmatprep.subr.bf16.mxu0 %v7285_v5  ;;  %3506 = vmatpush1.bf16.msra.mxu1 %v7340_v28  ;;  %v8582_v5 = vld [vmem:[%s9857_s8 + $0x84] ss:$8 sps:$4 sm:$0xff]  }
 0xae0   : > { %3507 = vmatprep.subr.bf16.mxu1 %v7345_v60 }
 0xae2   : > { %3810 = vmatpush1.bf16.msra.mxu0 %v7283_v21  ;;  %v8586_v21 = vld [vmem:[%s9857_s8 + $0x80] ss:$8 sps:$4 sm:$0xff]  }
 0xae3   : > { %3811 = vmatprep.subr.bf16.mxu0 %v7288_v4  ;;  %3508 = vmatpush1.bf16.msra.mxu1 %v7343_v20  ;;  %v7351_v4 = vld [vmem:[%s9858_s24 + $0x84] ss:$8 sps:$4 sm:$0xff]  }
 0xae4   : > { %3509 = vmatprep.subr.bf16.mxu1 %v7351_v4 }
 0xb98   : > { %v3119_v45 = vpop.f32.mrb[28].mxu0 }
 0xb99   : > { %v3120_v8 = vadd.f32 %v3119_v45, %v2952_v6  ;;  %v3121_v37 = vpop.f32.mrb[29].mxu0  ;;  %v7289_v45 = vld [vmem:[%s9854_s16 + $0x90] ss:$8 sps:$4 sm:$0xff]  }
 0xb9a   : > { %v3122_v2 = vadd.f32 %v3121_v37, %v2956_v7  ;;  %v3123_v9 = vpop.f32.mrb[30].mxu0  ;;  %v7292_v37 = vld [vmem:[%s9854_s16 + $0xa0] ss:$8 sps:$4 sm:$0xff]  }
 0xb9b   : > { %v3124_v10 = vadd.f32 %v3123_v9, %v2952_v6  ;;  %v3125_v11 = vpop.f32.mrb[31].mxu0  ;;  %v8418_v15 = vadd.f32 %v7659_v14, %v3120_v8  ;;  %v7294_v8 = vld [vmem:[%s9854_s16 + $0xa4] ss:$8 sps:$4 sm:$0xff]   ;;  %v7295_v9 = vld [vmem:[%s9854_s16 + $0xb0] ss:$8 sps:$4 sm:$0xff]  }
 0xb9c   : > { %v8416_v13 = vadd.f32 %v7658_v12, %v3122_v2  ;;  %v3126_v42 = vadd.f32 %v3125_v11, %v2956_v7  ;;  %v7297_v2 = vld [vmem:[%s9854_s16 + $0xb4] ss:$8 sps:$4 sm:$0xff]   ;;  %v8486_v12 = vld [vmem:[%s9857_s8 + $0x10] ss:$8 sps:$4 sm:$0xff]   ;;  %v8495_v14 = vld [vmem:[%s9857_s8 + $0x20] ss:$8 sps:$4 sm:$0xff]  }
 0xb9d   : > { %9851 = vst [vmem:[#allocation46_spill] sm:$0xff] %v8418_v15  ;;  %v8424_v47 = vadd.f32 %v7661_v49, %v3124_v10  ;;  %v8477_v10 = vld [vmem:[%s9857_s8] ss:$8 sps:$4 sm:$0xff]   ;;  %v8480_v11 = vld [vmem:[%s9857_s8 + $0x14] ss:$8 sps:$4 sm:$0xff]  }
 0xb9e   : > { %9850 = vst [vmem:[#allocation45_spill] sm:$0xff] %v8416_v13  ;;  %v8420_v17 = vadd.f32 %v7660_v16, %v3126_v42  ;;  %v3144_v18 = vsel %vm1458_vm1, %v8416_v13, 0.0  ;;  %v8489_v42 = vld [vmem:[%s9857_s8 + $0x24] ss:$8 sps:$4 sm:$0xff]   ;;  %v8498_v16 = vld [vmem:[%s9857_s8 + $0x34] ss:$8 sps:$4 sm:$0xff]  }
 0xb9f   : > { %9853 = vst [vmem:[#allocation48_spill] sm:$0xff] %v8424_v47  ;;  %v3145_v19 = vadd.f32 %v3144_v18, %v8418_v15  ;;  %v8504_v18 = vld [vmem:[%s9857_s8 + $0x30] ss:$8 sps:$4 sm:$0xff]   ;;  %v8507_v49 = vld [vmem:[%s9857_s8 + $0x44] ss:$8 sps:$4 sm:$0xff]  }
 0xba0   : > { %9852 = vst [vmem:[#allocation47_spill] sm:$0xff] %v8420_v17  ;;  %v3129_v22 = vpop.f32.mrb[32].mxu0  ;;  %v3148_v23 = vsel %vm1458_vm1, %v8420_v17, 0.0 }
 0xba1   : > { %v3130_v24 = vadd.f32 %v3129_v22, %v2952_v6  ;;  %v3131_v26 = vpop.f32.mrb[33].mxu0  ;;  %3146 = vadd.xlane.f32.xlu0 %v3145_v19  ;;  %v3149_v29 = vadd.f32 %v3148_v23, %v8424_v47  ;;  %v7286_v6 = vld [vmem:[%s9854_s16 + $0x80] ss:$8 sps:$4 sm:$0xff]   ;;  %v8516_v22 = vld [vmem:[%s9857_s8 + $0x54] ss:$8 sps:$4 sm:$0xff]  }
 0xba2   : > { %v3132_v31 = vadd.f32 %v3131_v26, %v2956_v7  ;;  %v3133_v33 = vpop.f32.mrb[34].mxu0  ;;  %v7291_v7 = vld [vmem:[%s9854_s16 + $0x94] ss:$8 sps:$4 sm:$0xff]   ;;  %3812 = vmatpush1.bf16.msra.mxu0 %v7286_v6  ;;  %v8513_v19 = vld [vmem:[%s9857_s8 + $0x40] ss:$8 sps:$4 sm:$0xff]  }
 0xba3   : > { %v3134_v35 = vpop.f32.mrb[35].mxu0  ;;  %3150 = vadd.xlane.f32.xlu1 %v3149_v29  ;;  %v8432_v48 = vadd.f32 %v7663_v41, %v3130_v24  ;;  %3813 = vmatprep.subr.bf16.mxu0 %v7291_v7  ;;  %v8522_v23 = vld [vmem:[%s9857_s8 + $0x50] ss:$8 sps:$4 sm:$0xff]   ;;  %v8525_v24 = vld [vmem:[%s9857_s8 + $0x64] ss:$8 sps:$4 sm:$0xff]  }
 0xba4   : > { %v8430_v39 = vadd.f32 %v7662_v36, %v3132_v31  ;;  %v8531_v26 = vld [vmem:[%s9857_s8 + $0x60] ss:$8 sps:$4 sm:$0xff]   ;;  %v7354_v7 = vld [vmem:[%s9858_s24 + $0x94] ss:$8 sps:$4 sm:$0xff]  }
 0xba5   : > { %9856 = vst [vmem:[#allocation50_spill] sm:$0xff] %v8432_v48  ;;  %v7349_v6 = vld [vmem:[%s9858_s24 + $0x80] ss:$8 sps:$4 sm:$0xff]  }
 0xba6   : > { %9855 = vst [vmem:[#allocation49_spill] sm:$0xff] %v8430_v39  ;;  %v3152_v50 = vsel %vm1458_vm1, %v8430_v39, 0.0  ;;  %3814 = vmatpush1.bf16.msra.mxu0 %v7289_v45  ;;  %v8595_v45 = vld [vmem:[%s9857_s8 + $0x94] ss:$8 sps:$4 sm:$0xff]   ;;  %3510 = vmatpush1.bf16.msra.mxu1 %v7349_v6 }
 0xba7   : > { %v3153_v51 = vadd.f32 %v3152_v50, %v8432_v48  ;;  %3815 = vmatprep.subr.bf16.mxu0 %v7294_v8  ;;  %v7352_v8 = vld [vmem:[%s9858_s24 + $0x90] ss:$8 sps:$4 sm:$0xff]   ;;  %3511 = vmatprep.subr.bf16.mxu1 %v7354_v7 }
 0xba9   : > { %3154 = vadd.xlane.f32.xlu0 %v3153_v51 }
 0xbaa   : > { %3816 = vmatpush1.bf16.msra.mxu0 %v7292_v37  ;;  %v8599_v37 = vld [vmem:[%s9857_s8 + $0x90] ss:$8 sps:$4 sm:$0xff]   ;;  %3512 = vmatpush1.bf16.msra.mxu1 %v7352_v8 }
 0xbab   : > { %3817 = vmatprep.subr.bf16.mxu0 %v7297_v2  ;;  %v7360_v2 = vld [vmem:[%s9858_s24 + $0xa4] ss:$8 sps:$4 sm:$0xff]  }
 0xbac   : > { %3513 = vmatprep.subr.bf16.mxu1 %v7360_v2 }
 0xbae   : > { %3818 = vmatpush1.bf16.msra.mxu0 %v7295_v9  ;;  %v7358_v9 = vld [vmem:[%s9858_s24 + $0xa0] ss:$8 sps:$4 sm:$0xff]  }
 0xbaf   : > { %3514 = vmatpush1.bf16.msra.mxu1 %v7358_v9 }
 0xbb1   : > { %3828 = vmatmul.mubr.bf16.vlgmr.msra.gmra.mrb[36].mxu0 %v8477_v10 }
 0xbb2   : > { %6769 = vmatprep.mubr.msk.bf16.mxu0 %vm1458_vm1, %v8480_v11 }
 0xbb9   : > { %3838 = vmatmul.mubr.bf16.gmra.mrb[40].mxu0 %v8486_v12 }
 0xbba   : > { %6770 = vmatprep.mubr.msk.bf16.mxu0 %vm1458_vm1, %v8489_v42 }
 0xbc1   : > { %3848 = vmatmul.mubr.bf16.gmra.mrb[44].mxu0 %v8495_v14 }
 0xbc2   : > { %6771 = vmatprep.mubr.msk.bf16.mxu0 %vm1458_vm1, %v8498_v16 }
 0xbc9   : > { %3858 = vmatmul.mubr.bf16.gmra.mrb[48].mxu0 %v8504_v18 }
 0xbca   : > { %6772 = vmatprep.mubr.msk.bf16.mxu0 %vm1458_vm1, %v8507_v49 }
 0xbd1   : > { %3868 = vmatmul.mubr.bf16.gmra.mrb[52].mxu0 %v8513_v19 }
 0xbd2   : > { %6773 = vmatprep.mubr.msk.bf16.mxu0 %vm1458_vm1, %v8516_v22 }
 0xbd9   : > { %3878 = vmatmul.mubr.bf16.gmra.mrb[56].mxu0 %v8522_v23 }
 0xbda   : > { %6774 = vmatprep.mubr.msk.bf16.mxu0 %vm1458_vm1, %v8525_v24 }
 0xbe1   : > { %3888 = vmatmul.mubr.bf16.gmra.mrb[60].mxu0 %v8531_v26 }
 0xbe2   : > { %6775 = vmatprep.mubr.msk.bf16.mxu0 %vm1458_vm1, %v8569_v1 }
 0xbe9   : > { %3898 = vmatmul.mubr.bf16.gmra.mrb[64].mxu0 %v8573_v46 }
 0xbea   : > { %6776 = vmatprep.mubr.msk.bf16.mxu0 %vm1458_vm1, %v8582_v5 }
 0xbf1   : > { %3908 = vmatmul.mubr.bf16.gmra.mrb[68].mxu0 %v8586_v21 }
 0xbf2   : > { %6777 = vmatprep.mubr.msk.bf16.mxu0 %vm1458_vm1, %v8595_v45 }
 0xbf9   : > { %3918 = vmatmul.mubr.bf16.gmra.mrb[72].mxu0 %v8599_v37 }
 0xc2e   : > { %v3147_v29 = vpop.xlane.xlu0 %3146 }
 0xc2f   : > { %v3156_v31 = vmul.f32 0.0052083335, %v3147_v29  ;;  %v7363_v29 = vld [vmem:[%s9858_s24 + $0xb4] ss:$8 sps:$4 sm:$0xff]  }
 0xc30   : > { %v3151_v33 = vpop.xlane.xlu1 %3150  ;;  %3515 = vmatprep.subr.bf16.mxu1 %v7363_v29 }
 0xc31   : > { %v8535_v35 = vsub.f32 %v8418_v15, %v3156_v31  ;;  %v8538_v36 = vsub.f32 %v8416_v13, %v3156_v31  ;;  %v3157_v41 = vmul.f32 0.0052083335, %v3151_v33  ;;  %v7361_v31 = vld [vmem:[%s9858_s24 + $0xb0] ss:$8 sps:$4 sm:$0xff]   ;;  %v9740_v33 = vmov 0   ;;  %s9875_s24 = smov %s9874_s15 }
 0xc32   : > { %3516 = vmatpush1.bf16.msra.mxu1 %v7361_v31  ;;  %4250 = vmatprep.subr.bf16.mxu0 %v9740_v33 }
 0xc33   : > { %v8541_v50 = vsub.f32 %v8424_v47, %v3157_v41  ;;  %v8544_v51 = vsub.f32 %v8420_v17, %v3157_v41  ;;  %v3165_v61 = vmul.f32 %v8535_v35, %v8535_v35  ;;  %v3166_v43 = vmul.f32 %v8538_v36, %v8538_v36  ;;  %4282 = vmatprep.mubr.bf16.mxu0 %v9740_v33  ;;  %v7366_v41 = vld [vmem:[%s9859_s18 + $0x4] ss:$8 sps:$4 sm:$0xff]  }
 0xc34   : > { %4059 = vmatprep.subr.bf16.mxu1 %v7366_v41 }
 0xc35   : > { %v3171_v27 = vsel %vm1458_vm1, %v3166_v43, 0.0  ;;  %v3168_v52 = vmul.f32 %v8544_v51, %v8544_v51  ;;  %v3167_v57 = vmul.f32 %v8541_v50, %v8541_v50 }
 0xc36   : > { %v3155_v55 = vpop.xlane.xlu0 %3154  ;;  %v3172_v56 = vadd.f32 %v3171_v27, %v3165_v61  ;;  %v3325_v61 = vld [vmem:[%s9861_s22] sm:$0x3] }
 0xc37   : > { %v3158_v30 = vmul.f32 0.0052083335, %v3155_v55  ;;  %v3175_v25 = vsel %vm1458_vm1, %v3168_v52, 0.0  ;;  %v8615_v43 = vrot.slane %v3325_v61, %v8081_v40  ;;  %v8618_v27 = vrot.slane %v3325_v61, %v8076_v38 }
 0xc38   : > { %3173 = vadd.xlane.f32.xlu0 %v3172_v56  ;;  %v3176_v34 = vadd.f32 %v3175_v25, %v3167_v57 }
 0xc39   : > { %v8557_v44 = vsub.f32 %v8432_v48, %v3158_v30  ;;  %v8560_v32 = vsub.f32 %v8430_v39, %v3158_v30 }
 0xc3b   : > { %v3169_v53 = vmul.f32 %v8557_v44, %v8557_v44  ;;  %v3170_v59 = vmul.f32 %v8560_v32, %v8560_v32 }
 0xc3c   : > { %3177 = vadd.xlane.f32.xlu0 %v3176_v34 }
 0xc3d   : > { %v3179_v62 = vsel %vm1458_vm1, %v3170_v59, 0.0 }
 0xc3e   : > { %v3180_v63 = vadd.f32 %v3179_v62, %v3169_v53 }
 0xc40   : > { %3181 = vadd.xlane.f32.xlu1 %v3180_v63 }
 0xc84   : > { %v3829_v55 = vpop.f32.mrb[36].mxu0 }
 0xc85   : > { %v3830_v57 = vadd.f32 %v3829_v55, %v8615_v43  ;;  %v3831_v30 = vpop.f32.mrb[37].mxu0 }
 0xc86   : > { %v3832_v25 = vadd.f32 %v3831_v30, %v8618_v27  ;;  %v3833_v34 = vpop.f32.mrb[38].mxu0 }
 0xc87   : > { %v3834_v59 = vadd.f32 %v3833_v34, %v8615_v43  ;;  %v3835_v62 = vpop.f32.mrb[39].mxu0 }
 0xc88   : > { %v3836_v0 = vadd.f32 %v3835_v62, %v8618_v27 }
 0xc89   : > { %v8624_v54 = vpack.c.bf16 %v3834_v59, %v3830_v57 }
 0xc8a   : > { %v8626_v28 = vpack.c.bf16 %v3836_v0, %v3832_v25  ;;  %v3143_v25 = vld [vmem:[%s1389_s21] sm:$0x3]  ;;  %s9865_s21 = sld [smem:[#allocation18_spill]] }
 0xc8b   : > { %4427 = vrot.lane.b32.xlu0 %v8624_v54, %s7724_s1  ;;  %v4221_v20 = vsel %vm2210_vm2, %v8624_v54, 0 }
 0xc8c   : > { %v3839_v6 = vpop.f32.mrb[40].mxu0  ;;  %4251 = vmatpush1.bf16.xpose.msra.mxu0 %v4221_v20  ;;  %v3223_v20 = vrot.slane %v3143_v25, %v8076_v38 }
 0xc8d   : > { %v3840_v8 = vadd.f32 %v3839_v6, %v8615_v43  ;;  %v3841_v2 = vpop.f32.mrb[41].mxu0  ;;  %4252 = vmatprep.subr.bf16.mxu0 %v9740_v33 }
 0xc8e   : > { %v3842_v9 = vadd.f32 %v3841_v2, %v8618_v27  ;;  %v3843_v29 = vpop.f32.mrb[42].mxu0 }
 0xc8f   : > { %v3844_v41 = vadd.f32 %v3843_v29, %v8615_v43  ;;  %v3845_v61 = vpop.f32.mrb[43].mxu0 }
 0xc90   : > { %v3846_v55 = vadd.f32 %v3845_v61, %v8618_v27 }
 0xc92   : > { %v8642_v57 = vpack.c.bf16 %v3846_v55, %v3842_v9  ;;  %v3219_v9 = vrot.slane %v3143_v25, %v8081_v40 }
 0xc94   : > { %v3849_v0 = vpop.f32.mrb[44].mxu0 }
 0xcc5   : > { %v3174_v52 = vpop.xlane.xlu0 %3173 }
 0xcc6   : > { %v3183_v56 = vmul.f32 0.0052083335, %v3174_v52  ;;  %v3142_v52 = vld [vmem:[%s1385_s30] sm:$0x3]  ;;  %s9866_s30 = scalar_lea.vmem %s9865_s21, %s7917_s28 }
 0xcc7   : > { %v3206_v34 = vrot.slane %v3142_v52, %v8076_v38 }
 0xcc8   : > { %v3186_v53 = vadd.f32 1e-05, %v3183_v56  ;;  %v8640_v56 = vpack.c.bf16 %v3844_v41, %v3840_v8 }
 0xcc9   : > { %v3178_v63 = vpop.xlane.xlu0 %3177 }
 0xcca   : > { %7574 = vrsqrt.f32 %v3186_v53  ;;  %v3184_v3 = vmul.f32 0.0052083335, %v3178_v63  ;;  %v3202_v53 = vrot.slane %v3142_v52, %v8081_v40  ;;  %4429 = vrot.lane.b32.xlu1 %v8640_v56, %s7724_s1  ;;  %v4224_v59 = vsel %vm2210_vm2, %v8640_v56, 0 }
 0xccb   : > { %4253 = vmatpush1.bf16.xpose.msra.mxu0 %v4224_v59 }
 0xccc   : > { %v3187_v60 = vadd.f32 1e-05, %v3184_v3  ;;  %v3850_v3 = vadd.f32 %v3849_v0, %v8615_v43  ;;  %4254 = vmatprep.subr.bf16.mxu0 %v9740_v33 }
 0xccd   : > { %v3182_v4 = vpop.xlane.xlu1 %3181 }
 0xcce   : > { %7576 = vrsqrt.f32 %v3187_v60  ;;  %v3185_v7 = vmul.f32 0.0052083335, %v3182_v4  ;;  %v3851_v60 = vpop.f32.mrb[45].mxu0 }
 0xccf   : > { %v3852_v4 = vadd.f32 %v3851_v60, %v8618_v27  ;;  %v3853_v6 = vpop.f32.mrb[46].mxu0 }
 0xcd0   : > { %v3188_v31 = vadd.f32 1e-05, %v3185_v7 }
 0xcd2   : > { %7578 = vrsqrt.f32 %v3188_v31 }
 0xcd4   : > { %v7575_v30 = vpop.eup %7574 }
 0xcd5   : > { %v3193_v62 = vmul.f32 %v7575_v30, %v8538_v36  ;;  %v3192_v63 = vmul.f32 %v7575_v30, %v8535_v35  ;;  %v3854_v36 = vadd.f32 %v3853_v6, %v8615_v43  ;;  %v3855_v35 = vpop.f32.mrb[47].mxu0 }
 0xcd6   : > { %v3856_v61 = vadd.f32 %v3855_v35, %v8618_v27  ;;  %v3859_v60 = vpop.f32.mrb[48].mxu0  ;;  %v7364_v35 = vld [vmem:[%s9859_s18] ss:$8 sps:$4 sm:$0xff]  }
 0xcd7   : > { %v3210_v8 = vmul.f32 %v3206_v34, %v3193_v62  ;;  %v3209_v2 = vmul.f32 %v3202_v53, %v3192_v63  ;;  %v8663_v41 = vpack.c.bf16 %v3854_v36, %v3850_v3  ;;  %v3860_v6 = vadd.f32 %v3859_v60, %v8615_v43  ;;  %v7370_v60 = vld [vmem:[%s9859_s18 + $0x20] ss:$8 sps:$4 sm:$0xff]  }
 0xcd8   : > { %v7577_v7 = vpop.eup %7576  ;;  %v8666_v62 = vpack.c.bf16 %v3856_v61, %v3852_v4  ;;  %v3861_v4 = vpop.f32.mrb[49].mxu0  ;;  %v7369_v61 = vld [vmem:[%s9859_s18 + $0x14] ss:$8 sps:$4 sm:$0xff]  }
 0xcd9   : > { %v3195_v29 = vmul.f32 %v7577_v7, %v8544_v51  ;;  %v3194_v31 = vmul.f32 %v7577_v7, %v8541_v50  ;;  %v3227_v59 = vadd.f32 %v3223_v20, %v3210_v8  ;;  %v3226_v0 = vadd.f32 %v3219_v9, %v3209_v2  ;;  %4431 = vrot.lane.b32.xlu1 %v8663_v41, %s7724_s1  ;;  %v3863_v36 = vpop.f32.mrb[50].mxu0 }
 0xcda   : > { %v4227_v51 = vsel %vm2210_vm2, %v8663_v41, 0 }
 0xcdb   : > { %v3212_v52 = vmul.f32 %v3206_v34, %v3195_v29  ;;  %v3211_v55 = vmul.f32 %v3202_v53, %v3194_v31  ;;  %4255 = vmatpush1.bf16.xpose.msra.mxu0 %v4227_v51  ;;  %v3862_v31 = vadd.f32 %v3861_v4, %v8618_v27 }
 0xcdc   : > { %v7579_v30 = vpop.eup %7578  ;;  %4256 = vmatprep.subr.bf16.mxu0 %v9740_v33 }
 0xcdd   : > { %v3229_v25 = vadd.f32 %v3223_v20, %v3212_v52  ;;  %v3228_v50 = vadd.f32 %v3219_v9, %v3211_v55  ;;  %v3197_v63 = vmul.f32 %v7579_v30, %v8560_v32  ;;  %v3196_v3 = vmul.f32 %v7579_v30, %v8557_v44  ;;  %v3865_v44 = vpop.f32.mrb[51].mxu0 }
 0xcde   : > { %v3864_v32 = vadd.f32 %v3863_v36, %v8615_v43  ;;  %v3866_v55 = vadd.f32 %v3865_v44, %v8618_v27 }
 0xcdf   : > { %v3353_v7 = vpack.c.bf16 %v3229_v25, %v3227_v59  ;;  %v3352_v8 = vpack.c.bf16 %v3228_v50, %v3226_v0  ;;  %v3214_v2 = vmul.f32 %v3206_v34, %v3197_v63  ;;  %v3213_v29 = vmul.f32 %v3202_v53, %v3196_v3  ;;  %v7367_v53 = vld [vmem:[%s9859_s18 + $0x10] ss:$8 sps:$4 sm:$0xff]   ;;  %v3869_v25 = vpop.f32.mrb[52].mxu0 }
 0xce0   : > { %v8682_v30 = vpack.c.bf16 %v3864_v32, %v3860_v6  ;;  %v8684_v59 = vpack.c.bf16 %v3866_v55, %v3862_v31  ;;  %v3870_v50 = vadd.f32 %v3869_v25, %v8615_v43  ;;  %v3871_v63 = vpop.f32.mrb[53].mxu0  ;;  %v7378_v32 = vld [vmem:[%s9859_s18 + $0x44] ss:$8 sps:$4 sm:$0xff]  }
 0xce1   : > { %6722 = vmatprep.mubr.msk.bf16.mxu1 %vm1458_vm1, %v3353_v7  ;;  %v3231_v52 = vadd.f32 %v3223_v20, %v3214_v2  ;;  %v3230_v0 = vadd.f32 %v3219_v9, %v3213_v29  ;;  %v7372_v20 = vld [vmem:[%s9859_s18 + $0x24] ss:$8 sps:$4 sm:$0xff]   ;;  %v3872_v9 = vadd.f32 %v3871_v63, %v8618_v27  ;;  %v3873_v3 = vpop.f32.mrb[54].mxu0  ;;  %v7373_v29 = vld [vmem:[%s9859_s18 + $0x30] ss:$8 sps:$4 sm:$0xff]  }
 0xce2   : > { %3526 = vmatmul.mubr.bf16.vlgmr.msra.gmra.mrb[28].mxu1 %v3352_v8  ;;  %4433 = vrot.lane.b32.xlu1 %v8682_v30, %s7724_s1  ;;  %v4230_v51 = vsel %vm2210_vm2, %v8682_v30, 0  ;;  %v3874_v4 = vadd.f32 %v3873_v3, %v8615_v43  ;;  %v3875_v7 = vpop.f32.mrb[55].mxu0  ;;  %v7375_v8 = vld [vmem:[%s9859_s18 + $0x34] ss:$8 sps:$4 sm:$0xff]   ;;  %v7379_v63 = vld [vmem:[%s9859_s18 + $0x50] ss:$8 sps:$4 sm:$0xff]  }
 0xce3   : > { %v3355_v34 = vpack.c.bf16 %v3231_v52, %v3231_v52  ;;  %4060 = vmatpush1.bf16.msra.mxu1 %v7364_v35  ;;  %4257 = vmatpush1.bf16.xpose.msra.mxu0 %v4230_v51  ;;  %v3354_v6 = vpack.c.bf16 %v3230_v0, %v3230_v0  ;;  %v3876_v2 = vadd.f32 %v3875_v7, %v8618_v27  ;;  %v3879_v44 = vpop.f32.mrb[56].mxu0  ;;  %v7381_v51 = vld [vmem:[%s9859_s18 + $0x54] ss:$8 sps:$4 sm:$0xff]   ;;  %v7384_v3 = vld [vmem:[%s9859_s18 + $0x64] ss:$8 sps:$4 sm:$0xff]  }
 0xce4   : > { %4061 = vmatprep.subr.bf16.mxu1 %v7369_v61  ;;  %4258 = vmatprep.subr.bf16.mxu0 %v9740_v33  ;;  %v8700_v36 = vpack.c.bf16 %v3874_v4, %v3870_v50  ;;  %v3880_v61 = vadd.f32 %v3879_v44, %v8615_v43  ;;  %v3881_v52 = vpop.f32.mrb[57].mxu0 }
 0xce5   : > { %6723 = vmatprep.mubr.msk.bf16.mxu1 %vm1458_vm1, %v3355_v34  ;;  %v8702_v35 = vpack.c.bf16 %v3876_v2, %v3872_v9  ;;  %v3882_v55 = vadd.f32 %v3881_v52, %v8618_v27  ;;  %v7376_v34 = vld [vmem:[%s9859_s18 + $0x40] ss:$8 sps:$4 sm:$0xff]  }
 0xce6   : > { %4435 = vrot.lane.b32.xlu0 %v8700_v36, %s7724_s1  ;;  %v4233_v31 = vsel %vm2210_vm2, %v8700_v36, 0  ;;  %v7382_v2 = vld [vmem:[%s9859_s18 + $0x60] ss:$8 sps:$4 sm:$0xff]  }
 0xce7   : > { %4062 = vmatpush1.bf16.msra.mxu1 %v7367_v53 }
 0xce8   : > { %4063 = vmatprep.subr.bf16.mxu1 %v7372_v20 }
 0xcea   : > { %3536 = vmatmul.mubr.bf16.gmra.mrb[32].mxu1 %v3354_v6 }
 0xceb   : > { %4064 = vmatpush1.bf16.msra.mxu1 %v7370_v60  ;;  %6802 = vmatprep.mubr.msk.bf16.mxu1 %vm1458_vm1, %v8445_v58  ;;  %v3883_v58 = vpop.f32.mrb[58].mxu0 }
 0xcec   : > { %4065 = vmatprep.subr.bf16.mxu1 %v7375_v8  ;;  %4259 = vmatpush1.bf16.xpose.msra.mxu0 %v4233_v31  ;;  %v3884_v53 = vadd.f32 %v3883_v58, %v8615_v43  ;;  %v3885_v0 = vpop.f32.mrb[59].mxu0 }
 0xced   : > { %4260 = vmatprep.subr.bf16.mxu0 %v9740_v33  ;;  %v3886_v20 = vadd.f32 %v3885_v0, %v8618_v27  ;;  %v3889_v60 = vpop.f32.mrb[60].mxu0 }
 0xcee   : > { %v8719_v25 = vpack.c.bf16 %v3884_v53, %v3880_v61  ;;  %v3890_v6 = vadd.f32 %v3889_v60, %v8615_v43  ;;  %v3891_v4 = vpop.f32.mrb[61].mxu0  ;;  %v7388_v53 = vld [vmem:[%s9859_s18 + $0x80] ss:$8 sps:$4 sm:$0xff]  }
 0xcef   : > { %4066 = vmatpush1.bf16.msra.mxu1 %v7373_v29  ;;  %v8721_v50 = vpack.c.bf16 %v3886_v20, %v3882_v55  ;;  %v3892_v7 = vadd.f32 %v3891_v4, %v8618_v27  ;;  %v3893_v8 = vpop.f32.mrb[62].mxu0  ;;  %v7385_v55 = vld [vmem:[%s9859_s18 + $0x70] ss:$8 sps:$4 sm:$0xff]  }
 0xcf0   : > { %4067 = vmatprep.subr.bf16.mxu1 %v7378_v32  ;;  %4437 = vrot.lane.b32.xlu1 %v8719_v25, %s7724_s1  ;;  %v4236_v9 = vsel %vm2210_vm2, %v8719_v25, 0  ;;  %v3894_v29 = vadd.f32 %v3893_v8, %v8615_v43  ;;  %v3895_v31 = vpop.f32.mrb[63].mxu0  ;;  %v7387_v32 = vld [vmem:[%s9859_s18 + $0x74] ss:$8 sps:$4 sm:$0xff]  }
 0xcf1   : > { %9864 = vst [vmem:[#allocation51_spill] sm:$0xff] %v8721_v50  ;;  %v3896_v44 = vadd.f32 %v3895_v31, %v8618_v27  ;;  %v3899_v0 = vpop.f32.mrb[64].mxu0 }
 0xcf2   : > { %v8736_v61 = vpack.c.bf16 %v3894_v29, %v3890_v6  ;;  %v3901_v20 = vpop.f32.mrb[65].mxu0 }
 0xcf3   : > { %4068 = vmatpush1.bf16.msra.mxu1 %v7376_v34  ;;  %v8738_v52 = vpack.c.bf16 %v3896_v44, %v3892_v7  ;;  %v7390_v34 = vld [vmem:[%s9859_s18 + $0x84] ss:$8 sps:$4 sm:$0xff]  }
 0xcf4   : > { %4069 = vmatprep.subr.bf16.mxu1 %v7381_v51  ;;  %4261 = vmatpush1.bf16.xpose.msra.mxu0 %v4236_v9  ;;  %v4239_v58 = vsel %vm2210_vm2, %v8736_v61, 0  ;;  %v3900_v51 = vadd.f32 %v3899_v0, %v8615_v43  ;;  %v3903_v9 = vpop.f32.mrb[66].mxu0 }
 0xcf5   : > { %4262 = vmatprep.subr.bf16.mxu0 %v9740_v33  ;;  %4439 = vrot.lane.b32.xlu0 %v8736_v61, %s7724_s1  ;;  %v3905_v60 = vpop.f32.mrb[67].mxu0 }
 0xcf6   : > { %v3906_v6 = vadd.f32 %v3905_v60, %v8618_v27 }
 0xcf7   : > { %4070 = vmatpush1.bf16.msra.mxu1 %v7379_v63  ;;  %v3902_v63 = vadd.f32 %v3901_v20, %v8618_v27 }
 0xcf8   : > { %4071 = vmatprep.subr.bf16.mxu1 %v7384_v3  ;;  %v3904_v3 = vadd.f32 %v3903_v9, %v8615_v43 }
 0xcf9   : > { %v8754_v7 = vpack.c.bf16 %v3906_v6, %v3902_v63 }
 0xcfa   : > { %v8752_v4 = vpack.c.bf16 %v3904_v3, %v3900_v51 }
 0xcfb   : > { %4072 = vmatpush1.bf16.msra.mxu1 %v7382_v2  ;;  %v3909_v2 = vpop.f32.mrb[68].mxu0 }
 0xcfc   : > { %4073 = vmatprep.subr.bf16.mxu1 %v7387_v32  ;;  %4263 = vmatpush1.bf16.xpose.msra.mxu0 %v4239_v58  ;;  %v4242_v8 = vsel %vm2210_vm2, %v8752_v4, 0  ;;  %v3910_v29 = vadd.f32 %v3909_v2, %v8615_v43  ;;  %v3911_v31 = vpop.f32.mrb[69].mxu0 }
 0xcfd   : > { %4264 = vmatprep.subr.bf16.mxu0 %v9740_v33  ;;  %4441 = vrot.lane.b32.xlu1 %v8752_v4, %s7724_s1  ;;  %v3912_v32 = vadd.f32 %v3911_v31, %v8618_v27  ;;  %v3913_v44 = vpop.f32.mrb[70].mxu0 }
 0xcfe   : > { %v3915_v58 = vpop.f32.mrb[71].mxu0 }
 0xcff   : > { %4074 = vmatpush1.bf16.msra.mxu1 %v7385_v55  ;;  %v3914_v55 = vadd.f32 %v3913_v44, %v8615_v43  ;;  %v3919_v20 = vpop.f32.mrb[72].mxu0  ;;  %v7393_v44 = vld [vmem:[%s9859_s18 + $0x94] ss:$8 sps:$4 sm:$0xff]  }
 0xd00   : > { %4075 = vmatprep.subr.bf16.mxu1 %v7390_v34  ;;  %v3916_v34 = vadd.f32 %v3915_v58, %v8618_v27  ;;  %v3920_v63 = vadd.f32 %v3919_v20, %v8615_v43  ;;  %v3921_v9 = vpop.f32.mrb[73].mxu0  ;;  %v7399_v58 = vld [vmem:[%s9859_s18 + $0xb4] ss:$8 sps:$4 sm:$0xff]  }
 0xd01   : > { %v3922_v3 = vadd.f32 %v3921_v9, %v8618_v27  ;;  %v3923_v60 = vpop.f32.mrb[74].mxu0 }
 0xd02   : > { %v8767_v0 = vpack.c.bf16 %v3916_v34, %v3912_v32  ;;  %v3924_v6 = vadd.f32 %v3923_v60, %v8615_v43  ;;  %v7391_v43 = vld [vmem:[%s9859_s18 + $0x90] ss:$8 sps:$4 sm:$0xff]  }
 0xd03   : > { %4076 = vmatpush1.bf16.msra.mxu1 %v7388_v53  ;;  %v8765_v53 = vpack.c.bf16 %v3914_v55, %v3910_v29  ;;  %v7396_v55 = vld [vmem:[%s9859_s18 + $0xa4] ss:$8 sps:$4 sm:$0xff]   ;;  %v7397_v34 = vld [vmem:[%s9859_s18 + $0xb0] ss:$8 sps:$4 sm:$0xff]  }
 0xd04   : > { %4265 = vmatpush1.bf16.xpose.msra.mxu0 %v4242_v8  ;;  %v3925_v8 = vpop.f32.mrb[75].mxu0  ;;  %v8778_v29 = vpack.c.bf16 %v3924_v6, %v3920_v63  ;;  %4077 = vmatprep.subr.bf16.mxu1 %v7393_v44 }
 0xd05   : > { %4266 = vmatprep.subr.bf16.mxu0 %v9740_v33  ;;  %4443 = vrot.lane.b32.xlu0 %v8765_v53, %s7724_s1  ;;  %v4245_v51 = vsel %vm2210_vm2, %v8765_v53, 0  ;;  %v3926_v2 = vadd.f32 %v3925_v8, %v8618_v27  ;;  %v7394_v27 = vld [vmem:[%s9859_s18 + $0xa0] ss:$8 sps:$4 sm:$0xff]  }
 0xd06   : > { %4445 = vrot.lane.b32.xlu1 %v8778_v29, %s7724_s1  ;;  %v4248_v32 = vsel %vm2210_vm2, %v8778_v29, 0 }
 0xd07   : > { %v8780_v31 = vpack.c.bf16 %v3926_v2, %v3922_v3  ;;  %4078 = vmatpush1.bf16.msra.mxu1 %v7391_v43 }
 0xd08   : > { %4079 = vmatprep.subr.bf16.mxu1 %v7396_v55 }
 0xd0b   : > { %4080 = vmatpush1.bf16.msra.mxu1 %v7394_v27 }
 0xd0c   : > { %4267 = vmatpush1.bf16.xpose.msra.mxu0 %v4245_v51  ;;  %4081 = vmatprep.subr.bf16.mxu1 %v7399_v58 }
 0xd0d   : > { %4268 = vmatprep.subr.bf16.mxu0 %v9740_v33 }
 0xd0f   : > { %4082 = vmatpush1.bf16.msra.mxu1 %v7397_v34 }
 0xd10   : > { %4363 = vmatprep.subr.bf16.mxu1 %v9740_v33 }
 0xd12   : > { %4092 = vmatmul.mubr.bf16.vlgmr.msra.gmra.mrb[36].mxu1 %v8477_v10  ;;  %v3324_v10 = vld [vmem:[%s9866_s30] sm:$0x3] }
 0xd13   : > { %6803 = vmatprep.mubr.msk.bf16.mxu1 %vm1458_vm1, %v8480_v11  ;;  %v3360_v11 = vrot.slane %v3324_v10, %v8081_v40 }
 0xd14   : > { %4269 = vmatpush1.bf16.xpose.msra.mxu0 %v4248_v32 }
 0xd15   : > { %4483 = vmatprep.subr.bf16.mxu0 %v9740_v33 }
 0xd1a   : > { %4102 = vmatmul.mubr.bf16.gmra.mrb[40].mxu1 %v8486_v12 }
 0xd1b   : > { %6804 = vmatprep.mubr.msk.bf16.mxu1 %vm1458_vm1, %v8489_v42  ;;  %v8827_v42 = vrot.slane %v3324_v10, %v8076_v38 }
 0xd22   : > { %4112 = vmatmul.mubr.bf16.gmra.mrb[44].mxu1 %v8495_v14 }
 0xd23   : > { %6805 = vmatprep.mubr.msk.bf16.mxu1 %vm1458_vm1, %v8498_v16 }
 0xd2a   : > { %4122 = vmatmul.mubr.bf16.gmra.mrb[48].mxu1 %v8504_v18  ;;  %v4428_v18 = vpop.permute.xlu0 %4427 }
 0xd2b   : > { %6806 = vmatprep.mubr.msk.bf16.mxu1 %vm1458_vm1, %v8507_v49 }
 0xd32   : > { %4132 = vmatmul.mubr.bf16.gmra.mrb[52].mxu1 %v8513_v19 }
 0xd33   : > { %6807 = vmatprep.mubr.msk.bf16.mxu1 %vm1458_vm1, %v8516_v22 }
 0xd3a   : > { %4142 = vmatmul.mubr.bf16.gmra.mrb[56].mxu1 %v8522_v23 }
 0xd3b   : > { %6808 = vmatprep.mubr.msk.bf16.mxu1 %vm1458_vm1, %v8525_v24 }
 0xd3c   : > { %v4430_v51 = vpop.permute.xlu1 %4429 }
 0xd3d   : > { %v4457_v9 = vsel %vm2210_vm2, %v4430_v51, 0 }
 0xd42   : > { %4152 = vmatmul.mubr.bf16.gmra.mrb[60].mxu1 %v8531_v26 }
 0xd43   : > { %6809 = vmatprep.mubr.msk.bf16.mxu1 %vm1458_vm1, %v8569_v1  ;;  %v4454_v1 = vsel %vm2210_vm2, %v4428_v18, 0  ;;  %v3326_v18 = vld [vmem:[%s9867_s27] sm:$0x3] }
 0xd4a   : > { %4162 = vmatmul.mubr.bf16.gmra.mrb[64].mxu1 %v8573_v46 }
 0xd4b   : > { %6810 = vmatprep.mubr.msk.bf16.mxu1 %vm1458_vm1, %v8582_v5  ;;  %v4432_v3 = vpop.permute.xlu1 %4431 }
 0xd4c   : > { %v4460_v60 = vsel %vm2210_vm2, %v4432_v3, 0 }
 0xd52   : > { %4172 = vmatmul.mubr.bf16.gmra.mrb[68].mxu1 %v8586_v21 }
 0xd53   : > { %6811 = vmatprep.mubr.msk.bf16.mxu1 %vm1458_vm1, %v8595_v45 }
 0xd54   : > { %v4434_v6 = vpop.permute.xlu1 %4433 }
 0xd55   : > { %v4463_v8 = vsel %vm2210_vm2, %v4434_v6, 0 }
 0xd58   : > { %v4436_v2 = vpop.permute.xlu0 %4435 }
 0xd59   : > { %v4466_v32 = vsel %vm2210_vm2, %v4436_v2, 0 }
 0xd5a   : > { %4182 = vmatmul.mubr.bf16.gmra.mrb[72].mxu1 %v8599_v37 }
 0xd62   : > { %v4438_v44 = vpop.permute.xlu1 %4437 }
 0xd63   : > { %v4469_v43 = vsel %vm2210_vm2, %v4438_v44, 0 }
 0xd67   : > { %v4440_v55 = vpop.permute.xlu0 %4439 }
 0xd68   : > { %v4472_v27 = vsel %vm2210_vm2, %v4440_v55, 0 }
 0xd6f   : > { %v4442_v58 = vpop.permute.xlu1 %4441 }
 0xd70   : > { %v4475_v34 = vsel %vm2210_vm2, %v4442_v58, 0 }
 0xd77   : > { %v4444_v10 = vpop.permute.xlu0 %4443 }
 0xdb5   : > { %v3527_v12 = vpop.f32.mrb[28].mxu1 }
 0xdb6   : > { %v3529_v14 = vpop.f32.mrb[29].mxu1  ;;  %v3528_v49 = vadd.f32 %v3527_v12, %v3360_v11  ;;  %v4446_v12 = vpop.permute.xlu1 %4445 }
 0xdb7   : > { %v3531_v16 = vpop.f32.mrb[30].mxu1  ;;  %v3530_v23 = vadd.f32 %v3529_v14, %v8827_v42  ;;  %v4481_v14 = vsel %vm2210_vm2, %v4446_v12, 0 }
 0xdb8   : > { %v3532_v19 = vadd.f32 %v3531_v16, %v3360_v11  ;;  %v3533_v22 = vpop.f32.mrb[31].mxu1 }
 0xdb9   : > { %v3534_v24 = vadd.f32 %v3533_v22, %v8827_v42  ;;  %v8876_v22 = vrot.slane %v3326_v18, %v8076_v38 }
 0xdba   : > { %v8831_v26 = vpack.c.bf16 %v3532_v19, %v3528_v49  ;;  %v8873_v19 = vrot.slane %v3326_v18, %v8081_v40 }
 0xdbb   : > { %v8834_v46 = vpack.c.bf16 %v3534_v24, %v3530_v23 }
 0xdbc   : > { %4413 = vrot.lane.b32.xlu0 %v8831_v26, %s7724_s1  ;;  %6812 = vmatmul.mubr.msk.bf16.vlgmr.msra.gmra.mrb[76].mxu0 %vm2210_vm2, %v8831_v26 }
 0xdbd   : > { %v3537_v5 = vpop.f32.mrb[32].mxu1  ;;  %4292 = vmatprep.mubr.bf16.mxu0 %v9740_v33  ;;  %4484 = vmatpush1.bf16.xpose.msra.mxu0 %v4454_v1 }
 0xdbe   : > { %v3538_v21 = vadd.f32 %v3537_v5, %v3360_v11  ;;  %v8841_v45 = vpop.f32.mrb[33].mxu1  ;;  %4485 = vmatprep.subr.bf16.mxu0 %v9740_v33  ;;  %v4478_v11 = vsel %vm2210_vm2, %v4444_v10, 0 }
 0xdbf   : > { %v3541_v37 = vpop.f32.mrb[34].mxu1 }
 0xdc0   : > { %v8844_v20 = vpack.c.bf16 %v3538_v21, %v3538_v21  ;;  %v3542_v63 = vpop.f32.mrb[35].mxu1 }
 0xdc2   : > { %4415 = vrot.lane.b32.xlu1 %v8844_v20, %s7724_s1 }
 0xdc4   : > { %6813 = vmatmul.mubr.msk.bf16.gmra.mrb[80].mxu0 %vm2210_vm2, %v8844_v20 }
 0xdc5   : > { %4486 = vmatpush1.bf16.xpose.msra.mxu0 %v4457_v9  ;;  %4515 = vmatprep.mubr.bf16.mxu0 %v9740_v33 }
 0xdc6   : > { %4487 = vmatprep.subr.bf16.mxu0 %v9740_v33 }
 0xdcd   : > { %4488 = vmatpush1.bf16.xpose.msra.mxu0 %v4460_v60 }
 0xdce   : > { %4489 = vmatprep.subr.bf16.mxu0 %v9740_v33 }
 0xdd5   : > { %4490 = vmatpush1.bf16.xpose.msra.mxu0 %v4463_v8 }
 0xdd6   : > { %4491 = vmatprep.subr.bf16.mxu0 %v9740_v33 }
 0xddd   : > { %4492 = vmatpush1.bf16.xpose.msra.mxu0 %v4466_v32 }
 0xdde   : > { %4493 = vmatprep.subr.bf16.mxu0 %v9740_v33 }
 0xde5   : > { %4494 = vmatpush1.bf16.xpose.msra.mxu0 %v4469_v43  ;;  %v4093_v16 = vpop.f32.mrb[36].mxu1 }
 0xde6   : > { %4495 = vmatprep.subr.bf16.mxu0 %v9740_v33  ;;  %v4095_v49 = vpop.f32.mrb[37].mxu1  ;;  %v4094_v1 = vadd.f32 %v4093_v16, %v8873_v19 }
 0xde7   : > { %v4097_v23 = vpop.f32.mrb[38].mxu1  ;;  %v4096_v5 = vadd.f32 %v4095_v49, %v8876_v22 }
 0xde8   : > { %v4099_v24 = vpop.f32.mrb[39].mxu1  ;;  %v4098_v21 = vadd.f32 %v4097_v23, %v8873_v19 }
 0xde9   : > { %v4100_v37 = vadd.f32 %v4099_v24, %v8876_v22 }
 0xdea   : > { %v8882_v51 = vpack.c.bf16 %v4098_v21, %v4094_v1 }
 0xdeb   : > { %v8884_v63 = vpack.c.bf16 %v4100_v37, %v4096_v5 }
 0xdec   : > { %4364 = vmatpush1.bf16.msra.mxu1 %v8882_v51 }
 0xded   : > { %4496 = vmatpush1.bf16.xpose.msra.mxu0 %v4472_v27  ;;  %v4103_v9 = vpop.f32.mrb[40].mxu1  ;;  %4365 = vmatprep.subr.bf16.mxu1 %v9740_v33 }
 0xdee   : > { %4497 = vmatprep.subr.bf16.mxu0 %v9740_v33  ;;  %v4104_v3 = vadd.f32 %v4103_v9, %v8873_v19  ;;  %v4105_v60 = vpop.f32.mrb[41].mxu1 }
 0xdef   : > { %v4106_v6 = vadd.f32 %v4105_v60, %v8876_v22  ;;  %v4107_v8 = vpop.f32.mrb[42].mxu1 }
 0xdf0   : > { %v4108_v2 = vadd.f32 %v4107_v8, %v8873_v19  ;;  %v4109_v32 = vpop.f32.mrb[43].mxu1 }
 0xdf1   : > { %v4110_v44 = vadd.f32 %v4109_v32, %v8876_v22 }
 0xdf2   : > { %v8892_v43 = vpack.c.bf16 %v4108_v2, %v4104_v3 }
 0xdf3   : > { %v8894_v55 = vpack.c.bf16 %v4110_v44, %v4106_v6 }
 0xdf4   : > { %4366 = vmatpush1.bf16.msra.mxu1 %v8892_v43 }
 0xdf5   : > { %4498 = vmatpush1.bf16.xpose.msra.mxu0 %v4475_v34  ;;  %v4113_v27 = vpop.f32.mrb[44].mxu1  ;;  %4367 = vmatprep.subr.bf16.mxu1 %v9740_v33 }
 0xdf6   : > { %4499 = vmatprep.subr.bf16.mxu0 %v9740_v33  ;;  %v4115_v58 = vpop.f32.mrb[45].mxu1  ;;  %v4114_v34 = vadd.f32 %v4113_v27, %v8873_v19 }
 0xdf7   : > { %v4116_v10 = vadd.f32 %v4115_v58, %v8876_v22 }
 0xdfd   : > { %4500 = vmatpush1.bf16.xpose.msra.mxu0 %v4478_v11  ;;  %v4117_v11 = vpop.f32.mrb[46].mxu1 }
 0xdfe   : > { %4501 = vmatprep.subr.bf16.mxu0 %v9740_v33  ;;  %v4118_v12 = vadd.f32 %v4117_v11, %v8873_v19 }
 0xe00   : > { %v8902_v18 = vpack.c.bf16 %v4118_v12, %v4114_v34 }
 0xe02   : > { %4368 = vmatpush1.bf16.msra.mxu1 %v8902_v18 }
 0xe03   : > { %4369 = vmatprep.subr.bf16.mxu1 %v9740_v33 }
 0xe05   : > { %4502 = vmatpush1.bf16.xpose.msra.mxu0 %v4481_v14  ;;  %v4119_v14 = vpop.f32.mrb[47].mxu1 }
 0xe06   : > { %4995 = vmatprep.subr.bf16.mxu0 %v9740_v33  ;;  %v4120_v16 = vadd.f32 %v4119_v14, %v8876_v22  ;;  %v4123_v23 = vpop.f32.mrb[48].mxu1 }
 0xe07   : > { %v4124_v1 = vadd.f32 %v4123_v23, %v8873_v19  ;;  %v4125_v5 = vpop.f32.mrb[49].mxu1 }
 0xe08   : > { %v8904_v49 = vpack.c.bf16 %v4120_v16, %v4116_v10  ;;  %v4126_v21 = vadd.f32 %v4125_v5, %v8876_v22  ;;  %v4127_v37 = vpop.f32.mrb[50].mxu1 }
 0xe09   : > { %v4128_v9 = vadd.f32 %v4127_v37, %v8873_v19  ;;  %v4129_v3 = vpop.f32.mrb[51].mxu1 }
 0xe0a   : > { %v4130_v60 = vadd.f32 %v4129_v3, %v8876_v22  ;;  %v4133_v32 = vpop.f32.mrb[52].mxu1 }
 0xe0b   : > { %v8914_v6 = vpack.c.bf16 %v4128_v9, %v4124_v1  ;;  %v4134_v44 = vadd.f32 %v4133_v32, %v8873_v19  ;;  %v4135_v27 = vpop.f32.mrb[53].mxu1 }
 0xe0c   : > { %v8916_v8 = vpack.c.bf16 %v4130_v60, %v4126_v21  ;;  %v4136_v58 = vadd.f32 %v4135_v27, %v8876_v22  ;;  %v4137_v34 = vpop.f32.mrb[54].mxu1 }
 0xe0d   : > { %4370 = vmatpush1.bf16.msra.mxu1 %v8914_v6  ;;  %v4138_v10 = vadd.f32 %v4137_v34, %v8873_v19  ;;  %v4139_v11 = vpop.f32.mrb[55].mxu1 }
 0xe0e   : > { %9868 = vst [vmem:[#allocation52_spill] sm:$0xff] %v8916_v8  ;;  %4371 = vmatprep.subr.bf16.mxu1 %v9740_v33  ;;  %v4140_v12 = vadd.f32 %v4139_v11, %v8876_v22  ;;  %v4143_v14 = vpop.f32.mrb[56].mxu1 }
 0xe0f   : > { %v8925_v16 = vpack.c.bf16 %v4138_v10, %v4134_v44  ;;  %v4144_v23 = vadd.f32 %v4143_v14, %v8873_v19 }
 0xe10   : > { %v8928_v1 = vpack.c.bf16 %v4140_v12, %v4136_v58 }
 0xe11   : > { %9869 = vst [vmem:[#allocation53_spill] sm:$0xff] %v8925_v16  ;;  %4372 = vmatpush1.bf16.msra.mxu1 %v8925_v16 }
 0xe12   : > { %9870 = vst [vmem:[#allocation54_spill] sm:$0xff] %v8928_v1  ;;  %4373 = vmatprep.subr.bf16.mxu1 %v9740_v33 }
 0xe2e   : > { %v4414_v24 = vpop.permute.xlu0 %4413 }
 0xe2f   : > { %6816 = vmatmul.mubr.msk.bf16.vlgmr.msra.gmra.mrb[84].mxu0 %vm2210_vm2, %v4414_v24  ;;  %v4145_v24 = vpop.f32.mrb[57].mxu1 }
 0xe30   : > { %4525 = vmatprep.mubr.bf16.mxu0 %v9740_v33  ;;  %v4146_v5 = vadd.f32 %v4145_v24, %v8876_v22  ;;  %v4147_v21 = vpop.f32.mrb[58].mxu1 }
 0xe31   : > { %v4148_v37 = vadd.f32 %v4147_v21, %v8873_v19  ;;  %v4149_v9 = vpop.f32.mrb[59].mxu1 }
 0xe32   : > { %v4150_v3 = vadd.f32 %v4149_v9, %v8876_v22  ;;  %v4153_v60 = vpop.f32.mrb[60].mxu1 }
 0xe33   : > { %v4154_v32 = vadd.f32 %v4153_v60, %v8873_v19  ;;  %v4155_v44 = vpop.f32.mrb[61].mxu1 }
 0xe34   : > { %v4416_v2 = vpop.permute.xlu1 %4415  ;;  %v8938_v27 = vpack.c.bf16 %v4150_v3, %v4146_v5  ;;  %v4156_v58 = vadd.f32 %v4155_v44, %v8876_v22  ;;  %v4157_v34 = vpop.f32.mrb[62].mxu1 }
 0xe35   : > { %v4158_v10 = vadd.f32 %v4157_v34, %v8873_v19  ;;  %v4159_v11 = vpop.f32.mrb[63].mxu1 }
 0xe36   : > { %9871 = vst [vmem:[#allocation55_spill] sm:$0xff] %v8938_v27  ;;  %v4160_v12 = vadd.f32 %v4159_v11, %v8876_v22  ;;  %v4163_v14 = vpop.f32.mrb[64].mxu1 }
 0xe37   : > { %6817 = vmatmul.mubr.msk.bf16.gmra.mrb[88].mxu0 %vm2210_vm2, %v4416_v2  ;;  %v8935_v2 = vpack.c.bf16 %v4148_v37, %v4144_v23  ;;  %v8945_v23 = vpack.c.bf16 %v4158_v10, %v4154_v32  ;;  %v4164_v24 = vadd.f32 %v4163_v14, %v8873_v19  ;;  %v4165_v21 = vpop.f32.mrb[65].mxu1 }
 0xe38   : > { %v8948_v5 = vpack.c.bf16 %v4160_v12, %v4156_v58  ;;  %v4166_v37 = vadd.f32 %v4165_v21, %v8876_v22  ;;  %v4167_v9 = vpop.f32.mrb[66].mxu1 }
 0xe39   : > { %4374 = vmatpush1.bf16.msra.mxu1 %v8935_v2  ;;  %9872 = vst [vmem:[#allocation56_spill] sm:$0xff] %v8945_v23  ;;  %v4168_v3 = vadd.f32 %v4167_v9, %v8873_v19  ;;  %v4169_v60 = vpop.f32.mrb[67].mxu1  ;;  %v8971_v9 = vld [vmem:[%s9875_s24] sm:$0xff] }
 0xe3a   : > { %4375 = vmatprep.subr.bf16.mxu1 %v9740_v33  ;;  %9873 = vst [vmem:[#allocation57_spill] sm:$0xff] %v8948_v5  ;;  %v4170_v44 = vadd.f32 %v4169_v60, %v8876_v22  ;;  %v4173_v34 = vpop.f32.mrb[68].mxu1  ;;  %v8974_v60 = vld [vmem:[%s9875_s24 + $0x18] sm:$0xff] }
 0xe3b   : > { %v8955_v32 = vpack.c.bf16 %v4168_v3, %v4164_v24  ;;  %v4174_v58 = vadd.f32 %v4173_v34, %v8873_v19  ;;  %v4175_v10 = vpop.f32.mrb[69].mxu1  ;;  %v8968_v24 = vld [vmem:[%s9874_s15 + $0x8] sm:$0xff]  ;;  %v8980_v34 = vld [vmem:[%s9875_s24 + $0x10] sm:$0xff] }
 0xe3c   : > { %v8958_v11 = vpack.c.bf16 %v4170_v44, %v4166_v37  ;;  %v4177_v12 = vpop.f32.mrb[70].mxu1 }
 0xe3d   : > { %4376 = vmatpush1.bf16.msra.mxu1 %v8945_v23  ;;  %9876 = vst [vmem:[#allocation58_spill] sm:$0xff] %v8955_v32  ;;  %v4178_v14 = vadd.f32 %v4177_v12, %v8873_v19  ;;  %v4179_v38 = vpop.f32.mrb[71].mxu1 }
 0xe3e   : > { %4377 = vmatprep.subr.bf16.mxu1 %v9740_v33  ;;  %9877 = vst [vmem:[#allocation59_spill] sm:$0xff] %v8958_v11 }
 0xe3f   : > { %v8963_v21 = vpack.c.bf16 %v4178_v14, %v4174_v58 }
 0xe41   : > { %4378 = vmatpush1.bf16.msra.mxu1 %v8955_v32  ;;  %9878 = vst [vmem:[#allocation60_spill] sm:$0xff] %v8963_v21 }
 0xe42   : > { %4379 = vmatprep.subr.bf16.mxu1 %v9740_v33 }
 0xe45   : > { %4380 = vmatpush1.bf16.msra.mxu1 %v8963_v21 }
 0xe46   : > { %4381 = vmatprep.subr.bf16.mxu1 %v9740_v33 }
 0xe8f   : > { %v4284_v3 = vpop.f32.mrb[76].mxu0 }
 0xe90   : > { %v4286_v37 = vpop.f32.mrb[77].mxu0  ;;  %v8983_v58 = vadd.f32 %v4284_v3, %v8971_v9 }
 0xe91   : > { %v8977_v44 = vadd.f32 %v4286_v37, %v8968_v24  ;;  %v4288_v12 = vpop.f32.mrb[78].mxu0 }
 0xe92   : > { %v4290_v14 = vpop.f32.mrb[79].mxu0  ;;  %v8991_v39 = vadd.f32 %v4288_v12, %v8980_v34  ;;  %v4176_v12 = vadd.f32 %v4175_v10, %v8876_v22 }
 0xe93   : > { %v8986_v33 = vadd.f32 %v4290_v14, %v8974_v60  ;;  %v4302_v48 = vsel %vm2552_vm5, %v8977_v44, -inf }
 0xe94   : > { %v4303_v47 = vmax.f32 %v8983_v58, %v4302_v48  ;;  %v4180_v48 = vadd.f32 %v4179_v38, %v8876_v22  ;;  %v9018_v38 = vld [vmem:[%s9875_s24 + $0x28] sm:$0xff] }
 0xe95   : > { %v4306_v37 = vsel %vm2552_vm5, %v8986_v33, -inf  ;;  %9880 = vst [vmem:[#allocation62_spill] sm:$0xff] %v9018_v38 }
 0xe96   : > { %4304 = vmax.xlane.f32.xlu0 %v4303_v47  ;;  %v4307_v17 = vmax.f32 %v8991_v39, %v4306_v37  ;;  %v9005_v47 = vpack.c.bf16 %v4180_v48, %v4176_v12  ;;  %v4183_v12 = vpop.f32.mrb[72].mxu1 }
 0xe97   : > { %v4294_v3 = vpop.f32.mrb[80].mxu0  ;;  %v4185_v48 = vpop.f32.mrb[73].mxu1 }
 0xe98   : > { %v4296_v15 = vpop.f32.mrb[81].mxu0  ;;  %4308 = vmax.xlane.f32.xlu1 %v4307_v17  ;;  %9879 = vst [vmem:[#allocation61_spill] sm:$0xff] %v9005_v47  ;;  %v9024_v17 = vld [vmem:[%s9875_s24 + $0x20] sm:$0xff]  ;;  %v4187_v27 = vpop.f32.mrb[74].mxu1 }
 0xe99   : > { %v4298_v14 = vpop.f32.mrb[82].mxu0  ;;  %9881 = vst [vmem:[#allocation63_spill] sm:$0xff] %v9024_v17  ;;  %v9029_v37 = vadd.f32 %v4294_v3, %v9024_v17  ;;  %v4186_v3 = vadd.f32 %v4185_v48, %v8876_v22 }
 0xe9a   : > { %v4299_v13 = vpop.f32.mrb[83].mxu0 }
 0xe9b   : > { %v9021_v13 = vadd.f32 %v4296_v15, %v9018_v38 }
 0xe9d   : > { %v4310_v10 = vsel %vm2552_vm5, %v9021_v13, -inf }
 0xe9e   : > { %v4311_v14 = vmax.f32 %v9029_v37, %v4310_v10 }
 0xea9   : > { %4601 = vrot.lane.b32.xlu1 %v8892_v43, %s7724_s1 }
 0xeac   : > { %4599 = vrot.lane.b32.xlu0 %v8882_v51, %s7724_s1 }
 0xead   : > { %4607 = vrot.lane.b32.xlu1 %v8925_v16, %s7724_s1 }
 0xeb0   : > { %4603 = vrot.lane.b32.xlu0 %v8902_v18, %s7724_s1 }
 0xeb1   : > { %4611 = vrot.lane.b32.xlu1 %v8945_v23, %s7724_s1  ;;  %v4188_v23 = vadd.f32 %v4187_v27, %v8873_v19 }
 0xeb4   : > { %4605 = vrot.lane.b32.xlu0 %v8914_v6, %s7724_s1 }
 0xeb5   : > { %4613 = vrot.lane.b32.xlu1 %v8955_v32, %s7724_s1 }
 0xeb9   : > { %4615 = vrot.lane.b32.xlu1 %v8963_v21, %s7724_s1  ;;  %v4184_v21 = vadd.f32 %v4183_v12, %v8873_v19 }
 0xebb   : > { %v9050_v8 = vpack.c.bf16 %v4188_v23, %v4184_v21 }
 0xebd   : > { %9882 = vst [vmem:[#allocation64_spill] sm:$0xff] %v9050_v8  ;;  %4382 = vmatpush1.bf16.msra.mxu1 %v9050_v8 }
 0xed3   : > { %4312 = vmax.xlane.f32.xlu0 %v4311_v14 }
 0xf02   : > { %v4517_v40 = vpop.f32.mrb[84].mxu0 }
 0xf03   : > { %v4519_v47 = vpop.f32.mrb[85].mxu0  ;;  %v9037_v5 = vadd.f32 %v4517_v40, %v8971_v9 }
 0xf04   : > { %v9033_v11 = vadd.f32 %v4519_v47, %v8968_v24  ;;  %v4521_v15 = vpop.f32.mrb[86].mxu0  ;;  %v4189_v47 = vpop.f32.mrb[75].mxu1 }
 0xf05   : > { %v4523_v32 = vpop.f32.mrb[87].mxu0  ;;  %v4190_v12 = vadd.f32 %v4189_v47, %v8876_v22  ;;  %v9053_v48 = vadd.f32 %v4521_v15, %v8980_v34 }
 0xf06   : > { %v9041_v10 = vadd.f32 %v4523_v32, %v8974_v60  ;;  %v4534_v14 = vsel %vm2552_vm5, %v9033_v11, -inf }
 0xf07   : > { %v4535_v16 = vmax.f32 %v9037_v5, %v4534_v14  ;;  %v9055_v32 = vpack.c.bf16 %v4190_v12, %v4186_v3  ;;  %v9884_v14 = vmov 0  }
 0xf08   : > { %v4538_v40 = vsel %vm2552_vm5, %v9041_v10, -inf  ;;  %4635 = vmatprep.subr.bf16.mxu1 %v9884_v14 }
 0xf09   : > { %4536 = vmax.xlane.f32.xlu0 %v4535_v16  ;;  %9883 = vst [vmem:[#allocation65_spill] sm:$0xff] %v9055_v32  ;;  %v4539_v27 = vmax.f32 %v9053_v48, %v4538_v40 }
 0xf0a   : > { %v4527_v1 = vpop.f32.mrb[88].mxu0 }
 0xf0b   : > { %v4529_v19 = vpop.f32.mrb[89].mxu0  ;;  %v9064_v23 = vadd.f32 %v4527_v1, %v9024_v17 }
 0xf0c   : > { %v9061_v22 = vadd.f32 %v4529_v19, %v9018_v38  ;;  %v4531_v47 = vpop.f32.mrb[90].mxu0 }
 0xf0d   : > { %v4532_v21 = vpop.f32.mrb[91].mxu0  ;;  %4540 = vmax.xlane.f32.xlu0 %v4539_v27 }
 0xf0e   : > { %v4542_v16 = vsel %vm2552_vm5, %v9061_v22, -inf }
 0xf0f   : > { %v4543_v15 = vmax.f32 %v9064_v23, %v4542_v16 }
 0xf11   : > { %4544 = vmax.xlane.f32.xlu1 %v4543_v15 }
 0xf23   : > { %4609 = vrot.lane.b32.xlu0 %v8935_v2, %s7724_s1  ;;  %v4305_v3 = vpop.xlane.xlu0 %4304 }
 0xf24   : > { %v4314_v12 = vsub.f32 %v8983_v58, %v4305_v3  ;;  %v4315_v40 = vsub.f32 %v8977_v44, %v4305_v3 }
 0xf25   : > { %v4309_v19 = vpop.xlane.xlu1 %4308 }
 0xf26   : > { %v4320_v47 = vmul.f32 1.442695, %v4314_v12  ;;  %v4322_v1 = vmul.f32 1.442695, %v4315_v40  ;;  %v4317_v27 = vsub.f32 %v8986_v33, %v4309_v19  ;;  %v4316_v21 = vsub.f32 %v8991_v39, %v4309_v19 }
 0xf27   : > { %v9089_v12 = vpop.permute.xlu0 %4599 }
 0xf28   : > { %7580 = vpow2.f32 %v4320_v47  ;;  %v4326_v32 = vmul.f32 1.442695, %v4317_v27  ;;  %v4324_v16 = vmul.f32 1.442695, %v4316_v21 }
 0xf29   : > { %7582 = vpow2.f32 %v4322_v1 }
 0xf2a   : > { %7584 = vpow2.f32 %v4326_v32 }
 0xf2b   : > { %7586 = vpow2.f32 %v4324_v16  ;;  %v9091_v40 = vpop.permute.xlu0 %4603 }
 0xf2f   : > { %v9095_v19 = vpop.permute.xlu0 %4605 }
 0xf32   : > { %v9075_v15 = vpop.eup %7580 }
 0xf33   : > { %v9077_v17 = vpop.eup %7582 }
 0xf34   : > { %v4332_v44 = vsel %vm2552_vm5, %v9077_v17, 0.0  ;;  %v9082_v3 = vpop.eup %7584 }
 0xf35   : > { %v4333_v58 = vadd.f32 %v9075_v15, %v4332_v44  ;;  %v9084_v33 = vpop.eup %7586  ;;  %v4336_v39 = vsel %vm2552_vm5, %v9082_v3, 0.0 }
 0xf36   : > { %v4337_v32 = vadd.f32 %v9084_v33, %v4336_v39 }
 0xf37   : > { %4334 = vadd.xlane.f32.xlu1 %v4333_v58 }
 0xf42   : > { %4338 = vadd.xlane.f32.xlu0 %v4337_v32 }
 0xf58   : > { %4617 = vrot.lane.b32.xlu0 %v9050_v8, %s7724_s1 }
 0xf60   : > { %v4313_v47 = vpop.xlane.xlu0 %4312 }
 0xf61   : > { %v4318_v1 = vsub.f32 %v9029_v37, %v4313_v47  ;;  %v4319_v27 = vsub.f32 %v9021_v13, %v4313_v47 }
 0xf63   : > { %v4328_v21 = vmul.f32 1.442695, %v4318_v1  ;;  %v4330_v16 = vmul.f32 1.442695, %v4319_v27 }
 0xf65   : > { %7588 = vpow2.f32 %v4328_v21 }
 0xf66   : > { %7590 = vpow2.f32 %v4330_v16 }
 0xf6f   : > { %v9099_v44 = vpop.eup %7588 }
 0xf70   : > { %v9101_v58 = vpop.eup %7590 }
 0xf71   : > { %v4340_v39 = vsel %vm2552_vm5, %v9101_v58, 0.0 }
 0xf72   : > { %v4341_v32 = vadd.f32 %v9099_v44, %v4340_v39 }
 0xf74   : > { %4342 = vadd.xlane.f32.xlu1 %v4341_v32 }
 0xf85   : > { %4727 = vrot.lane.b32.xlu1 %v8624_v54, %s7725_s2 }
 0xf96   : > { %v4537_v37 = vpop.xlane.xlu0 %4536 }
 0xf97   : > { %v4546_v13 = vsub.f32 %v9037_v5, %v4537_v37  ;;  %v4547_v47 = vsub.f32 %v9033_v11, %v4537_v37 }
 0xf99   : > { %v4552_v1 = vmul.f32 1.442695, %v4546_v13  ;;  %v4554_v27 = vmul.f32 1.442695, %v4547_v47 }
 0xf9a   : > { %v4541_v21 = vpop.xlane.xlu0 %4540 }
 0xf9b   : > { %7592 = vpow2.f32 %v4552_v1  ;;  %v4548_v16 = vsub.f32 %v9053_v48, %v4541_v21  ;;  %v4549_v38 = vsub.f32 %v9041_v10, %v4541_v21 }
 0xf9c   : > { %7594 = vpow2.f32 %v4554_v27 }
 0xf9d   : > { %v4556_v8 = vmul.f32 1.442695, %v4548_v16  ;;  %v4558_v39 = vmul.f32 1.442695, %v4549_v38  ;;  %v4602_v38 = vpop.permute.xlu1 %4601 }
 0xf9e   : > { %v4610_v16 = vpop.permute.xlu0 %4609 }
 0xf9f   : > { %7596 = vpow2.f32 %v4556_v8 }
 0xfa0   : > { %7598 = vpow2.f32 %v4558_v39 }
 0xfa1   : > { %v4608_v48 = vpop.permute.xlu1 %4607 }
 0xfa5   : > { %v9112_v32 = vpop.eup %7592  ;;  %v4612_v47 = vpop.permute.xlu1 %4611 }
 0xfa6   : > { %v9114_v54 = vpop.eup %7594 }
 0xfa7   : > { %v4564_v5 = vsel %vm2552_vm5, %v9114_v54, 0.0 }
 0xfa8   : > { %v4565_v11 = vadd.f32 %v9112_v32, %v4564_v5 }
 0xfa9   : > { %v9119_v37 = vpop.eup %7596  ;;  %v9126_v1 = vpop.permute.xlu1 %4613 }
 0xfaa   : > { %v9121_v13 = vpop.eup %7598  ;;  %4566 = vadd.xlane.f32.xlu0 %v4565_v11 }
 0xfab   : > { %v4568_v10 = vsel %vm2552_vm5, %v9121_v13, 0.0 }
 0xfac   : > { %v4569_v8 = vadd.f32 %v9119_v37, %v4568_v10 }
 0xfad   : > { %v9132_v27 = vpop.permute.xlu1 %4615 }
 0xfae   : > { %4570 = vadd.xlane.f32.xlu1 %v4569_v8 }
 0xfb1   : > { %v4545_v21 = vpop.xlane.xlu1 %4544 }
 0xfb2   : > { %v4550_v8 = vsub.f32 %v9064_v23, %v4545_v21 }
 0xfbf   : > { %4731 = vrot.lane.b32.xlu1 %v8640_v56, %s7725_s2 }
 0xfc0   : > { %4729 = vrot.lane.b32.xlu0 %v8626_v28, %s7725_s2 }
 0xfc3   : > { %4735 = vrot.lane.b32.xlu1 %v8663_v41, %s7725_s2 }
 0xfc4   : > { %4733 = vrot.lane.b32.xlu0 %v8642_v57, %s7725_s2  ;;  %v4335_v56 = vpop.xlane.xlu1 %4334 }
 0xfc5   : > { %7600 = vrcp.f32 %v4335_v56 }
 0xfc7   : > { %4739 = vrot.lane.b32.xlu1 %v8682_v30, %s7725_s2 }
 0xfc8   : > { %4737 = vrot.lane.b32.xlu0 %v8666_v62, %s7725_s2 }
 0xfcb   : > { %4743 = vrot.lane.b32.xlu1 %v8700_v36, %s7725_s2  ;;  %v4551_v36 = vsub.f32 %v9061_v22, %v4545_v21  ;;  %v3540_v22 = vadd.f32 %v8841_v45, %v8827_v42 }
 0xfcc   : > { %4741 = vrot.lane.b32.xlu0 %v8684_v59, %s7725_s2 }
 0xfcd   : > { %v4562_v56 = vmul.f32 1.442695, %v4551_v36 }
 0xfcf   : > { %4747 = vrot.lane.b32.xlu1 %v8719_v25, %s7725_s2  ;;  %v4339_v41 = vpop.xlane.xlu0 %4338  ;;  %v7601_v30 = vpop.eup %7600 }
 0xfd0   : > { %4745 = vrot.lane.b32.xlu0 %v8702_v35, %s7725_s2  ;;  %7602 = vrcp.f32 %v4339_v41  ;;  %v4347_v5 = vmul.f32 %v7601_v30, %v9075_v15  ;;  %v4348_v25 = vmul.f32 %v7601_v30, %v9077_v17 }
 0xfd1   : > { %7604 = vpow2.f32 %v4562_v56 }
 0xfd3   : > { %v4618_v42 = vpop.permute.xlu0 %4617 }
 0xfd4   : > { %4749 = vrot.lane.b32.xlu0 %v8721_v50, %s7725_s2 }
 0xfd8   : > { %4751 = vrot.lane.b32.xlu0 %v8736_v61, %s7725_s2  ;;  %v4560_v61 = vmul.f32 1.442695, %v4550_v8 }
 0xfda   : > { %v7603_v39 = vpop.eup %7602  ;;  %7606 = vpow2.f32 %v4560_v61 }
 0xfdb   : > { %v4349_v11 = vmul.f32 %v7603_v39, %v9084_v33  ;;  %v4350_v10 = vmul.f32 %v7603_v39, %v9082_v3 }
 0xfdc   : > { %4753 = vrot.lane.b32.xlu0 %v8738_v52, %s7725_s2 }
 0xfdd   : > { %v4354_v41 = vpack.c.bf16 %v4350_v10, %v4348_v25  ;;  %v4353_v50 = vpack.c.bf16 %v4349_v11, %v4347_v5 }
 0xfdf   : > { %6814 = vmatprep.mubr.msk.bf16.mxu1 %vm2552_vm5, %v4354_v41 }
 0xfe0   : > { %4755 = vrot.lane.b32.xlu0 %v8752_v4, %s7725_s2  ;;  %4396 = vmatmul.mubr.bf16.vlgmr.msra.gmra.mrb[76].mxu1 %v4353_v50  ;;  %v9174_v50 = vpop.eup %7604 }
 0xfe1   : > { %4636 = vmatpush1.bf16.msra.mxu1 %v9089_v12  ;;  %v4572_v17 = vsel %vm2552_vm5, %v9174_v50, 0.0 }
 0xfe2   : > { %4637 = vmatprep.subr.bf16.mxu1 %v9884_v14 }
 0xfe4   : > { %4757 = vrot.lane.b32.xlu0 %v8754_v7, %s7725_s2  ;;  %v9179_v4 = vpop.eup %7606 }
 0xfe5   : > { %4638 = vmatpush1.bf16.msra.mxu1 %v4602_v38 }
 0xfe6   : > { %4639 = vmatprep.subr.bf16.mxu1 %v9884_v14 }
 0xfe8   : > { %4759 = vrot.lane.b32.xlu0 %v8765_v53, %s7725_s2  ;;  %v4573_v53 = vadd.f32 %v9179_v4, %v4572_v17 }
 0xfe9   : > { %4640 = vmatpush1.bf16.msra.mxu1 %v9091_v40 }
 0xfea   : > { %4641 = vmatprep.subr.bf16.mxu1 %v9884_v14 }
 0xfec   : > { %4761 = vrot.lane.b32.xlu0 %v8767_v0, %s7725_s2 }
 0xfed   : > { %4642 = vmatpush1.bf16.msra.mxu1 %v9095_v19 }
 0xfee   : > { %4643 = vmatprep.subr.bf16.mxu1 %v9884_v14 }
 0xff0   : > { %4763 = vrot.lane.b32.xlu0 %v8778_v29, %s7725_s2  ;;  %v9199_v29 = vpack.c.bf16 %v3540_v22, %v3540_v22 }
 0xff1   : > { %4644 = vmatpush1.bf16.msra.mxu1 %v4608_v48 }
 0xff2   : > { %4645 = vmatprep.subr.bf16.mxu1 %v9884_v14 }
 0xff3   : > { %4574 = vadd.xlane.f32.xlu1 %v4573_v53 }
 0xff4   : > { %4765 = vrot.lane.b32.xlu0 %v8780_v31, %s7725_s2 }
 0xff5   : > { %4646 = vmatpush1.bf16.msra.mxu1 %v4610_v16 }
 0xff6   : > { %4647 = vmatprep.subr.bf16.mxu1 %v9884_v14 }
 0xff8   : > { %4707 = vrot.lane.b32.xlu0 %v8831_v26, %s7725_s2 }
 0xff9   : > { %4648 = vmatpush1.bf16.msra.mxu1 %v4612_v47 }
 0xffa   : > { %4649 = vmatprep.subr.bf16.mxu1 %v9884_v14 }
 0xffc   : > { %4711 = vrot.lane.b32.xlu0 %v8844_v20, %s7725_s2 }
 0xffd   : > { %4650 = vmatpush1.bf16.msra.mxu1 %v9126_v1 }
 0xffe   : > { %4651 = vmatprep.subr.bf16.mxu1 %v9884_v14 }
0x1000   : > { %4713 = vrot.lane.b32.xlu0 %v9199_v29, %s7725_s2 }
0x1001   : > { %v4343_v23 = vpop.xlane.xlu1 %4342  ;;  %4652 = vmatpush1.bf16.msra.mxu1 %v9132_v27 }
0x1002   : > { %7608 = vrcp.f32 %v4343_v23  ;;  %4653 = vmatprep.subr.bf16.mxu1 %v9884_v14 }
0x1004   : > { %4929 = vrot.lane.b32.xlu0 %v8882_v51, %s7725_s2  ;;  %4709 = vrot.lane.b32.xlu1 %v8834_v46, %s7725_s2 }
0x1005   : > { %4654 = vmatpush1.bf16.msra.mxu1 %v4618_v42  ;;  %v4728_v33 = vpop.permute.xlu1 %4727 }
0x1006   : > { %4813 = vmatprep.subr.bf16.mxu1 %v9884_v14 }
0x100c   : > { %v7609_v26 = vpop.eup %7608 }
0x100d   : > { %v4352_v45 = vmul.f32 %v7609_v26, %v9101_v58  ;;  %v4351_v20 = vmul.f32 %v7609_v26, %v9099_v44 }
0x100f   : > { %v4356_v15 = vpack.c.bf16 %v4352_v45, %v4352_v45  ;;  %v4355_v3 = vpack.c.bf16 %v4351_v20, %v4351_v20 }
0x1011   : > { %6815 = vmatprep.mubr.msk.bf16.mxu1 %vm2552_vm5, %v4356_v15 }
0x1012   : > { %4404 = vmatmul.mubr.bf16.gmra.mrb[80].mxu1 %v4355_v3 }
0x1037   : > { %v4567_v12 = vpop.xlane.xlu0 %4566 }
0x1038   : > { %7610 = vrcp.f32 %v4567_v12 }
0x103b   : > { %v4571_v51 = vpop.xlane.xlu1 %4570  ;;  %v4730_v40 = vpop.permute.xlu0 %4729 }
0x103c   : > { %7612 = vrcp.f32 %v4571_v51  ;;  %v4767_v27 = vsel %vm2552_vm5, %v4728_v33, %v4730_v40 }
0x103d   : > { %v4784_v30 = vsel %vm2210_vm2, %v4767_v27, 0 }
0x103f   : > { %v4734_v48 = vpop.permute.xlu0 %4733  ;;  %v4732_v39 = vpop.permute.xlu1 %4731 }
0x1042   : > { %v7611_v19 = vpop.eup %7610 }
0x1043   : > { %v4579_v47 = vmul.f32 %v7611_v19, %v9112_v32  ;;  %v4580_v44 = vmul.f32 %v7611_v19, %v9114_v54  ;;  %v4738_v36 = vpop.permute.xlu0 %4737  ;;  %v4768_v32 = vsel %vm2552_vm5, %v4732_v39, %v4734_v48 }
0x1044   : > { %v4787_v54 = vsel %vm2210_vm2, %v4768_v32, 0 }
0x1046   : > { %v7613_v38 = vpop.eup %7612 }
0x1047   : > { %v4581_v58 = vmul.f32 %v7613_v38, %v9119_v37  ;;  %v4582_v1 = vmul.f32 %v7613_v38, %v9121_v13  ;;  %v4742_v37 = vpop.permute.xlu0 %4741  ;;  %v4736_v13 = vpop.permute.xlu1 %4735 }
0x1048   : > { %v4769_v11 = vsel %vm2552_vm5, %v4736_v13, %v4738_v36 }
0x1049   : > { %v4586_v21 = vpack.c.bf16 %v4582_v1, %v4580_v44  ;;  %v4585_v16 = vpack.c.bf16 %v4581_v58, %v4579_v47  ;;  %v4790_v25 = vsel %vm2210_vm2, %v4769_v11, 0 }
0x104b   : > { %6818 = vmatprep.mubr.msk.bf16.mxu1 %vm2552_vm5, %v4586_v21  ;;  %v4746_v5 = vpop.permute.xlu0 %4745  ;;  %v4740_v10 = vpop.permute.xlu1 %4739 }
0x104c   : > { %4668 = vmatmul.mubr.bf16.vlgmr.msra.gmra.mrb[84].mxu1 %v4585_v16  ;;  %v4770_v56 = vsel %vm2552_vm5, %v4740_v10, %v4742_v37 }
0x104d   : > { %4814 = vmatpush1.bf16.xpose.msra.mxu1 %v4784_v30  ;;  %v4793_v41 = vsel %vm2210_vm2, %v4770_v56, 0 }
0x104e   : > { %4815 = vmatprep.subr.bf16.mxu1 %v9884_v14 }
0x104f   : > { %v4750_v8 = vpop.permute.xlu0 %4749  ;;  %v4744_v17 = vpop.permute.xlu1 %4743 }
0x1050   : > { %v4771_v53 = vsel %vm2552_vm5, %v4744_v17, %v4746_v5 }
0x1051   : > { %v4796_v23 = vsel %vm2210_vm2, %v4771_v53, 0 }
0x1053   : > { %v4752_v61 = vpop.permute.xlu0 %4751  ;;  %v4748_v42 = vpop.permute.xlu1 %4747 }
0x1054   : > { %v4772_v45 = vsel %vm2552_vm5, %v4748_v42, %v4750_v8 }
0x1055   : > { %4816 = vmatpush1.bf16.xpose.msra.mxu1 %v4787_v54  ;;  %v4799_v20 = vsel %vm2210_vm2, %v4772_v45, 0 }
0x1056   : > { %4817 = vmatprep.subr.bf16.mxu1 %v9884_v14 }
0x1057   : > { %v4754_v22 = vpop.permute.xlu0 %4753 }
0x1058   : > { %v4773_v3 = vsel %vm2552_vm5, %v4752_v61, %v4754_v22 }
0x1059   : > { %v4802_v33 = vsel %vm2210_vm2, %v4773_v3, 0 }
0x105b   : > { %v4756_v26 = vpop.permute.xlu0 %4755 }
0x105d   : > { %4818 = vmatpush1.bf16.xpose.msra.mxu1 %v4790_v25 }
0x105e   : > { %4819 = vmatprep.subr.bf16.mxu1 %v9884_v14 }
0x105f   : > { %v4758_v15 = vpop.permute.xlu0 %4757 }
0x1060   : > { %v4774_v40 = vsel %vm2552_vm5, %v4756_v26, %v4758_v15 }
0x1061   : > { %v4805_v38 = vsel %vm2210_vm2, %v4774_v40, 0 }
0x1063   : > { %v4760_v12 = vpop.permute.xlu0 %4759 }
0x1065   : > { %4820 = vmatpush1.bf16.xpose.msra.mxu1 %v4793_v41 }
0x1066   : > { %4821 = vmatprep.subr.bf16.mxu1 %v9884_v14 }
0x1067   : > { %v4762_v19 = vpop.permute.xlu0 %4761 }
0x1068   : > { %v4775_v47 = vsel %vm2552_vm5, %v4760_v12, %v4762_v19 }
0x1069   : > { %v4808_v44 = vsel %vm2210_vm2, %v4775_v47, 0 }
0x106b   : > { %v4764_v48 = vpop.permute.xlu0 %4763 }
0x106d   : > { %4822 = vmatpush1.bf16.xpose.msra.mxu1 %v4796_v23 }
0x106e   : > { %4823 = vmatprep.subr.bf16.mxu1 %v9884_v14 }
0x106f   : > { %v4766_v21 = vpop.permute.xlu0 %4765 }
0x1070   : > { %v4776_v36 = vsel %vm2552_vm5, %v4764_v48, %v4766_v21 }
0x1071   : > { %v4811_v39 = vsel %vm2210_vm2, %v4776_v36, 0  ;;  %v9892_v36 = vld [vmem:[#allocation60_spill] sm:$0xff] }
0x1073   : > { %v4708_v32 = vpop.permute.xlu0 %4707 }
0x1075   : > { %4824 = vmatpush1.bf16.xpose.msra.mxu1 %v4799_v20 }
0x1076   : > { %4825 = vmatprep.subr.bf16.mxu1 %v9884_v14 }
0x107d   : > { %4826 = vmatpush1.bf16.xpose.msra.mxu1 %v4802_v33 }
0x107e   : > { %4827 = vmatprep.subr.bf16.mxu1 %v9884_v14 }
0x1080   : > { %v4575_v51 = vpop.xlane.xlu1 %4574 }
0x1081   : > { %7614 = vrcp.f32 %v4575_v51 }
0x1085   : > { %4828 = vmatpush1.bf16.xpose.msra.mxu1 %v4805_v38 }
0x1086   : > { %4829 = vmatprep.subr.bf16.mxu1 %v9884_v14 }
0x108b   : > { %v7615_v58 = vpop.eup %7614 }
0x108c   : > { %v4584_v1 = vmul.f32 %v7615_v58, %v9174_v50  ;;  %v4583_v27 = vmul.f32 %v7615_v58, %v9179_v4  ;;  %v4710_v50 = vpop.permute.xlu1 %4709  ;;  %v4712_v4 = vpop.permute.xlu0 %4711 }
0x108d   : > { %4830 = vmatpush1.bf16.xpose.msra.mxu1 %v4808_v44  ;;  %v4715_v37 = vsel %vm2552_vm5, %v4708_v32, %v4710_v50  ;;  %v9895_v32 = vld [vmem:[#allocation62_spill] sm:$0xff] }
0x108e   : > { %v4588_v16 = vpack.c.bf16 %v4584_v1, %v4584_v1  ;;  %v4587_v30 = vpack.c.bf16 %v4583_v27, %v4583_v27  ;;  %4831 = vmatprep.subr.bf16.mxu1 %v9884_v14 }
0x1090   : > { %6819 = vmatprep.mubr.msk.bf16.mxu1 %vm2552_vm5, %v4588_v16  ;;  %v4714_v54 = vpop.permute.xlu0 %4713 }
0x1091   : > { %4676 = vmatmul.mubr.bf16.gmra.mrb[88].mxu1 %v4587_v30  ;;  %v4716_v13 = vsel %vm2552_vm5, %v4712_v4, %v4714_v54  ;;  %v9891_v30 = vld [vmem:[#allocation57_spill] sm:$0xff] }
0x1092   : > { %4845 = vmatprep.mubr.bf16.mxu1 %v9884_v14 }
0x1095   : > { %4832 = vmatpush1.bf16.xpose.msra.mxu1 %v4811_v39  ;;  %v9894_v39 = vld [vmem:[#allocation64_spill] sm:$0xff] }
0x1096   : > { %5245 = vmatprep.subr.bf16.mxu1 %v9884_v14 }
0x109c   : > { %6820 = vmatmul.mubr.msk.bf16.vlgmr.msra.gmra.mrb[92].mxu1 %vm2210_vm2, %v4715_v37  ;;  %v9896_v37 = vld [vmem:[#allocation63_spill] sm:$0xff] }
0x109d   : > { %4855 = vmatprep.mubr.bf16.mxu1 %v9884_v14 }
0x10a4   : > { %6821 = vmatmul.mubr.msk.bf16.gmra.mrb[96].mxu1 %vm2210_vm2, %v4716_v13 }
0x10b3   : > { %v9258_v5 = vpop.f32.mrb[76].mxu1 }
0x10b4   : > { %v4399_v11 = vpop.f32.mrb[77].mxu1 }
0x10b5   : > { %v9260_v25 = vpop.f32.mrb[78].mxu1  ;;  %v9897_v11 = vld [vmem:[#allocation61_spill] sm:$0xff] }
0x10b6   : > { %v4402_v10 = vpop.f32.mrb[79].mxu1 }
0x10b7   : > { %v4930_v10 = vpop.permute.xlu0 %4929 }
0x10e5   : > { %v9262_v8 = vpop.f32.mrb[80].mxu1 }
0x10e6   : > { %v4407_v56 = vpop.f32.mrb[81].mxu1 }
0x10e7   : > { %v4408_v41 = vpop.f32.mrb[82].mxu1 }
0x10e8   : > { %v4409_v61 = vpop.f32.mrb[83].mxu1 }
0x111f   : > { %v9264_v17 = vpop.f32.mrb[84].mxu1 }
0x1120   : > { %v4671_v53 = vpop.f32.mrb[85].mxu1 }
0x1121   : > { %v9266_v22 = vpop.f32.mrb[86].mxu1 }
0x1122   : > { %v7103_v23 = vpack.i.bf16 %v9266_v22, %v9264_v17  ;;  %v4674_v42 = vpop.f32.mrb[87].mxu1 }
0x1164   : > { %v9270_v26 = vpop.f32.mrb[88].mxu1 }
0x1165   : > { %v4679_v45 = vpop.f32.mrb[89].mxu1 }
0x1166   : > { %v4680_v20 = vpop.f32.mrb[90].mxu1 }
0x1167   : > { %v4681_v15 = vpop.f32.mrb[91].mxu1 }
0x116f   : > { %v4847_v3 = vpop.f32.mrb[92].mxu1 }
0x1170   : > { %v4849_v33 = vpop.f32.mrb[93].mxu1  ;;  %v4848_v40 = vadd.f32 %v4847_v3, %v8971_v9  ;;  %v9885_v9 = vld [vmem:[#allocation54_spill] sm:$0xff] }
0x1171   : > { %v4850_v12 = vadd.f32 %v4849_v33, %v8968_v24  ;;  %v4851_v51 = vpop.f32.mrb[94].mxu1 }
0x1172   : > { %v4853_v19 = vpop.f32.mrb[95].mxu1  ;;  %v4852_v58 = vadd.f32 %v4851_v51, %v8980_v34  ;;  %v9890_v34 = vld [vmem:[#allocation58_spill] sm:$0xff] }
0x1173   : > { %v4864_v38 = vsel %vm2552_vm5, %v4850_v12, -inf  ;;  %v4854_v48 = vadd.f32 %v4853_v19, %v8974_v60  ;;  %v9886_v60 = vld [vmem:[#allocation52_spill] sm:$0xff] }
0x1174   : > { %v4865_v47 = vmax.f32 %v4848_v40, %v4864_v38 }
0x1175   : > { %v4868_v44 = vsel %vm2552_vm5, %v4854_v48, -inf }
0x1176   : > { %v4869_v1 = vmax.f32 %v4852_v58, %v4868_v44  ;;  %4866 = vmax.xlane.f32.xlu0 %v4865_v47 }
0x1177   : > { %v4857_v27 = vpop.f32.mrb[96].mxu1 }
0x1178   : > { %4870 = vmax.xlane.f32.xlu1 %v4869_v1  ;;  %v4859_v21 = vpop.f32.mrb[97].mxu1  ;;  %v9318_v54 = vadd.f32 %v4857_v27, %v9896_v37 }
0x1179   : > { %v4861_v16 = vpop.f32.mrb[98].mxu1  ;;  %v9313_v50 = vadd.f32 %v4859_v21, %v9895_v32 }
0x117a   : > { %v4862_v24 = vpop.f32.mrb[99].mxu1 }
0x117b   : > { %v4872_v4 = vsel %vm2552_vm5, %v9313_v50, -inf }
0x117c   : > { %v4873_v13 = vmax.f32 %v9318_v54, %v4872_v4 }
0x1189   : > { %4931 = vrot.lane.b32.xlu1 %v8884_v63, %s7725_s2 }
0x118c   : > { %4933 = vrot.lane.b32.xlu0 %v8892_v43, %s7725_s2  ;;  %v9887_v43 = vld [vmem:[#allocation53_spill] sm:$0xff] }
0x118d   : > { %4937 = vrot.lane.b32.xlu1 %v8902_v18, %s7725_s2  ;;  %v9888_v18 = vld [vmem:[#allocation56_spill] sm:$0xff] }
0x1190   : > { %4935 = vrot.lane.b32.xlu0 %v8894_v55, %s7725_s2 }
0x1191   : > { %4941 = vrot.lane.b32.xlu1 %v8914_v6, %s7725_s2  ;;  %v9889_v6 = vld [vmem:[#allocation55_spill] sm:$0xff] }
0x1194   : > { %4939 = vrot.lane.b32.xlu0 %v8904_v49, %s7725_s2 }
0x1195   : > { %4947 = vrot.lane.b32.xlu1 %v9885_v9, %s7725_s2 }
0x1198   : > { %4943 = vrot.lane.b32.xlu0 %v9886_v60, %s7725_s2 }
0x1199   : > { %4949 = vrot.lane.b32.xlu1 %v8935_v2, %s7725_s2  ;;  %v9893_v2 = vld [vmem:[#allocation59_spill] sm:$0xff] }
0x119c   : > { %4945 = vrot.lane.b32.xlu0 %v9887_v43, %s7725_s2 }
0x119d   : > { %4953 = vrot.lane.b32.xlu1 %v9888_v18, %s7725_s2 }
0x11a0   : > { %4951 = vrot.lane.b32.xlu0 %v9889_v6, %s7725_s2 }
0x11a1   : > { %4957 = vrot.lane.b32.xlu1 %v9890_v34, %s7725_s2 }
0x11a4   : > { %4955 = vrot.lane.b32.xlu0 %v9891_v30, %s7725_s2 }
0x11a5   : > { %4961 = vrot.lane.b32.xlu1 %v9892_v36, %s7725_s2 }
0x11a8   : > { %4959 = vrot.lane.b32.xlu0 %v9893_v2, %s7725_s2 }
0x11a9   : > { %4965 = vrot.lane.b32.xlu1 %v9894_v39, %s7725_s2 }
0x11c7   : > { %4874 = vmax.xlane.f32.xlu0 %v4873_v13 }
0x11dd   : > { %4963 = vrot.lane.b32.xlu0 %v9897_v11, %s7725_s2 }
0x1203   : > { %v4867_v56 = vpop.xlane.xlu0 %4866 }
0x1204   : > { %v4876_v41 = vsub.f32 %v4848_v40, %v4867_v56  ;;  %v4877_v61 = vsub.f32 %v4850_v12, %v4867_v56 }
0x1205   : > { %v4871_v53 = vpop.xlane.xlu1 %4870 }
0x1206   : > { %v4882_v42 = vmul.f32 1.442695, %v4876_v41  ;;  %v4884_v45 = vmul.f32 1.442695, %v4877_v61  ;;  %v4878_v20 = vsub.f32 %v4852_v58, %v4871_v53  ;;  %v4879_v15 = vsub.f32 %v4854_v48, %v4871_v53 }
0x1207   : > { %v4934_v3 = vpop.permute.xlu0 %4933 }
0x1208   : > { %7616 = vpow2.f32 %v4882_v42  ;;  %v4886_v33 = vmul.f32 1.442695, %v4878_v20  ;;  %v4888_v51 = vmul.f32 1.442695, %v4879_v15  ;;  %v9898_v15 = vld [vmem:[#allocation65_spill] sm:$0xff] }
0x1209   : > { %7618 = vpow2.f32 %v4884_v45  ;;  %v4932_v19 = vpop.permute.xlu1 %4931 }
0x120a   : > { %7620 = vpow2.f32 %v4886_v33  ;;  %v4969_v38 = vsel %vm2552_vm5, %v4930_v10, %v4932_v19 }
0x120b   : > { %7622 = vpow2.f32 %v4888_v51  ;;  %4996 = vmatpush1.bf16.msra.mxu0 %v4969_v38  ;;  %v4936_v47 = vpop.permute.xlu0 %4935 }
0x120c   : > { %4997 = vmatprep.subr.bf16.mxu0 %v9884_v14  ;;  %v4970_v40 = vsel %vm2552_vm5, %v4934_v3, %v4936_v47  ;;  %v9899_v3 = vld [vmem:[#allocation51_spill] sm:$0xff] }
0x120d   : > { %v4938_v12 = vpop.permute.xlu1 %4937 }
0x120f   : > { %4998 = vmatpush1.bf16.msra.mxu0 %v4970_v40  ;;  %v4940_v58 = vpop.permute.xlu0 %4939 }
0x1210   : > { %4999 = vmatprep.subr.bf16.mxu0 %v9884_v14  ;;  %v4971_v1 = vsel %vm2552_vm5, %v4938_v12, %v4940_v58 }
0x1211   : > { %v4942_v48 = vpop.permute.xlu1 %4941 }
0x1212   : > { %v9327_v44 = vpop.eup %7616 }
0x1213   : > { %v9330_v27 = vpop.eup %7618  ;;  %5000 = vmatpush1.bf16.msra.mxu0 %v4971_v1  ;;  %v4944_v21 = vpop.permute.xlu0 %4943 }
0x1214   : > { %v9332_v16 = vpop.eup %7620  ;;  %v4894_v24 = vsel %vm2552_vm5, %v9330_v27, 0.0  ;;  %5001 = vmatprep.subr.bf16.mxu0 %v9884_v14  ;;  %v4972_v36 = vsel %vm2552_vm5, %v4942_v48, %v4944_v21 }
0x1215   : > { %v9337_v43 = vpop.eup %7622  ;;  %v4948_v18 = vpop.permute.xlu1 %4947  ;;  %v4895_v34 = vadd.f32 %v9327_v44, %v4894_v24 }
0x1216   : > { %v4898_v39 = vsel %vm2552_vm5, %v9337_v43, 0.0 }
0x1217   : > { %4896 = vadd.xlane.f32.xlu1 %v4895_v34  ;;  %5002 = vmatpush1.bf16.msra.mxu0 %v4972_v36  ;;  %v4946_v32 = vpop.permute.xlu0 %4945  ;;  %v4899_v4 = vadd.f32 %v9332_v16, %v4898_v39 }
0x1218   : > { %5003 = vmatprep.subr.bf16.mxu0 %v9884_v14  ;;  %v4973_v13 = vsel %vm2552_vm5, %v4946_v32, %v4948_v18 }
0x1219   : > { %4900 = vadd.xlane.f32.xlu0 %v4899_v4  ;;  %v4950_v37 = vpop.permute.xlu1 %4949 }
0x121b   : > { %5004 = vmatpush1.bf16.msra.mxu0 %v4973_v13  ;;  %v4952_v10 = vpop.permute.xlu0 %4951 }
0x121c   : > { %5005 = vmatprep.subr.bf16.mxu0 %v9884_v14  ;;  %v4974_v56 = vsel %vm2552_vm5, %v4950_v37, %v4952_v10 }
0x121d   : > { %v4954_v41 = vpop.permute.xlu1 %4953 }
0x121f   : > { %5006 = vmatpush1.bf16.msra.mxu0 %v4974_v56  ;;  %v4956_v61 = vpop.permute.xlu0 %4955 }
0x1220   : > { %5007 = vmatprep.subr.bf16.mxu0 %v9884_v14  ;;  %v4975_v53 = vsel %vm2552_vm5, %v4954_v41, %v4956_v61 }
0x1221   : > { %v4958_v45 = vpop.permute.xlu1 %4957 }
0x1223   : > { %5008 = vmatpush1.bf16.msra.mxu0 %v4975_v53  ;;  %v4960_v42 = vpop.permute.xlu0 %4959 }
0x1224   : > { %5009 = vmatprep.subr.bf16.mxu0 %v9884_v14  ;;  %v4976_v20 = vsel %vm2552_vm5, %v4958_v45, %v4960_v42 }
0x1227   : > { %5010 = vmatpush1.bf16.msra.mxu0 %v4976_v20 }
0x1228   : > { %5047 = vrot.lane.b32.xlu1 %v8626_v28, %s7726_s7  ;;  %5011 = vmatprep.subr.bf16.mxu0 %v9884_v14 }
0x122c   : > { %5051 = vrot.lane.b32.xlu1 %v8666_v62, %s7726_s7 }
0x122f   : > { %4967 = vrot.lane.b32.xlu0 %v9898_v15, %s7725_s2 }
0x1230   : > { %5055 = vrot.lane.b32.xlu1 %v8702_v35, %s7726_s7 }
0x1233   : > { %5049 = vrot.lane.b32.xlu0 %v8642_v57, %s7726_s7 }
0x1237   : > { %5053 = vrot.lane.b32.xlu0 %v8684_v59, %s7726_s7 }
0x123b   : > { %5057 = vrot.lane.b32.xlu0 %v9899_v3, %s7726_s7 }
0x123f   : > { %5059 = vrot.lane.b32.xlu0 %v8738_v52, %s7726_s7  ;;  %v4962_v52 = vpop.permute.xlu1 %4961 }
0x1243   : > { %5061 = vrot.lane.b32.xlu0 %v8754_v7, %s7726_s7 }
0x1247   : > { %5063 = vrot.lane.b32.xlu0 %v8767_v0, %s7726_s7 }
0x124b   : > { %5065 = vrot.lane.b32.xlu0 %v8780_v31, %s7726_s7 }
0x124f   : > { %5043 = vrot.lane.b32.xlu0 %v8834_v46, %s7726_s7 }
0x1253   : > { %5045 = vrot.lane.b32.xlu0 %v9199_v29, %s7726_s7 }
0x1254   : > { %v4875_v28 = vpop.xlane.xlu0 %4874 }
0x1255   : > { %v4880_v57 = vsub.f32 %v9318_v54, %v4875_v28  ;;  %v4881_v62 = vsub.f32 %v9313_v50, %v4875_v28  ;;  %v4966_v54 = vpop.permute.xlu1 %4965 }
0x1257   : > { %v4890_v59 = vmul.f32 1.442695, %v4880_v57  ;;  %v4892_v35 = vmul.f32 1.442695, %v4881_v62 }
0x1258   : > { %v4964_v7 = vpop.permute.xlu0 %4963 }
0x1259   : > { %7624 = vpow2.f32 %v4890_v59  ;;  %v4977_v0 = vsel %vm2552_vm5, %v4962_v52, %v4964_v7 }
0x125a   : > { %7626 = vpow2.f32 %v4892_v35  ;;  %5012 = vmatpush1.bf16.msra.mxu0 %v4977_v0 }
0x125b   : > { %5013 = vmatprep.subr.bf16.mxu0 %v9884_v14 }
0x1263   : > { %v9383_v31 = vpop.eup %7624 }
0x1264   : > { %v9385_v46 = vpop.eup %7626 }
0x1265   : > { %v4902_v29 = vsel %vm2552_vm5, %v9385_v46, 0.0 }
0x1266   : > { %v4903_v50 = vadd.f32 %v9383_v31, %v4902_v29 }
0x1268   : > { %4904 = vadd.xlane.f32.xlu1 %v4903_v50 }
0x1279   : > { %5209 = vrot.lane.b32.xlu1 %v8884_v63, %s7726_s7 }
0x127d   : > { %5213 = vrot.lane.b32.xlu1 %v8904_v49, %s7726_s7 }
0x12a4   : > { %v4897_v33 = vpop.xlane.xlu1 %4896 }
0x12a5   : > { %7628 = vrcp.f32 %v4897_v33 }
0x12a6   : > { %v4901_v51 = vpop.xlane.xlu0 %4900 }
0x12a7   : > { %7630 = vrcp.f32 %v4901_v51 }
0x12a8   : > { %v5048_v48 = vpop.permute.xlu1 %5047 }
0x12a9   : > { %v5074_v24 = vsel %vm2210_vm2, %v5048_v48, 0 }
0x12aa   : > { %v4968_v19 = vpop.permute.xlu0 %4967 }
0x12ab   : > { %v4978_v38 = vsel %vm2552_vm5, %v4966_v54, %v4968_v19 }
0x12ac   : > { %5014 = vmatpush1.bf16.msra.mxu0 %v4978_v38 }
0x12ad   : > { %5103 = vmatprep.subr.bf16.mxu0 %v9884_v14 }
0x12ae   : > { %v5050_v18 = vpop.permute.xlu0 %5049 }
0x12af   : > { %v7629_v47 = vpop.eup %7628 }
0x12b0   : > { %v4909_v40 = vmul.f32 %v7629_v47, %v9327_v44  ;;  %v4910_v58 = vmul.f32 %v7629_v47, %v9330_v27  ;;  %v5077_v44 = vsel %vm2210_vm2, %v5050_v18, 0  ;;  %v5052_v27 = vpop.permute.xlu1 %5051  ;;  %v7664_v47 = vld [vmem:[%s9875_s24 + $0x8] sm:$0xff]  ;;  %v7667_v18 = vld [vmem:[%s9875_s24 + $0x10] sm:$0xff] }
0x12b1   : > { %v7631_v12 = vpop.eup %7630 }
0x12b2   : > { %v4911_v63 = vmul.f32 %v7631_v12, %v9332_v16  ;;  %v4912_v49 = vmul.f32 %v7631_v12, %v9337_v43  ;;  %v5080_v16 = vsel %vm2210_vm2, %v5052_v27, 0  ;;  %v5054_v43 = vpop.permute.xlu0 %5053 }
0x12b3   : > { %v5083_v34 = vsel %vm2210_vm2, %v5054_v43, 0 }
0x12b4   : > { %v4916_v1 = vpack.c.bf16 %v4912_v49, %v4910_v58  ;;  %v4915_v21 = vpack.c.bf16 %v4911_v63, %v4909_v40  ;;  %v5056_v36 = vpop.permute.xlu1 %5055  ;;  %v7665_v63 = vld [vmem:[%s9875_s24] sm:$0xff] }
0x12b5   : > { %v5086_v39 = vsel %vm2210_vm2, %v5056_v36, 0  ;;  %v7668_v36 = vld [vmem:[%s9875_s24 + $0x28] sm:$0xff] }
0x12b6   : > { %6822 = vmatprep.mubr.msk.bf16.mxu0 %vm2552_vm5, %v4916_v1  ;;  %v5058_v32 = vpop.permute.xlu0 %5057  ;;  %v7666_v1 = vld [vmem:[%s9875_s24 + $0x18] sm:$0xff] }
0x12b7   : > { %5028 = vmatmul.mubr.bf16.vlgmr.msra.gmra.mrb[92].mxu0 %v4915_v21  ;;  %v5089_v4 = vsel %vm2210_vm2, %v5058_v32, 0 }
0x12b8   : > { %5104 = vmatpush1.bf16.xpose.msra.mxu0 %v5074_v24 }
0x12b9   : > { %5105 = vmatprep.subr.bf16.mxu0 %v9884_v14 }
0x12ba   : > { %v5060_v37 = vpop.permute.xlu0 %5059 }
0x12bb   : > { %v5092_v13 = vsel %vm2210_vm2, %v5060_v37, 0 }
0x12be   : > { %v5062_v10 = vpop.permute.xlu0 %5061 }
0x12bf   : > { %v5095_v56 = vsel %vm2210_vm2, %v5062_v10, 0 }
0x12c0   : > { %5106 = vmatpush1.bf16.xpose.msra.mxu0 %v5077_v44 }
0x12c1   : > { %5107 = vmatprep.subr.bf16.mxu0 %v9884_v14 }
0x12c2   : > { %v5064_v41 = vpop.permute.xlu0 %5063 }
0x12c3   : > { %v5098_v53 = vsel %vm2210_vm2, %v5064_v41, 0 }
0x12c6   : > { %v5066_v45 = vpop.permute.xlu0 %5065 }
0x12c7   : > { %v5101_v20 = vsel %vm2210_vm2, %v5066_v45, 0 }
0x12c8   : > { %5108 = vmatpush1.bf16.xpose.msra.mxu0 %v5080_v16 }
0x12c9   : > { %5109 = vmatprep.subr.bf16.mxu0 %v9884_v14 }
0x12ca   : > { %v5044_v35 = vpop.permute.xlu0 %5043 }
0x12ce   : > { %v5046_v52 = vpop.permute.xlu0 %5045 }
0x12d0   : > { %5110 = vmatpush1.bf16.xpose.msra.mxu0 %v5083_v34 }
0x12d1   : > { %5111 = vmatprep.subr.bf16.mxu0 %v9884_v14 }
0x12d8   : > { %5112 = vmatpush1.bf16.xpose.msra.mxu0 %v5086_v39 }
0x12d9   : > { %5113 = vmatprep.subr.bf16.mxu0 %v9884_v14 }
0x12e0   : > { %5114 = vmatpush1.bf16.xpose.msra.mxu0 %v5089_v4  ;;  %v7669_v4 = vld [vmem:[%s9875_s24 + $0x20] sm:$0xff] }
0x12e1   : > { %5115 = vmatprep.subr.bf16.mxu0 %v9884_v14 }
0x12e8   : > { %5116 = vmatpush1.bf16.xpose.msra.mxu0 %v5092_v13 }
0x12e9   : > { %5117 = vmatprep.subr.bf16.mxu0 %v9884_v14 }
0x12f0   : > { %5118 = vmatpush1.bf16.xpose.msra.mxu0 %v5095_v56 }
0x12f1   : > { %5119 = vmatprep.subr.bf16.mxu0 %v9884_v14 }
0x12f5   : > { %v4905_v61 = vpop.xlane.xlu1 %4904 }
0x12f6   : > { %7632 = vrcp.f32 %v4905_v61 }
0x12f8   : > { %5120 = vmatpush1.bf16.xpose.msra.mxu0 %v5098_v53 }
0x12f9   : > { %v5210_v42 = vpop.permute.xlu1 %5209  ;;  %5121 = vmatprep.subr.bf16.mxu0 %v9884_v14 }
0x12fa   : > { %5246 = vmatpush1.bf16.msra.mxu1 %v5210_v42 }
0x12fb   : > { %5247 = vmatprep.subr.bf16.mxu1 %v9884_v14 }
0x12fd   : > { %v5214_v41 = vpop.permute.xlu1 %5213 }
0x1300   : > { %v7633_v3 = vpop.eup %7632  ;;  %5122 = vmatpush1.bf16.xpose.msra.mxu0 %v5101_v20 }
0x1301   : > { %v4914_v28 = vmul.f32 %v7633_v3, %v9385_v46  ;;  %v4913_v57 = vmul.f32 %v7633_v3, %v9383_v31 }
0x1303   : > { %v4918_v62 = vpack.c.bf16 %v4914_v28, %v4914_v28  ;;  %v4917_v59 = vpack.c.bf16 %v4913_v57, %v4913_v57 }
0x1305   : > { %6823 = vmatprep.mubr.msk.bf16.mxu0 %vm2552_vm5, %v4918_v62 }
0x1306   : > { %5036 = vmatmul.mubr.bf16.gmra.mrb[96].mxu0 %v4917_v59 }
0x1307   : > { %5135 = vmatprep.mubr.bf16.mxu0 %v9884_v14 }
0x130e   : > { %6824 = vmatmul.mubr.msk.bf16.vlgmr.msra.gmra.mrb[100].mxu0 %vm2210_vm2, %v5044_v35 }
0x130f   : > { %5145 = vmatprep.mubr.bf16.mxu0 %v9884_v14 }
0x1316   : > { %6825 = vmatmul.mubr.msk.bf16.gmra.mrb[104].mxu0 %vm2210_vm2, %v5046_v52 }
0x138a   : > { %v9428_v7 = vpop.f32.mrb[92].mxu0 }
0x138b   : > { %v5031_v0 = vpop.f32.mrb[93].mxu0 }
0x138c   : > { %v9430_v31 = vpop.f32.mrb[94].mxu0 }
0x138d   : > { %v7108_v46 = vpack.i.bf16 %v9430_v31, %v9428_v7  ;;  %v5034_v29 = vpop.f32.mrb[95].mxu0 }
0x13d9   : > { %v9434_v50 = vpop.f32.mrb[96].mxu0 }
0x13da   : > { %v5039_v54 = vpop.f32.mrb[97].mxu0 }
0x13db   : > { %v5040_v33 = vpop.f32.mrb[98].mxu0 }
0x13dc   : > { %v5041_v51 = vpop.f32.mrb[99].mxu0 }
0x13e1   : > { %v5137_v19 = vpop.f32.mrb[100].mxu0 }
0x13e2   : > { %v5139_v38 = vpop.f32.mrb[101].mxu0  ;;  %v5138_v58 = vadd.f32 %v7665_v63, %v5137_v19 }
0x13e3   : > { %v5140_v12 = vadd.f32 %v7664_v47, %v5139_v38  ;;  %v5141_v40 = vpop.f32.mrb[102].mxu0 }
0x13e4   : > { %v5143_v49 = vpop.f32.mrb[103].mxu0  ;;  %v5142_v44 = vadd.f32 %v7667_v18, %v5141_v40 }
0x13e5   : > { %v5154_v48 = vsel %vm2552_vm5, %v5140_v12, -inf  ;;  %v5144_v21 = vadd.f32 %v7666_v1, %v5143_v49 }
0x13e6   : > { %v5155_v24 = vmax.f32 %v5138_v58, %v5154_v48 }
0x13e7   : > { %v5158_v27 = vsel %vm2552_vm5, %v5144_v21, -inf }
0x13e8   : > { %v5159_v16 = vmax.f32 %v5142_v44, %v5158_v27  ;;  %5156 = vmax.xlane.f32.xlu0 %v5155_v24 }
0x13e9   : > { %v5147_v43 = vpop.f32.mrb[104].mxu0 }
0x13ea   : > { %5160 = vmax.xlane.f32.xlu1 %v5159_v16  ;;  %v5149_v34 = vpop.f32.mrb[105].mxu0  ;;  %v5148_v37 = vadd.f32 %v7669_v4, %v5147_v43 }
0x13eb   : > { %v5150_v39 = vadd.f32 %v7668_v36, %v5149_v34  ;;  %v5151_v32 = vpop.f32.mrb[106].mxu0 }
0x13ec   : > { %v5152_v13 = vpop.f32.mrb[107].mxu0 }
0x13ed   : > { %v5162_v10 = vsel %vm2552_vm5, %v5150_v39, -inf }
0x13ee   : > { %v5163_v56 = vmax.f32 %v5148_v37, %v5162_v10 }
0x13f0   : > { %5164 = vmax.xlane.f32.xlu1 %v5163_v56 }
0x13fe   : > { %5211 = vrot.lane.b32.xlu0 %v8894_v55, %s7726_s7 }
0x1401   : > { %5215 = vrot.lane.b32.xlu1 %v9886_v60, %s7726_s7 }
0x1402   : > { %5217 = vrot.lane.b32.xlu0 %v9885_v9, %s7726_s7 }
0x1475   : > { %v5157_v61 = vpop.xlane.xlu0 %5156 }
0x1476   : > { %v5166_v53 = vsub.f32 %v5138_v58, %v5157_v61  ;;  %v5167_v42 = vsub.f32 %v5140_v12, %v5157_v61  ;;  %v7400_v61 = vld [vmem:[%s7955_s19] ss:$8 sps:$4 sm:$0xff]  }
0x1477   : > { %v5161_v45 = vpop.xlane.xlu1 %5160 }
0x1478   : > { %v5172_v20 = vmul.f32 1.442695, %v5166_v53  ;;  %v5174_v3 = vmul.f32 1.442695, %v5167_v42  ;;  %v5168_v28 = vsub.f32 %v5142_v44, %v5161_v45  ;;  %v5169_v57 = vsub.f32 %v5144_v21, %v5161_v45  ;;  %v7402_v53 = vld [vmem:[%s7955_s19 + $0x4] ss:$8 sps:$4 sm:$0xff]  }
0x1479   : > { %v5212_v62 = vpop.permute.xlu0 %5211  ;;  %v7405_v42 = vld [vmem:[%s7955_s19 + $0x14] ss:$8 sps:$4 sm:$0xff]   ;;  %v7403_v45 = vld [vmem:[%s7955_s19 + $0x10] ss:$8 sps:$4 sm:$0xff]  }
0x147a   : > { %7634 = vpow2.f32 %v5172_v20  ;;  %v5176_v59 = vmul.f32 1.442695, %v5168_v28  ;;  %v5178_v35 = vmul.f32 1.442695, %v5169_v57  ;;  %5248 = vmatpush1.bf16.msra.mxu1 %v5212_v62  ;;  %v7408_v20 = vld [vmem:[%s7955_s19 + $0x24] ss:$8 sps:$4 sm:$0xff]  }
0x147b   : > { %7636 = vpow2.f32 %v5174_v3  ;;  %5249 = vmatprep.subr.bf16.mxu1 %v9884_v14  ;;  %v7406_v3 = vld [vmem:[%s7955_s19 + $0x20] ss:$8 sps:$4 sm:$0xff]   ;;  %v7411_v28 = vld [vmem:[%s7955_s19 + $0x34] ss:$8 sps:$4 sm:$0xff]   ;;  %v7409_v57 = vld [vmem:[%s7955_s19 + $0x30] ss:$8 sps:$4 sm:$0xff]  }
0x147c   : > { %7638 = vpow2.f32 %v5176_v59  ;;  %v7414_v62 = vld [vmem:[%s7955_s19 + $0x44] ss:$8 sps:$4 sm:$0xff]   ;;  %v7412_v59 = vld [vmem:[%s7955_s19 + $0x40] ss:$8 sps:$4 sm:$0xff]  }
0x147d   : > { %7640 = vpow2.f32 %v5178_v35  ;;  %v5165_v55 = vpop.xlane.xlu1 %5164  ;;  %v5218_v0 = vpop.permute.xlu0 %5217  ;;  %v7417_v35 = vld [vmem:[%s7955_s19 + $0x54] ss:$8 sps:$4 sm:$0xff]  }
0x147e   : > { %5250 = vmatpush1.bf16.msra.mxu1 %v5214_v41  ;;  %v5171_v47 = vsub.f32 %v5150_v39, %v5165_v55  ;;  %v5170_v12 = vsub.f32 %v5148_v37, %v5165_v55  ;;  %v7415_v55 = vld [vmem:[%s7955_s19 + $0x50] ss:$8 sps:$4 sm:$0xff]  }
0x147f   : > { %5251 = vmatprep.subr.bf16.mxu1 %v9884_v14 }
0x1480   : > { %v5182_v40 = vmul.f32 1.442695, %v5171_v47  ;;  %v5180_v63 = vmul.f32 1.442695, %v5170_v12  ;;  %v7435_v47 = vld [vmem:[%s7955_s19 + $0xb4] ss:$8 sps:$4 sm:$0xff]  }
0x1481   : > { %v5216_v9 = vpop.permute.xlu1 %5215  ;;  %v7433_v12 = vld [vmem:[%s7955_s19 + $0xb0] ss:$8 sps:$4 sm:$0xff]  }
0x1482   : > { %5252 = vmatpush1.bf16.msra.mxu1 %v5216_v9  ;;  %7642 = vpow2.f32 %v5182_v40  ;;  %v7420_v9 = vld [vmem:[%s7955_s19 + $0x64] ss:$8 sps:$4 sm:$0xff]  }
0x1483   : > { %5253 = vmatprep.subr.bf16.mxu1 %v9884_v14  ;;  %7644 = vpow2.f32 %v5180_v63 }
0x1484   : > { %v7635_v60 = vpop.eup %7634 }
0x1485   : > { %v7637_v52 = vpop.eup %7636 }
0x1486   : > { %v7639_v29 = vpop.eup %7638  ;;  %5254 = vmatpush1.bf16.msra.mxu1 %v5218_v0  ;;  %v5184_v54 = vsel %vm2552_vm5, %v7637_v52, 0.0  ;;  %v7421_v0 = vld [vmem:[%s7955_s19 + $0x70] ss:$8 sps:$4 sm:$0xff]  }
0x1487   : > { %v7641_v33 = vpop.eup %7640  ;;  %v5185_v51 = vadd.f32 %v7635_v60, %v5184_v54  ;;  %5255 = vmatprep.subr.bf16.mxu1 %v9884_v14  ;;  %v7424_v54 = vld [vmem:[%s7955_s19 + $0x80] ss:$8 sps:$4 sm:$0xff]  }
0x1488   : > { %v5188_v19 = vsel %vm2552_vm5, %v7641_v33, 0.0 }
0x1489   : > { %5186 = vadd.xlane.f32.xlu1 %v5185_v51  ;;  %v5189_v38 = vadd.f32 %v7639_v29, %v5188_v19  ;;  %v7427_v51 = vld [vmem:[%s7955_s19 + $0x90] ss:$8 sps:$4 sm:$0xff]   ;;  %v7432_v19 = vld [vmem:[%s7955_s19 + $0xa4] ss:$8 sps:$4 sm:$0xff]  }
0x148b   : > { %5190 = vadd.xlane.f32.xlu0 %v5189_v38  ;;  %v7430_v38 = vld [vmem:[%s7955_s19 + $0xa0] ss:$8 sps:$4 sm:$0xff]  }
0x149a   : > { %5219 = vrot.lane.b32.xlu1 %v9889_v6, %s7726_s7  ;;  %v7643_v6 = vpop.eup %7642 }
0x14a1   : > { %5221 = vrot.lane.b32.xlu0 %v9891_v30, %s7726_s7  ;;  %v7645_v30 = vpop.eup %7644 }
0x14a5   : > { %5223 = vrot.lane.b32.xlu0 %v9893_v2, %s7726_s7  ;;  %v5192_v2 = vsel %vm2552_vm5, %v7643_v6, 0.0 }
0x14a9   : > { %5225 = vrot.lane.b32.xlu0 %v9897_v11, %s7726_s7  ;;  %v5193_v11 = vadd.f32 %v7645_v30, %v5192_v2 }
0x14ad   : > { %5227 = vrot.lane.b32.xlu0 %v9898_v15, %s7726_s7 }
0x14b1   : > { %7104 = vrot.lane.b32.xlu0 %v7103_v23, %s7727_s10 }
0x14b5   : > { %7109 = vrot.lane.b32.xlu0 %v7108_v46, %s7728_s11 }
0x14be   : > { %5194 = vadd.xlane.f32.xlu1 %v5193_v11 }
0x14cf   : > { %5300 = vrot.lane.b32.xlu1 %v9270_v26, %s7727_s10 }
0x1516   : > { %v5187_v15 = vpop.xlane.xlu1 %5186 }
0x1517   : > { %7646 = vrcp.f32 %v5187_v15 }
0x1518   : > { %v5191_v58 = vpop.xlane.xlu0 %5190 }
0x1519   : > { %7648 = vrcp.f32 %v5191_v58 }
0x151a   : > { %v5220_v17 = vpop.permute.xlu1 %5219 }
0x151b   : > { %5256 = vmatpush1.bf16.msra.mxu1 %v5220_v17 }
0x151c   : > { %v5222_v22 = vpop.permute.xlu0 %5221  ;;  %5257 = vmatprep.subr.bf16.mxu1 %v9884_v14 }
0x151f   : > { %5258 = vmatpush1.bf16.msra.mxu1 %v5222_v22 }
0x1520   : > { %v5224_v23 = vpop.permute.xlu0 %5223  ;;  %5259 = vmatprep.subr.bf16.mxu1 %v9884_v14 }
0x1521   : > { %v7647_v7 = vpop.eup %7646 }
0x1522   : > { %v5200_v26 = vmul.f32 %v7647_v7, %v7637_v52  ;;  %v5199_v24 = vmul.f32 %v7647_v7, %v7635_v60  ;;  %v7418_v60 = vld [vmem:[%s7955_s19 + $0x60] ss:$8 sps:$4 sm:$0xff]   ;;  %v7423_v52 = vld [vmem:[%s7955_s19 + $0x74] ss:$8 sps:$4 sm:$0xff]  }
0x1523   : > { %v7649_v31 = vpop.eup %7648  ;;  %5260 = vmatpush1.bf16.msra.mxu1 %v5224_v23 }
0x1524   : > { %v5226_v46 = vpop.permute.xlu0 %5225  ;;  %5261 = vmatprep.subr.bf16.mxu1 %v9884_v14  ;;  %v5202_v49 = vmul.f32 %v7649_v31, %v7641_v33  ;;  %v5201_v1 = vmul.f32 %v7649_v31, %v7639_v29  ;;  %v7426_v29 = vld [vmem:[%s7955_s19 + $0x84] ss:$8 sps:$4 sm:$0xff]   ;;  %v7429_v33 = vld [vmem:[%s7955_s19 + $0x94] ss:$8 sps:$4 sm:$0xff]  }
0x1526   : > { %v5206_v48 = vpack.c.bf16 %v5202_v49, %v5200_v26  ;;  %v5205_v44 = vpack.c.bf16 %v5201_v1, %v5199_v24 }
0x1527   : > { %5262 = vmatpush1.bf16.msra.mxu1 %v5226_v46 }
0x1528   : > { %6826 = vmatprep.mubr.msk.bf16.mxu1 %vm2552_vm5, %v5206_v48  ;;  %v5228_v21 = vpop.permute.xlu0 %5227  ;;  %5263 = vmatprep.subr.bf16.mxu1 %v9884_v14 }
0x152b   : > { %5264 = vmatpush1.bf16.msra.mxu1 %v5228_v21 }
0x152c   : > { %v7105_v18 = vpop.permute.xlu0 %7104  ;;  %5479 = vmatprep.subr.bf16.mxu1 %v7402_v53 }
0x152d   : > { %v7107_v27 = vunpack.i.h.bf16 %v7105_v18  ;;  %v7106_v16 = vunpack.i.l.bf16 %v7105_v18 }
0x152e   : > { %5278 = vmatmul.mubr.bf16.vlgmr.msra.gmra.mrb[100].mxu1 %v5205_v44 }
0x152f   : > { %v5330_v39 = vsel %vm2210_vm2, %v9260_v25, %v7107_v27  ;;  %v5329_v14 = vsel %vm2210_vm2, %v9258_v5, %v7106_v16  ;;  %5480 = vmatpush1.bf16.msra.mxu1 %v7400_v61  ;;  %v3351_v27 = vld [vmem:[%s1373_s3] sm:$0x3]  ;;  %v9901_v16 = vld [vmem:[#allocation44_spill] sm:$0xff]  ;;  %v9905_v61 = vld [vmem:[#allocation47_spill] sm:$0xff] }
0x1530   : > { %v9483_v43 = vpop.permute.xlu0 %7109  ;;  %5481 = vmatprep.subr.bf16.mxu1 %v7405_v42 }
0x1531   : > { %v7112_v34 = vunpack.i.h.bf16 %v9483_v43  ;;  %v7111_v36 = vunpack.i.l.bf16 %v9483_v43  ;;  %v5346_v43 = vrot.slane %v3351_v27, %v9901_v16 }
0x1533   : > { %v9494_v32 = vsel %vm2936_vm6, %v5329_v14, %v7111_v36  ;;  %v9499_v4 = vsel %vm2936_vm6, %v5330_v39, %v7112_v34  ;;  %5482 = vmatpush1.bf16.msra.mxu1 %v7403_v45  ;;  %v9906_v45 = vld [vmem:[#allocation48_spill] sm:$0xff] }
0x1534   : > { %v5338_v37 = vpack.c.bf16 %v9499_v4, %v9494_v32  ;;  %5483 = vmatprep.subr.bf16.mxu1 %v7408_v20 }
0x1537   : > { %5484 = vmatpush1.bf16.msra.mxu1 %v7406_v3 }
0x1538   : > { %5485 = vmatprep.subr.bf16.mxu1 %v7411_v28 }
0x153b   : > { %5486 = vmatpush1.bf16.msra.mxu1 %v7409_v57 }
0x153c   : > { %5487 = vmatprep.subr.bf16.mxu1 %v7414_v62 }
0x153f   : > { %5488 = vmatpush1.bf16.msra.mxu1 %v7412_v59 }
0x1540   : > { %5489 = vmatprep.subr.bf16.mxu1 %v7417_v35 }
0x1543   : > { %5490 = vmatpush1.bf16.msra.mxu1 %v7415_v55 }
0x1544   : > { %5491 = vmatprep.subr.bf16.mxu1 %v7420_v9 }
0x1547   : > { %5492 = vmatpush1.bf16.msra.mxu1 %v7418_v60 }
0x1548   : > { %5493 = vmatprep.subr.bf16.mxu1 %v7423_v52  ;;  %v9907_v52 = vld [vmem:[#allocation49_spill] sm:$0xff] }
0x154b   : > { %v5195_v13 = vpop.xlane.xlu1 %5194  ;;  %5494 = vmatpush1.bf16.msra.mxu1 %v7421_v0 }
0x154c   : > { %7650 = vrcp.f32 %v5195_v13  ;;  %5495 = vmatprep.subr.bf16.mxu1 %v7426_v29  ;;  %v9908_v29 = vld [vmem:[#allocation50_spill] sm:$0xff] }
0x154f   : > { %5496 = vmatpush1.bf16.msra.mxu1 %v7424_v54  ;;  %v5301_v26 = vpop.permute.xlu1 %5300 }
0x1550   : > { %5497 = vmatprep.subr.bf16.mxu1 %v7429_v33  ;;  %v5331_v48 = vsel %vm2210_vm2, %v9262_v8, %v5301_v26 }
0x1553   : > { %5498 = vmatpush1.bf16.msra.mxu1 %v7427_v51 }
0x1554   : > { %5499 = vmatprep.subr.bf16.mxu1 %v7432_v19  ;;  %v7436_v19 = vld [vmem:[%s7972_s12] ss:$8 sps:$4 sm:$0xff]  }
0x1556   : > { %v7651_v25 = vpop.eup %7650 }
0x1557   : > { %v5204_v5 = vmul.f32 %v7651_v25, %v7643_v6  ;;  %v5203_v10 = vmul.f32 %v7651_v25, %v7645_v30  ;;  %5500 = vmatpush1.bf16.msra.mxu1 %v7430_v38  ;;  %v9903_v25 = vld [vmem:[#allocation45_spill] sm:$0xff] }
0x1558   : > { %5501 = vmatprep.subr.bf16.mxu1 %v7435_v47  ;;  %v7438_v38 = vld [vmem:[%s7972_s12 + $0x4] ss:$8 sps:$4 sm:$0xff]   ;;  %v7441_v47 = vld [vmem:[%s7972_s12 + $0x14] ss:$8 sps:$4 sm:$0xff]  }
0x1559   : > { %v5208_v56 = vpack.c.bf16 %v5204_v5, %v5204_v5  ;;  %v5207_v41 = vpack.c.bf16 %v5203_v10, %v5203_v10  ;;  %5792 = vmatprep.subr.bf16.mxu0 %v7438_v38  ;;  %v7484_v38 = vld [vmem:[%s7980_s9 + $0x40] ss:$8 sps:$4 sm:$0xff]  }
0x155a   : > { %5793 = vmatpush1.bf16.msra.mxu0 %v7436_v19  ;;  %v7486_v19 = vld [vmem:[%s7980_s9 + $0x44] ss:$8 sps:$4 sm:$0xff]  }
0x155b   : > { %6827 = vmatprep.mubr.msk.bf16.mxu1 %vm2552_vm5, %v5208_v56  ;;  %5502 = vmatpush1.bf16.msra.mxu1 %v7433_v12  ;;  %v9904_v56 = vld [vmem:[#allocation46_spill] sm:$0xff]  ;;  %v7439_v12 = vld [vmem:[%s7972_s12 + $0x10] ss:$8 sps:$4 sm:$0xff]  }
0x155c   : > { %5286 = vmatmul.mubr.bf16.gmra.mrb[104].mxu1 %v5207_v41  ;;  %5794 = vmatprep.subr.bf16.mxu0 %v7441_v47  ;;  %v7489_v47 = vld [vmem:[%s7980_s9 + $0x54] ss:$8 sps:$4 sm:$0xff]  }
0x155e   : > { %5795 = vmatpush1.bf16.msra.mxu0 %v7439_v12  ;;  %v7487_v12 = vld [vmem:[%s7980_s9 + $0x50] ss:$8 sps:$4 sm:$0xff]  }
0x1601   : > { %v5279_v40 = vpop.f32.mrb[100].mxu1 }
0x1602   : > { %v5281_v63 = vpop.f32.mrb[101].mxu1 }
0x1603   : > { %v5282_v6 = vpop.f32.mrb[102].mxu1  ;;  %v7442_v63 = vld [vmem:[%s7972_s12 + $0x20] ss:$8 sps:$4 sm:$0xff]  }
0x1604   : > { %v7113_v30 = vpack.i.bf16 %v5282_v6, %v5279_v40  ;;  %v5284_v2 = vpop.f32.mrb[103].mxu1  ;;  %v7444_v40 = vld [vmem:[%s7972_s12 + $0x24] ss:$8 sps:$4 sm:$0xff]   ;;  %v7447_v6 = vld [vmem:[%s7972_s12 + $0x34] ss:$8 sps:$4 sm:$0xff]  }
0x1605   : > { %5796 = vmatprep.subr.bf16.mxu0 %v7444_v40  ;;  %v7450_v2 = vld [vmem:[%s7972_s12 + $0x44] ss:$8 sps:$4 sm:$0xff]  }
0x1606   : > { %7114 = vrot.lane.b32.xlu0 %v7113_v30, %s7729_s17  ;;  %5797 = vmatpush1.bf16.msra.mxu0 %v7442_v63  ;;  %v7445_v30 = vld [vmem:[%s7972_s12 + $0x30] ss:$8 sps:$4 sm:$0xff]   ;;  %v7492_v40 = vld [vmem:[%s7980_s9 + $0x64] ss:$8 sps:$4 sm:$0xff]   ;;  %v7490_v63 = vld [vmem:[%s7980_s9 + $0x60] ss:$8 sps:$4 sm:$0xff]  }
0x1607   : > { %5798 = vmatprep.subr.bf16.mxu0 %v7447_v6  ;;  %v7495_v6 = vld [vmem:[%s7980_s9 + $0x74] ss:$8 sps:$4 sm:$0xff]  }
0x160a   : > { %5312 = vrot.lane.b32.xlu0 %v9434_v50, %s7728_s11  ;;  %5799 = vmatpush1.bf16.msra.mxu0 %v7445_v30  ;;  %v7493_v30 = vld [vmem:[%s7980_s9 + $0x70] ss:$8 sps:$4 sm:$0xff]  }
0x160b   : > { %5800 = vmatprep.subr.bf16.mxu0 %v7450_v2  ;;  %v7498_v2 = vld [vmem:[%s7980_s9 + $0x84] ss:$8 sps:$4 sm:$0xff]  }
0x162f   : > { %v5287_v11 = vpop.f32.mrb[104].mxu1 }
0x1630   : > { %5324 = vrot.lane.b32.xlu0 %v5287_v11, %s7729_s17  ;;  %v5289_v15 = vpop.f32.mrb[105].mxu1  ;;  %v7448_v11 = vld [vmem:[%s7972_s12 + $0x40] ss:$8 sps:$4 sm:$0xff]  }
0x1631   : > { %v5290_v58 = vpop.f32.mrb[106].mxu1  ;;  %5801 = vmatpush1.bf16.msra.mxu0 %v7448_v11  ;;  %v7496_v11 = vld [vmem:[%s7980_s9 + $0x80] ss:$8 sps:$4 sm:$0xff]  }
0x1632   : > { %v5291_v17 = vpop.f32.mrb[107].mxu1 }
0x1678   : > { %v7115_v22 = vpop.permute.xlu0 %7114 }
0x1679   : > { %v7117_v23 = vunpack.i.h.bf16 %v7115_v22  ;;  %v7116_v7 = vunpack.i.l.bf16 %v7115_v22 }
0x167b   : > { %v5335_v31 = vsel %vm2940_vm7, %v7111_v36, %v7116_v7  ;;  %v5336_v46 = vsel %vm2940_vm7, %v7112_v34, %v7117_v23  ;;  %v9902_v34 = vld [vmem:[#allocation43_spill] sm:$0xff] }
0x167c   : > { %v5339_v50 = vpack.c.bf16 %v5336_v46, %v5335_v31  ;;  %v5313_v49 = vpop.permute.xlu0 %5312  ;;  %v5350_v36 = vrot.slane %v3351_v27, %v9902_v34  ;;  %v7451_v27 = vld [vmem:[%s7972_s12 + $0x50] ss:$8 sps:$4 sm:$0xff]  }
0x167d   : > { %v5334_v1 = vsel %vm2936_vm6, %v5331_v48, %v5313_v49 }
0x167e   : > { %6852 = vmatprep.mubr.msk.bf16.mxu1 %vm1458_vm1, %v5339_v50  ;;  %v5340_v44 = vpack.c.bf16 %v5334_v1, %v5334_v1 }
0x167f   : > { %5512 = vmatmul.mubr.bf16.vlgmr.msra.gmra.mrb[108].mxu1 %v5338_v37 }
0x16a2   : > { %v5325_v21 = vpop.permute.xlu0 %5324 }
0x16a3   : > { %v5337_v24 = vsel %vm2940_vm7, %v5313_v49, %v5325_v21 }
0x16a4   : > { %v5341_v18 = vpack.c.bf16 %v5337_v24, %v5337_v24 }
0x16a6   : > { %6853 = vmatprep.mubr.msk.bf16.mxu1 %vm1458_vm1, %v5341_v18 }
0x16a7   : > { %5522 = vmatmul.mubr.bf16.gmra.mrb[112].mxu1 %v5340_v44  ;;  %v7453_v44 = vld [vmem:[%s7972_s12 + $0x54] ss:$8 sps:$4 sm:$0xff]  }
0x16a8   : > { %5802 = vmatprep.subr.bf16.mxu0 %v7453_v44 }
0x16a9   : > { %5803 = vmatpush1.bf16.msra.mxu0 %v7451_v27 }
0x1752   : > { %v5513_v39 = vpop.f32.mrb[108].mxu1 }
0x1753   : > { %v5514_v14 = vadd.f32 %v5513_v39, %v5346_v43  ;;  %v5515_v32 = vpop.f32.mrb[109].mxu1  ;;  %v7459_v39 = vld [vmem:[%s7972_s12 + $0x74] ss:$8 sps:$4 sm:$0xff]  }
0x1754   : > { %v5516_v8 = vadd.f32 %v5515_v32, %v5350_v36  ;;  %v5517_v4 = vpop.f32.mrb[110].mxu1  ;;  %v7462_v32 = vld [vmem:[%s7972_s12 + $0x84] ss:$8 sps:$4 sm:$0xff]  }
0x1755   : > { %v5518_v37 = vadd.f32 %v5517_v4, %v5346_v43  ;;  %v5519_v13 = vpop.f32.mrb[111].mxu1  ;;  %v9556_v41 = vadd.f32 %v5514_v14, %v9904_v56  ;;  %v7457_v14 = vld [vmem:[%s7972_s12 + $0x70] ss:$8 sps:$4 sm:$0xff]   ;;  %v7465_v4 = vld [vmem:[%s7972_s12 + $0x94] ss:$8 sps:$4 sm:$0xff]  }
0x1756   : > { %v9553_v5 = vadd.f32 %v5516_v8, %v9903_v25  ;;  %v5520_v10 = vadd.f32 %v5519_v13, %v5350_v36  ;;  %v7460_v8 = vld [vmem:[%s7972_s12 + $0x80] ss:$8 sps:$4 sm:$0xff]  }
0x1757   : > { %v9564_v20 = vadd.f32 %v5518_v37, %v9906_v45  ;;  %v7463_v37 = vld [vmem:[%s7972_s12 + $0x90] ss:$8 sps:$4 sm:$0xff]  }
0x1758   : > { %v9559_v53 = vadd.f32 %v5520_v10, %v9905_v61  ;;  %v5538_v42 = vsel %vm1458_vm1, %v9553_v5, 0.0  ;;  %v7468_v10 = vld [vmem:[%s7972_s12 + $0xa4] ss:$8 sps:$4 sm:$0xff]  }
0x1759   : > { %v5539_v3 = vadd.f32 %v5538_v42, %v9556_v41  ;;  %v7466_v42 = vld [vmem:[%s7972_s12 + $0xa0] ss:$8 sps:$4 sm:$0xff]  }
0x175a   : > { %v5542_v28 = vsel %vm1458_vm1, %v9559_v53, 0.0 }
0x175b   : > { %5540 = vadd.xlane.f32.xlu0 %v5539_v3  ;;  %v5543_v57 = vadd.f32 %v5542_v28, %v9564_v20  ;;  %v7469_v28 = vld [vmem:[%s7972_s12 + $0xb0] ss:$8 sps:$4 sm:$0xff]  }
0x175d   : > { %5544 = vadd.xlane.f32.xlu1 %v5543_v57  ;;  %v7471_v57 = vld [vmem:[%s7972_s12 + $0xb4] ss:$8 sps:$4 sm:$0xff]  }
0x177a   : > { %v5523_v62 = vpop.f32.mrb[112].mxu1 }
0x177b   : > { %v5524_v59 = vadd.f32 %v5523_v62, %v5346_v43  ;;  %v5525_v35 = vpop.f32.mrb[113].mxu1  ;;  %v7456_v43 = vld [vmem:[%s7972_s12 + $0x64] ss:$8 sps:$4 sm:$0xff]  }
0x177c   : > { %v5526_v55 = vadd.f32 %v5525_v35, %v5350_v36  ;;  %v5527_v9 = vpop.f32.mrb[114].mxu1  ;;  %v7454_v36 = vld [vmem:[%s7972_s12 + $0x60] ss:$8 sps:$4 sm:$0xff]   ;;  %5804 = vmatprep.subr.bf16.mxu0 %v7456_v43 }
0x177d   : > { %v5528_v60 = vpop.f32.mrb[115].mxu1  ;;  %v9574_v54 = vadd.f32 %v5524_v59, %v9908_v29  ;;  %5805 = vmatpush1.bf16.msra.mxu0 %v7454_v36  ;;  %v7472_v35 = vld [vmem:[%s7980_s9] ss:$8 sps:$4 sm:$0xff]   ;;  %v7477_v9 = vld [vmem:[%s7980_s9 + $0x14] ss:$8 sps:$4 sm:$0xff]  }
0x177e   : > { %v9571_v0 = vadd.f32 %v5526_v55, %v9907_v52  ;;  %5806 = vmatprep.subr.bf16.mxu0 %v7459_v39  ;;  %v7474_v55 = vld [vmem:[%s7980_s9 + $0x4] ss:$8 sps:$4 sm:$0xff]   ;;  %v7475_v60 = vld [vmem:[%s7980_s9 + $0x10] ss:$8 sps:$4 sm:$0xff]   ;;  %v7478_v29 = vld [vmem:[%s7980_s9 + $0x20] ss:$8 sps:$4 sm:$0xff]  }
0x177f   : > { %6045 = vmatprep.subr.bf16.mxu1 %v7474_v55  ;;  %v7480_v52 = vld [vmem:[%s7980_s9 + $0x24] ss:$8 sps:$4 sm:$0xff]   ;;  %v5536_v39 = vld [vmem:[%s1393_s6] sm:$0x3] }
0x1780   : > { %v5546_v33 = vsel %vm1458_vm1, %v9571_v0, 0.0  ;;  %6046 = vmatpush1.bf16.msra.mxu1 %v7472_v35 }
0x1781   : > { %v5547_v51 = vadd.f32 %v5546_v33, %v9574_v54  ;;  %5807 = vmatpush1.bf16.msra.mxu0 %v7457_v14  ;;  %6047 = vmatprep.subr.bf16.mxu1 %v7477_v9  ;;  %v7483_v33 = vld [vmem:[%s7980_s9 + $0x34] ss:$8 sps:$4 sm:$0xff]  }
0x1782   : > { %5808 = vmatprep.subr.bf16.mxu0 %v7462_v32  ;;  %v5596_v32 = vrot.slane %v5536_v39, %v9901_v16 }
0x1783   : > { %5548 = vadd.xlane.f32.xlu0 %v5547_v51  ;;  %v7481_v51 = vld [vmem:[%s7980_s9 + $0x30] ss:$8 sps:$4 sm:$0xff]  }
0x1784   : > { %6048 = vmatpush1.bf16.msra.mxu1 %v7475_v60 }
0x1785   : > { %5809 = vmatpush1.bf16.msra.mxu0 %v7460_v8  ;;  %6049 = vmatprep.subr.bf16.mxu1 %v7480_v52 }
0x1786   : > { %5810 = vmatprep.subr.bf16.mxu0 %v7465_v4 }
0x1788   : > { %6050 = vmatpush1.bf16.msra.mxu1 %v7478_v29 }
0x1789   : > { %5811 = vmatpush1.bf16.msra.mxu0 %v7463_v37  ;;  %6051 = vmatprep.subr.bf16.mxu1 %v7483_v33  ;;  %v5537_v37 = vld [vmem:[%s1397_s25] sm:$0x3]  ;;  %s9912_s25 = sld [smem:[#allocation32_spill]] }
0x178a   : > { %5812 = vmatprep.subr.bf16.mxu0 %v7468_v10  ;;  %v5613_v10 = vrot.slane %v5537_v37, %v9901_v16 }
0x178c   : > { %6052 = vmatpush1.bf16.msra.mxu1 %v7481_v51 }
0x178d   : > { %5813 = vmatpush1.bf16.msra.mxu0 %v7466_v42  ;;  %6053 = vmatprep.subr.bf16.mxu1 %v7486_v19  ;;  %v5617_v42 = vrot.slane %v5537_v37, %v9902_v34 }
0x178e   : > { %5814 = vmatprep.subr.bf16.mxu0 %v7471_v57 }
0x178f   : > { %p6912_p6 = scmp.ne.s32.totalorder %s9912_s25, 3 }
0x1790   : > { %6054 = vmatpush1.bf16.msra.mxu1 %v7484_v38 }
0x1791   : > { %5815 = vmatpush1.bf16.msra.mxu0 %v7469_v28  ;;  %6055 = vmatprep.subr.bf16.mxu1 %v7489_v47 }
0x1794   : > { %6056 = vmatpush1.bf16.msra.mxu1 %v7487_v12 }
0x1795   : > { %6057 = vmatprep.subr.bf16.mxu1 %v7492_v40 }
0x1798   : > { %6058 = vmatpush1.bf16.msra.mxu1 %v7490_v63 }
0x1799   : > { %6059 = vmatprep.subr.bf16.mxu1 %v7495_v6  ;;  %v7516_v6 = vld [vmem:[%s7980_s9 + $0xe4] ss:$8 sps:$4 sm:$0xff]  }
0x179c   : > { %6060 = vmatpush1.bf16.msra.mxu1 %v7493_v30  ;;  %v7514_v30 = vld [vmem:[%s7980_s9 + $0xe0] ss:$8 sps:$4 sm:$0xff]  }
0x179d   : > { %6061 = vmatprep.subr.bf16.mxu1 %v7498_v2  ;;  %v7519_v2 = vld [vmem:[%s7980_s9 + $0xf4] ss:$8 sps:$4 sm:$0xff]  }
0x17a0   : > { %6062 = vmatpush1.bf16.msra.mxu1 %v7496_v11  ;;  %v7517_v11 = vld [vmem:[%s7980_s9 + $0xf0] ss:$8 sps:$4 sm:$0xff]  }
0x17e8   : > { %v5541_v15 = vpop.xlane.xlu0 %5540 }
0x17e9   : > { %v5550_v58 = vmul.f32 0.0052083335, %v5541_v15  ;;  %v7501_v15 = vld [vmem:[%s7980_s9 + $0x94] ss:$8 sps:$4 sm:$0xff]  }
0x17ea   : > { %v5545_v17 = vpop.xlane.xlu1 %5544  ;;  %6063 = vmatprep.subr.bf16.mxu1 %v7501_v15 }
0x17eb   : > { %v9590_v22 = vsub.f32 %v9556_v41, %v5550_v58  ;;  %v9593_v23 = vsub.f32 %v9553_v5, %v5550_v58  ;;  %v5551_v7 = vmul.f32 0.0052083335, %v5545_v17  ;;  %v7499_v58 = vld [vmem:[%s7980_s9 + $0x90] ss:$8 sps:$4 sm:$0xff]   ;;  %v7504_v17 = vld [vmem:[%s7980_s9 + $0xa4] ss:$8 sps:$4 sm:$0xff]  }
0x17ec   : > { %6064 = vmatpush1.bf16.msra.mxu1 %v7499_v58 }
0x17ed   : > { %v5559_v31 = vmul.f32 %v9590_v22, %v9590_v22  ;;  %v5560_v46 = vmul.f32 %v9593_v23, %v9593_v23  ;;  %v9600_v50 = vsub.f32 %v9564_v20, %v5551_v7  ;;  %v9603_v26 = vsub.f32 %v9559_v53, %v5551_v7  ;;  %v7502_v7 = vld [vmem:[%s7980_s9 + $0xa0] ss:$8 sps:$4 sm:$0xff]   ;;  %6065 = vmatprep.subr.bf16.mxu1 %v7504_v17 }
0x17ef   : > { %v5562_v49 = vmul.f32 %v9603_v26, %v9603_v26  ;;  %v5565_v48 = vsel %vm1458_vm1, %v5560_v46, 0.0  ;;  %v5561_v1 = vmul.f32 %v9600_v50, %v9600_v50  ;;  %v7505_v46 = vld [vmem:[%s7980_s9 + $0xb0] ss:$8 sps:$4 sm:$0xff]  }
0x17f0   : > { %v5566_v21 = vadd.f32 %v5565_v48, %v5559_v31  ;;  %v7507_v31 = vld [vmem:[%s7980_s9 + $0xb4] ss:$8 sps:$4 sm:$0xff]   ;;  %6066 = vmatpush1.bf16.msra.mxu1 %v7502_v7  ;;  %v7508_v48 = vld [vmem:[%s7980_s9 + $0xc0] ss:$8 sps:$4 sm:$0xff]  }
0x17f1   : > { %v5569_v24 = vsel %vm1458_vm1, %v5562_v49, 0.0  ;;  %6067 = vmatprep.subr.bf16.mxu1 %v7507_v31  ;;  %v7510_v49 = vld [vmem:[%s7980_s9 + $0xc4] ss:$8 sps:$4 sm:$0xff]  }
0x17f2   : > { %5567 = vadd.xlane.f32.xlu0 %v5566_v21  ;;  %v5570_v18 = vadd.f32 %v5569_v24, %v5561_v1  ;;  %v7513_v1 = vld [vmem:[%s7980_s9 + $0xd4] ss:$8 sps:$4 sm:$0xff]   ;;  %v7511_v21 = vld [vmem:[%s7980_s9 + $0xd0] ss:$8 sps:$4 sm:$0xff]  }
0x17f4   : > { %6068 = vmatpush1.bf16.msra.mxu1 %v7505_v46 }
0x17f5   : > { %6069 = vmatprep.subr.bf16.mxu1 %v7510_v49 }
0x17f6   : > { %5571 = vadd.xlane.f32.xlu0 %v5570_v18 }
0x17f8   : > { %6070 = vmatpush1.bf16.msra.mxu1 %v7508_v48 }
0x17f9   : > { %6071 = vmatprep.subr.bf16.mxu1 %v7513_v1 }
0x17fc   : > { %6072 = vmatpush1.bf16.msra.mxu1 %v7511_v21 }
0x17fd   : > { %6073 = vmatprep.subr.bf16.mxu1 %v7516_v6 }
0x1800   : > { %6074 = vmatpush1.bf16.msra.mxu1 %v7514_v30 }
0x1801   : > { %6075 = vmatprep.subr.bf16.mxu1 %v7519_v2 }
0x1804   : > { %6076 = vmatpush1.bf16.msra.mxu1 %v7517_v11 }
0x1810   : > { %v5549_v13 = vpop.xlane.xlu0 %5548 }
0x1811   : > { %v5552_v25 = vmul.f32 0.0052083335, %v5549_v13  ;;  %v5600_v13 = vrot.slane %v5536_v39, %v9902_v34 }
0x1813   : > { %v9623_v56 = vsub.f32 %v9574_v54, %v5552_v25  ;;  %v9626_v61 = vsub.f32 %v9571_v0, %v5552_v25 }
0x1815   : > { %v5563_v45 = vmul.f32 %v9623_v56, %v9623_v56  ;;  %v5564_v3 = vmul.f32 %v9626_v61, %v9626_v61 }
0x1817   : > { %v5573_v62 = vsel %vm1458_vm1, %v5564_v3, 0.0 }
0x1818   : > { %v5574_v59 = vadd.f32 %v5573_v62, %v5563_v45 }
0x181a   : > { %5575 = vadd.xlane.f32.xlu1 %v5574_v59 }
0x187f   : > { %v5568_v24 = vpop.xlane.xlu0 %5567 }
0x1880   : > { %v5577_v18 = vmul.f32 0.0052083335, %v5568_v24 }
0x1882   : > { %v5580_v44 = vadd.f32 1e-05, %v5577_v18 }
0x1883   : > { %v5572_v27 = vpop.xlane.xlu0 %5571 }
0x1884   : > { %7652 = vrsqrt.f32 %v5580_v44  ;;  %v5578_v43 = vmul.f32 0.0052083335, %v5572_v27 }
0x1886   : > { %v5581_v36 = vadd.f32 1e-05, %v5578_v43 }
0x1888   : > { %7654 = vrsqrt.f32 %v5581_v36 }
0x188e   : > { %v7653_v14 = vpop.eup %7652 }
0x188f   : > { %v5586_v8 = vmul.f32 %v7653_v14, %v9590_v22  ;;  %v5587_v4 = vmul.f32 %v7653_v14, %v9593_v23 }
0x1891   : > { %v5603_v45 = vmul.f32 %v5596_v32, %v5586_v8  ;;  %v5604_v57 = vmul.f32 %v5600_v13, %v5587_v4 }
0x1892   : > { %v7655_v25 = vpop.eup %7654 }
0x1893   : > { %v5588_v3 = vmul.f32 %v7655_v25, %v9600_v50  ;;  %v5589_v28 = vmul.f32 %v7655_v25, %v9603_v26  ;;  %v5621_v22 = vadd.f32 %v5617_v42, %v5604_v57  ;;  %v5620_v23 = vadd.f32 %v5613_v10, %v5603_v45 }
0x1895   : > { %v5605_v62 = vmul.f32 %v5596_v32, %v5588_v3  ;;  %v5606_v59 = vmul.f32 %v5600_v13, %v5589_v28 }
0x1897   : > { %v5623_v35 = vadd.f32 %v5617_v42, %v5606_v59  ;;  %v5622_v55 = vadd.f32 %v5613_v10, %v5605_v62 }
0x1899   : > { %v5627_v9 = vpack.c.bf16 %v5623_v35, %v5621_v22  ;;  %v5626_v60 = vpack.c.bf16 %v5622_v55, %v5620_v23 }
0x189b   : > { %6878 = vmatprep.mubr.msk.bf16.mxu0 %vm1458_vm1, %v5627_v9 }
0x189c   : > { %5825 = vmatmul.mubr.bf16.vlgmr.msra.gmra.mrb[108].mxu0 %v5626_v60 }
0x18a7   : > { %v5576_v52 = vpop.xlane.xlu1 %5575 }
0x18a8   : > { %v5579_v29 = vmul.f32 0.0052083335, %v5576_v52 }
0x18aa   : > { %v5582_v33 = vadd.f32 1e-05, %v5579_v29 }
0x18ac   : > { %7656 = vrsqrt.f32 %v5582_v33 }
0x18b6   : > { %v7657_v50 = vpop.eup %7656 }
0x18b7   : > { %v5591_v26 = vmul.f32 %v7657_v50, %v9626_v61  ;;  %v5590_v51 = vmul.f32 %v7657_v50, %v9623_v56  ;;  %v5654_v56 = vld [vmem:[%s1406_s29] sm:$0x3]  ;;  %s9913_s29 = sld [smem:[#allocation31_spill]] (!%p6912_p6) }
0x18b8   : > { %v5659_v61 = vrot.slane %v5654_v56, %v9901_v16  ;;  %v5663_v15 = vrot.slane %v5654_v56, %v9902_v34 }
0x18b9   : > { %v5608_v19 = vmul.f32 %v5600_v13, %v5591_v26  ;;  %v5607_v38 = vmul.f32 %v5596_v32, %v5590_v51 }
0x18bb   : > { %v5625_v47 = vadd.f32 %v5617_v42, %v5608_v19  ;;  %v5624_v12 = vadd.f32 %v5613_v10, %v5607_v38  ;;  %v6102_v42 = vld [vmem:[%s1415_s20] sm:$0x3] }
0x18bc   : > { %v6107_v45 = vrot.slane %v6102_v42, %v9901_v16  ;;  %v6111_v28 = vrot.slane %v6102_v42, %v9902_v34 }
0x18bd   : > { %v5629_v40 = vpack.c.bf16 %v5625_v47, %v5625_v47  ;;  %v5628_v63 = vpack.c.bf16 %v5624_v12, %v5624_v12 }
0x18bf   : > { %6879 = vmatprep.mubr.msk.bf16.mxu0 %vm1458_vm1, %v5629_v40 }
0x18c0   : > { %5835 = vmatmul.mubr.bf16.gmra.mrb[112].mxu0 %v5628_v63 }
0x196f   : > { %v5826_v58 = vpop.f32.mrb[108].mxu0 }
0x1970   : > { %v5827_v17 = vadd.f32 %v5826_v58, %v5659_v61  ;;  %v5828_v7 = vpop.f32.mrb[109].mxu0 }
0x1971   : > { %v5829_v31 = vadd.f32 %v5828_v7, %v5663_v15  ;;  %v5830_v46 = vpop.f32.mrb[110].mxu0 }
0x1972   : > { %v5831_v49 = vadd.f32 %v5830_v46, %v5659_v61  ;;  %v5832_v48 = vpop.f32.mrb[111].mxu0  ;;  %v5843_v21 = vmax.f32 %v5827_v17, 0.0 }
0x1973   : > { %v5833_v1 = vadd.f32 %v5832_v48, %v5663_v15  ;;  %v5844_v18 = vmax.f32 %v5829_v31, 0.0 }
0x1974   : > { %v5845_v24 = vmax.f32 %v5831_v49, 0.0 }
0x1975   : > { %v5846_v44 = vmax.f32 %v5833_v1, 0.0 }
0x1976   : > { %v5849_v27 = vpack.c.bf16 %v5845_v24, %v5843_v21 }
0x1977   : > { %v5850_v43 = vpack.c.bf16 %v5846_v44, %v5844_v18 }
0x1979   : > { %6077 = vmatprep.mubr.bf16.mxu1 %v5850_v43 }
0x197a   : > { %6078 = vmatmul.mubr.bf16.vlgmr.msra.gmra.mrb[116].mxu1 %v5849_v27 }
0x1993   : > { %v5836_v36 = vpop.f32.mrb[112].mxu0 }
0x1994   : > { %v5837_v39 = vadd.f32 %v5836_v36, %v5659_v61  ;;  %v5838_v14 = vpop.f32.mrb[113].mxu0 }
0x1995   : > { %v5839_v32 = vadd.f32 %v5838_v14, %v5663_v15  ;;  %v5840_v8 = vpop.f32.mrb[114].mxu0 }
0x1996   : > { %v5847_v4 = vmax.f32 %v5837_v39, 0.0  ;;  %v5841_v37 = vpop.f32.mrb[115].mxu0 }
0x1997   : > { %v5848_v13 = vmax.f32 %v5839_v32, 0.0 }
0x1998   : > { %v5851_v10 = vpack.c.bf16 %v5847_v4, %v5847_v4 }
0x1999   : > { %v5852_v25 = vpack.c.bf16 %v5848_v13, %v5848_v13 }
0x199b   : > { %6087 = vmatprep.mubr.bf16.mxu1 %v5852_v25 }
0x199c   : > { %6088 = vmatmul.mubr.bf16.gmra.mrb[120].mxu1 %v5851_v10 }
0x1a4d   : > { %v6079_v3 = vpop.f32.mrb[116].mxu1 }
0x1a4e   : > { %v6096_v57 = vadd.f32 %v6079_v3, %v9556_v41  ;;  %v6081_v62 = vpop.f32.mrb[117].mxu1 }
0x1a4f   : > { %v6097_v59 = vadd.f32 %v6081_v62, %v9553_v5  ;;  %v6083_v22 = vpop.f32.mrb[118].mxu1 }
0x1a50   : > { %v6114_v35 = vadd.f32 %v6107_v45, %v6096_v57  ;;  %v6098_v23 = vadd.f32 %v6083_v22, %v9564_v20  ;;  %v6085_v55 = vpop.f32.mrb[119].mxu1 }
0x1a51   : > { %v6115_v9 = vadd.f32 %v6111_v28, %v6097_v59  ;;  %v6099_v60 = vadd.f32 %v6085_v55, %v9559_v53 }
0x1a52   : > { %6120 = vst [vmem:[#allocation2] sm:$0xff] %v6114_v35  ;;  %v6116_v52 = vadd.f32 %v6107_v45, %v6098_v23  ;;  %6130 = vst [vmem:[%s9913_s29] sm:$0xff] (!%p6912_p6), %v6114_v35 }
0x1a53   : > { %6121 = vst.msk [vmem:[#allocation2 + $0x8] sm:$0xff] %vm1458_vm1, %v6115_v9  ;;  %v6117_v16 = vadd.f32 %v6111_v28, %v6099_v60  ;;  %6131 = vst.msk [vmem:[%s9913_s29 + $0x8] sm:$0xff] (!%p6912_p6), %vm1458_vm1, %v6115_v9 }
0x1a54   : > { %6122 = vst [vmem:[#allocation2 + $0x10] sm:$0xff] %v6116_v52  ;;  %6132 = vst [vmem:[%s9913_s29 + $0x10] sm:$0xff] (!%p6912_p6), %v6116_v52 }
0x1a55   : > { %6123 = vst.msk [vmem:[#allocation2 + $0x18] sm:$0xff] %vm1458_vm1, %v6117_v16  ;;  %6133 = vst.msk [vmem:[%s9913_s29 + $0x18] sm:$0xff] (!%p6912_p6), %vm1458_vm1, %v6117_v16 }
0x1a6f   : > { %v6089_v34 = vpop.f32.mrb[120].mxu1  ;;  %6129 = sbr.rel (%p6912_p6) target bundleno = 6774 (0x1a76), region = 148 }
0x1a70   : > { %v6100_v41 = vadd.f32 %v6089_v34, %v9574_v54  ;;  %v6091_v5 = vpop.f32.mrb[121].mxu1 }
0x1a71   : > { %v6101_v29 = vadd.f32 %v6091_v5, %v9571_v0  ;;  %v6093_v33 = vpop.f32.mrb[122].mxu1 }
0x1a72   : > { %v6118_v20 = vadd.f32 %v6107_v45, %v6100_v41  ;;  %v6094_v50 = vpop.f32.mrb[123].mxu1 }
0x1a73   : > { %v6119_v26 = vadd.f32 %v6111_v28, %v6101_v29 }
0x1a74   : > { %6124 = vst [vmem:[#allocation2 + $0x20] sm:$0xff] %v6118_v20  ;;  %6134 = vst [vmem:[%s9913_s29 + $0x20] sm:$0xff] (!%p6912_p6), %v6118_v20 }
0x1a75   : > { %6125 = vst.msk [vmem:[#allocation2 + $0x28] sm:$0xff] %vm1458_vm1, %v6119_v26  ;;  %6135 = vst.msk [vmem:[%s9913_s29 + $0x28] sm:$0xff] (!%p6912_p6), %vm1458_vm1, %v6119_v26 }
0x1a76 PF: > { %s9914_s6 = sld [smem:[#allocation34_spill]]  ;;  %s9915_s15 = sld [smem:[#allocation33_spill]] }
0x1a77   : > { %s9916_s16 = sld [smem:[#allocation35_spill]] }
0x1a7c   : > { %s71_s18 = sadd.s32 1, %s9914_s6  }
0x1a7d   : > { %p68_p7 = scmp.ge.s32.totalorder %s71_s18, 6  }
0x1a7f   :  { %70 = sbr.rel (!%p68_p7) target bundleno = 70 (0x46), region = 286 }

</bundles_post_ra>
